<compile_context>
chip_gen: v5e
topology: v5e:2x2
jax: 0.10.0
libtpu: 0.0.40
codegen_flags: <defaults>
</compile_context>

<pallas_src>
import functools

import jax
import jax.numpy as jnp
from jax.experimental import pallas as pl
from jax.experimental.pallas import tpu as pltpu


# ----------------------------- in-kernel helpers ----------------------------

def _ln(x, g, b, eps):
    mu = jnp.mean(x, axis=-1, keepdims=True)
    var = jnp.mean(jnp.square(x - mu), axis=-1, keepdims=True)
    return (x - mu) * jax.lax.rsqrt(var + eps) * g + b


def _gelu(x):
    # TODO(synk): nn.GELU default is exact erf; tanh approximation used here.
    c = jnp.float32(0.7978845608028654)
    return 0.5 * x * (1.0 + jnp.tanh(c * (x + 0.044715 * x * x * x)))


# ------------------------------ Pallas kernels ------------------------------

def _linear_kernel(x_ref, w_ref, b_ref, o_ref):
    y = jnp.dot(x_ref[...].astype(jnp.float32), w_ref[...].astype(jnp.float32),
                preferred_element_type=jnp.float32) + b_ref[...].astype(jnp.float32)
    o_ref[...] = y.astype(o_ref.dtype)


def linear(x, w, b, block_rows=None):
    M, K = x.shape
    _, N = w.shape
    bm = block_rows if (block_rows and M % block_rows == 0) else M
    return pl.pallas_call(
        _linear_kernel,
        out_shape=jax.ShapeDtypeStruct((M, N), x.dtype),
        grid=(M // bm,),
        in_specs=[
            pl.BlockSpec((bm, K), lambda i: (i, 0)),
            pl.BlockSpec((K, N), lambda i: (0, 0)),
            pl.BlockSpec((1, N), lambda i: (0, 0)),
        ],
        out_specs=pl.BlockSpec((bm, N), lambda i: (i, 0)),
        compiler_params=pltpu.CompilerParams(dimension_semantics=("parallel",)),
    )(x, w, b.reshape(1, N))


def _mlp_block_kernel(x_ref, lng_ref, lnb_ref, w1_ref, b1_ref, w2_ref, b2_ref,
                      o_ref, *, eps):
    # Fused: LayerNorm -> fc1 -> GELU -> fc2 -> residual (all resident in VMEM).
    x = x_ref[...].astype(jnp.float32)
    h = _ln(x, lng_ref[...], lnb_ref[...], eps)
    h = _gelu(jnp.dot(h, w1_ref[...], preferred_element_type=jnp.float32) + b1_ref[...])
    h = jnp.dot(h, w2_ref[...], preferred_element_type=jnp.float32) + b2_ref[...]
    o_ref[...] = (x + h).astype(o_ref.dtype)


def mlp_block(x, p, block_rows, eps=1e-6):
    M, D = x.shape
    Hd = p["fc1_w"].shape[1]
    bm = block_rows if (block_rows and M % block_rows == 0) else M
    return pl.pallas_call(
        functools.partial(_mlp_block_kernel, eps=eps),
        out_shape=jax.ShapeDtypeStruct((M, D), x.dtype),
        grid=(M // bm,),
        in_specs=[
            pl.BlockSpec((bm, D), lambda i: (i, 0)),
            pl.BlockSpec((1, D), lambda i: (0, 0)),
            pl.BlockSpec((1, D), lambda i: (0, 0)),
            pl.BlockSpec((D, Hd), lambda i: (0, 0)),
            pl.BlockSpec((1, Hd), lambda i: (0, 0)),
            pl.BlockSpec((Hd, D), lambda i: (0, 0)),
            pl.BlockSpec((1, D), lambda i: (0, 0)),
        ],
        out_specs=pl.BlockSpec((bm, D), lambda i: (i, 0)),
        compiler_params=pltpu.CompilerParams(dimension_semantics=("parallel",)),
    )(x, p["ln_g"].reshape(1, D), p["ln_b"].reshape(1, D),
      p["fc1_w"], p["fc1_b"].reshape(1, Hd),
      p["fc2_w"], p["fc2_b"].reshape(1, D))


def _attn_block_kernel(x_ref, ln1g_ref, ln1b_ref, qkvw_ref, qkvb_ref,
                       projw_ref, projb_ref, ln2g_ref, ln2b_ref,
                       w1_ref, b1_ref, w2_ref, b2_ref, o_ref,
                       *, num_heads, eps):
    # One grid step == one batch element; the whole transformer block
    # (ln1 + qkv + MHSA + proj + residual + ln2 + MLP + residual) stays in VMEM.
    x = x_ref[0].astype(jnp.float32)                      # (S, D)
    D = x.shape[1]
    d = D // num_heads
    scale = jnp.float32(1.0 / (d ** 0.5))

    h = _ln(x, ln1g_ref[...], ln1b_ref[...], eps)
    # lane-dense (S, 3D) qkv slab, sliced per head inside the kernel
    qkv = jnp.dot(h, qkvw_ref[...], preferred_element_type=jnp.float32) + qkvb_ref[...]

    heads = []
    for hi in range(num_heads):                           # static unroll
        q = qkv[:, hi * d:(hi + 1) * d] * scale
        k = qkv[:, D + hi * d:D + (hi + 1) * d]
        v = qkv[:, 2 * D + hi * d:2 * D + (hi + 1) * d]
        s = jax.lax.dot_general(q, k, (((1,), (1,)), ((), ())),
                                preferred_element_type=jnp.float32)
        s = s - jnp.max(s, axis=-1, keepdims=True)
        pmat = jnp.exp(s)
        pmat = pmat * pl.reciprocal(jnp.sum(pmat, axis=-1, keepdims=True), approx=True)
        heads.append(jnp.dot(pmat, v, preferred_element_type=jnp.float32))
    attn = jnp.concatenate(heads, axis=-1)                # (S, D)

    x = x + jnp.dot(attn, projw_ref[...], preferred_element_type=jnp.float32) + projb_ref[...]

    h = _ln(x, ln2g_ref[...], ln2b_ref[...], eps)
    h = _gelu(jnp.dot(h, w1_ref[...], preferred_element_type=jnp.float32) + b1_ref[...])
    h = jnp.dot(h, w2_ref[...], preferred_element_type=jnp.float32) + b2_ref[...]
    o_ref[...] = (x + h)[None].astype(o_ref.dtype)


def attn_block(x, p, num_heads, eps=1e-6):
    B, S, D = x.shape
    Hd = p["fc1_w"].shape[1]

    def vec(n):
        return pl.BlockSpec((1, n), lambda b: (0, 0))

    return pl.pallas_call(
        functools.partial(_attn_block_kernel, num_heads=num_heads, eps=eps),
        out_shape=jax.ShapeDtypeStruct((B, S, D), x.dtype),
        grid=(B,),
        in_specs=[
            pl.BlockSpec((1, S, D), lambda b: (b, 0, 0)),
            vec(D), vec(D),
            pl.BlockSpec((D, 3 * D), lambda b: (0, 0)), vec(3 * D),
            pl.BlockSpec((D, D), lambda b: (0, 0)), vec(D),
            vec(D), vec(D),
            pl.BlockSpec((D, Hd), lambda b: (0, 0)), vec(Hd),
            pl.BlockSpec((Hd, D), lambda b: (0, 0)), vec(D),
        ],
        out_specs=pl.BlockSpec((1, S, D), lambda b: (b, 0, 0)),
        compiler_params=pltpu.CompilerParams(dimension_semantics=("parallel",)),
    )(x,
      p["ln1_g"].reshape(1, D), p["ln1_b"].reshape(1, D),
      p["qkv_w"], p["qkv_b"].reshape(1, 3 * D),
      p["proj_w"], p["proj_b"].reshape(1, D),
      p["ln2_g"].reshape(1, D), p["ln2_b"].reshape(1, D),
      p["fc1_w"], p["fc1_b"].reshape(1, Hd),
      p["fc2_w"], p["fc2_b"].reshape(1, D))


def _merge_kernel(x_ref, lng_ref, lnb_ref, w_ref, b_ref, o_ref, *, eps):
    # Fused: LayerNorm(4*dim) + reduction Linear of the patch-merge.
    x = x_ref[...].astype(jnp.float32)
    h = _ln(x, lng_ref[...], lnb_ref[...], eps)
    o_ref[...] = (jnp.dot(h, w_ref[...], preferred_element_type=jnp.float32)
                  + b_ref[...]).astype(o_ref.dtype)


def patch_merge(x2d, B, hw, dim, lng, lnb, w, b, eps=1e-6):
    # TODO(synk): the 2x2 window gather stays at XLA level (strided slices +
    # concat, no 6-D transpose); folding it into the kernel would need strided
    # sublane ref reads.
    x = x2d.reshape(B, hw, hw, dim)
    xm = jnp.concatenate([x[:, 0::2, 0::2, :], x[:, 0::2, 1::2, :],
                          x[:, 1::2, 0::2, :], x[:, 1::2, 1::2, :]], axis=-1)
    xm = xm.reshape(B * (hw // 2) * (hw // 2), 4 * dim)
    N = w.shape[1]
    return pl.pallas_call(
        functools.partial(_merge_kernel, eps=eps),
        out_shape=jax.ShapeDtypeStruct((xm.shape[0], N), x2d.dtype),
    )(xm, lng.reshape(1, 4 * dim), lnb.reshape(1, 4 * dim), w, b.reshape(1, N))


def _head_kernel(x_ref, fng_ref, fnb_ref, hw_ref, hb_ref, o_ref, *, eps):
    # Fused: token mean-pool -> fc_norm LayerNorm -> BatchNorm1d(no affine) -> head.
    x = x_ref[...].astype(jnp.float32)                    # (B, S, D)
    f = jnp.mean(x, axis=1)                               # (B, D) mean-pool
    mu = jnp.mean(f, axis=-1, keepdims=True)              # fc_norm LayerNorm
    var = jnp.mean(jnp.square(f - mu), axis=-1, keepdims=True)
    f = (f - mu) * jax.lax.rsqrt(var + eps) * fng_ref[...] + fnb_ref[...]
    # TODO(synk): BatchNorm1d(affine=False) uses per-call batch statistics
    # (training mode); eval-mode running buffers are not modeled.
    bmu = jnp.mean(f, axis=0, keepdims=True)
    bvar = jnp.mean(jnp.square(f - bmu), axis=0, keepdims=True)
    f = (f - bmu) * jax.lax.rsqrt(bvar + eps)
    y = jnp.dot(f, hw_ref[...], preferred_element_type=jnp.float32) + hb_ref[...]
    o_ref[...] = y.astype(o_ref.dtype)


def head(x3d, fng, fnb, hw_, hb, eps=1e-6):
    B, S, D = x3d.shape
    C = hw_.shape[1]
    return pl.pallas_call(
        functools.partial(_head_kernel, eps=eps),
        out_shape=jax.ShapeDtypeStruct((B, C), x3d.dtype),
    )(x3d, fng.reshape(1, D), fnb.reshape(1, D), hw_, hb.reshape(1, C))


# ----------------------------- parameter init -------------------------------

def _mlp_block_params(key, dim, hidden):
    k1, k2 = jax.random.split(key)
    return {
        "ln_g": jnp.ones((dim,), jnp.float32),
        "ln_b": jnp.zeros((dim,), jnp.float32),
        "fc1_w": 0.02 * jax.random.normal(k1, (dim, hidden), jnp.float32),
        "fc1_b": jnp.zeros((hidden,), jnp.float32),
        "fc2_w": 0.02 * jax.random.normal(k2, (hidden, dim), jnp.float32),
        "fc2_b": jnp.zeros((dim,), jnp.float32),
    }


def _attn_block_params(key, dim, hidden):
    k1, k2, k3, k4 = jax.random.split(key, 4)
    return {
        "ln1_g": jnp.ones((dim,), jnp.float32), "ln1_b": jnp.zeros((dim,), jnp.float32),
        "qkv_w": 0.02 * jax.random.normal(k1, (dim, 3 * dim), jnp.float32),
        "qkv_b": jnp.zeros((3 * dim,), jnp.float32),
        "proj_w": 0.02 * jax.random.normal(k2, (dim, dim), jnp.float32),
        "proj_b": jnp.zeros((dim,), jnp.float32),
        "ln2_g": jnp.ones((dim,), jnp.float32), "ln2_b": jnp.zeros((dim,), jnp.float32),
        "fc1_w": 0.02 * jax.random.normal(k3, (dim, hidden), jnp.float32),
        "fc1_b": jnp.zeros((hidden,), jnp.float32),
        "fc2_w": 0.02 * jax.random.normal(k4, (hidden, dim), jnp.float32),
        "fc2_b": jnp.zeros((dim,), jnp.float32),
    }


def init_params(key, cfg):
    D = cfg["embed_dim"]
    D4, D2 = D // 4, D // 2
    p = cfg["patch"]
    keys = iter(jax.random.split(key, 32))
    params = {}
    params["patch_w"] = 0.02 * jax.random.normal(next(keys), (3 * p * p, D4), jnp.float32)
    params["patch_b"] = jnp.zeros((D4,), jnp.float32)
    params["stage1"] = [_mlp_block_params(next(keys), D4, int(cfg["stem_mlp_ratio"] * D4))
                        for _ in range(cfg["depths"][0])]
    params["merge1_ln_g"] = jnp.ones((4 * D4,), jnp.float32)
    params["merge1_ln_b"] = jnp.zeros((4 * D4,), jnp.float32)
    params["merge1_w"] = 0.02 * jax.random.normal(next(keys), (4 * D4, D2), jnp.float32)
    params["merge1_b"] = jnp.zeros((D2,), jnp.float32)
    params["stage2"] = [_mlp_block_params(next(keys), D2, int(cfg["stem_mlp_ratio"] * D2))
                        for _ in range(cfg["depths"][1])]
    params["merge2_ln_g"] = jnp.ones((4 * D2,), jnp.float32)
    params["merge2_ln_b"] = jnp.zeros((4 * D2,), jnp.float32)
    params["merge2_w"] = 0.02 * jax.random.normal(next(keys), (4 * D2, D), jnp.float32)
    params["merge2_b"] = jnp.zeros((D,), jnp.float32)
    hw3 = cfg["img"] // cfg["patch"] // 4
    params["pos_embed"] = 0.02 * jax.random.normal(next(keys), (1, hw3 * hw3, D), jnp.float32)
    params["stage3"] = [_attn_block_params(next(keys), D, int(cfg["mlp_ratio"] * D))
                        for _ in range(cfg["depths"][2])]
    params["fc_norm_g"] = jnp.ones((D,), jnp.float32)
    params["fc_norm_b"] = jnp.zeros((D,), jnp.float32)
    params["head_w"] = 0.01 * jax.random.normal(next(keys), (D, cfg["num_classes"]), jnp.float32)
    params["head_b"] = jnp.zeros((cfg["num_classes"],), jnp.float32)
    return params


# --------------------------------- forward ----------------------------------

def custom_clip_forward(params, image, cfg):
    B = image.shape[0]
    Himg = image.shape[2]
    p = cfg["patch"]
    hp = Himg // p
    pp = p * p
    D = cfg["embed_dim"]
    D4, D2 = D // 4, D // 2

    # forward(): image = torch.concat([image, image, image], 1)
    # Channels are identical, so the replication is folded into the patch-embed
    # weight: [x,x,x] @ W == x @ (W_c0 + W_c1 + W_c2). 3x less im2col/matmul K.
    pw = params["patch_w"]
    pw_eff = pw[0:pp] + pw[pp:2 * pp] + pw[2 * pp:3 * pp]

    # patch embedding (conv k=p stride=p) as single-channel im2col + matmul
    x = image.reshape(B, Himg, Himg)
    patches = x.reshape(B, hp, p, hp, p).transpose(0, 1, 3, 2, 4).reshape(B * hp * hp, pp)
    t = linear(patches, pw_eff, params["patch_b"], block_rows=hp * hp)     # (B*hp*hp, D/4)

    for blk in params["stage1"]:
        t = mlp_block(t, blk, block_rows=hp * hp)
    t = patch_merge(t, B, hp, D4, params["merge1_ln_g"], params["merge1_ln_b"],
                    params["merge1_w"], params["merge1_b"])
    hw2 = hp // 2
    for blk in params["stage2"]:
        t = mlp_block(t, blk, block_rows=hw2 * hw2)
    t = patch_merge(t, B, hw2, D2, params["merge2_ln_g"], params["merge2_ln_b"],
                    params["merge2_w"], params["merge2_b"])
    hw3 = hw2 // 2
    S = hw3 * hw3

    # absolute position embedding (ape=True)
    t = t.reshape(B, S, D) + params["pos_embed"]
    for blk in params["stage3"]:
        t = attn_block(t, blk, cfg["num_heads"])

    # token mean-pool + fc_norm + BatchNorm1d(no affine) + Linear head (fused)
    return head(t, params["fc_norm_g"], params["fc_norm_b"],
                params["head_w"], params["head_b"])


if __name__ == "__main__":
    cfg = dict(embed_dim=32, depths=(1, 1, 2), num_heads=4, stem_mlp_ratio=3.0,
               mlp_ratio=4.0, num_classes=10, patch=4, img=32)
    key = jax.random.PRNGKey(0)
    kp, kx = jax.random.split(key)
    params = init_params(kp, cfg)
    image = jax.random.normal(kx, (2, 1, cfg["img"], cfg["img"]), jnp.float32)  # NCHW, 1 channel
    fwd = jax.jit(functools.partial(custom_clip_forward, cfg=cfg))
    out = fwd(params, image)
    out = jax.block_until_ready(out)
    assert out.shape == (2, cfg["num_classes"]) and out.dtype == jnp.float32
    print("KERNEL_OK")
</pallas_src>

<mosaic_0001>
module attributes {stable_mosaic.version = 11 : i64} {
  func.func @_linear_kernel(%arg0: i32, %arg1: memref<64x16xf32, #tpu.memory_space<vmem>>, %arg2: memref<16x8xf32, #tpu.memory_space<vmem>>, %arg3: memref<1x8xf32, #tpu.memory_space<vmem>>, %arg4: memref<64x8xf32, #tpu.memory_space<vmem>>) attributes {dimension_semantics = [#tpu.dimension_semantics<parallel>], iteration_bounds = array<i64: 2>, scalar_prefetch = 0 : i64, scratch_operands = 0 : i64, tpu.core_type = #tpu.core_type<tc>, window_params = [{transform_indices = @transform_0, window_bounds = array<i64: 64, 16>}, {pipeline_mode = #tpu.pipeline_mode<synchronous>, transform_indices = @transform_1, window_bounds = array<i64: 16, 8>}, {pipeline_mode = #tpu.pipeline_mode<synchronous>, transform_indices = @transform_2, window_bounds = array<i64: 1, 8>}, {transform_indices = @transform_3, window_bounds = array<i64: 64, 8>}]} {
    %c0 = arith.constant 0 : index
    %c0_0 = arith.constant 0 : index
    %0 = vector.load %arg1[%c0, %c0_0] : memref<64x16xf32, #tpu.memory_space<vmem>>, vector<64x16xf32>
    %c0_1 = arith.constant 0 : index
    %c0_2 = arith.constant 0 : index
    %1 = vector.load %arg2[%c0_1, %c0_2] : memref<16x8xf32, #tpu.memory_space<vmem>>, vector<16x8xf32>
    %cst = arith.constant dense<0.000000e+00> : vector<64x8xf32>
    %2 = tpu.matmul %0, %1, %cst {dimension_numbers = #tpu.dot_dimension_numbers<[1], [0], [0], [1], [0, 0, 1, 1], [], []>} : vector<64x16xf32>, vector<16x8xf32>, vector<64x8xf32> -> vector<64x8xf32>
    %c0_3 = arith.constant 0 : index
    %c0_4 = arith.constant 0 : index
    %3 = vector.load %arg3[%c0_3, %c0_4] : memref<1x8xf32, #tpu.memory_space<vmem>>, vector<1x8xf32>
    %4 = vector.broadcast %3 : vector<1x8xf32> to vector<64x8xf32>
    %5 = arith.addf %2, %4 : vector<64x8xf32>
    %c0_5 = arith.constant 0 : index
    %c0_6 = arith.constant 0 : index
    %6 = vector.load %arg4[%c0_5, %c0_6] : memref<64x8xf32, #tpu.memory_space<vmem>>, vector<64x8xf32>
    tpu.vector_store %arg4[%c0_5, %c0_6], %5 {strides = array<i32>} : memref<64x8xf32, #tpu.memory_space<vmem>>, vector<64x8xf32>,
    return
  }
  func.func @transform_0(%arg0: i32) -> (i32, i32) {
    %c0_i32 = arith.constant 0 : i32
    %c0_i32_0 = arith.constant 0 : i32
    return %arg0, %c0_i32 : i32, i32
  }
  func.func @transform_1(%arg0: i32) -> (i32, i32) {
    %c0_i32 = arith.constant 0 : i32
    %c0_i32_0 = arith.constant 0 : i32
    %c0_i32_1 = arith.constant 0 : i32
    return %c0_i32, %c0_i32_0 : i32, i32
  }
  func.func @transform_2(%arg0: i32) -> (i32, i32) {
    %c0_i32 = arith.constant 0 : i32
    %c0_i32_0 = arith.constant 0 : i32
    %c0_i32_1 = arith.constant 0 : i32
    return %c0_i32, %c0_i32_0 : i32, i32
  }
  func.func @transform_3(%arg0: i32) -> (i32, i32) {
    %c0_i32 = arith.constant 0 : i32
    %c0_i32_0 = arith.constant 0 : i32
    return %arg0, %c0_i32 : i32, i32
  }
}

module attributes {stable_mosaic.version = 11 : i64} {
  func.func @_mlp_block_kernel(%arg0: i32, %arg1: memref<64x8xf32, #tpu.memory_space<vmem>>, %arg2: memref<1x8xf32, #tpu.memory_space<vmem>>, %arg3: memref<1x8xf32, #tpu.memory_space<vmem>>, %arg4: memref<8x24xf32, #tpu.memory_space<vmem>>, %arg5: memref<1x24xf32, #tpu.memory_space<vmem>>, %arg6: memref<24x8xf32, #tpu.memory_space<vmem>>, %arg7: memref<1x8xf32, #tpu.memory_space<vmem>>, %arg8: memref<64x8xf32, #tpu.memory_space<vmem>>) attributes {dimension_semantics = [#tpu.dimension_semantics<parallel>], iteration_bounds = array<i64: 2>, scalar_prefetch = 0 : i64, scratch_operands = 0 : i64, tpu.core_type = #tpu.core_type<tc>, window_params = [{transform_indices = @transform_0, window_bounds = array<i64: 64, 8>}, {pipeline_mode = #tpu.pipeline_mode<synchronous>, transform_indices = @transform_1, window_bounds = array<i64: 1, 8>}, {pipeline_mode = #tpu.pipeline_mode<synchronous>, transform_indices = @transform_2, window_bounds = array<i64: 1, 8>}, {pipeline_mode = #tpu.pipeline_mode<synchronous>, transform_indices = @transform_3, window_bounds = array<i64: 8, 24>}, {pipeline_mode = #tpu.pipeline_mode<synchronous>, transform_indices = @transform_4, window_bounds = array<i64: 1, 24>}, {pipeline_mode = #tpu.pipeline_mode<synchronous>, transform_indices = @transform_5, window_bounds = array<i64: 24, 8>}, {pipeline_mode = #tpu.pipeline_mode<synchronous>, transform_indices = @transform_6, window_bounds = array<i64: 1, 8>}, {transform_indices = @transform_7, window_bounds = array<i64: 64, 8>}]} {
    %c0 = arith.constant 0 : index
    %c0_0 = arith.constant 0 : index
    %0 = vector.load %arg1[%c0, %c0_0] : memref<64x8xf32, #tpu.memory_space<vmem>>, vector<64x8xf32>
    %c0_1 = arith.constant 0 : index
    %c0_2 = arith.constant 0 : index
    %1 = vector.load %arg2[%c0_1, %c0_2] : memref<1x8xf32, #tpu.memory_space<vmem>>, vector<1x8xf32>
    %c0_3 = arith.constant 0 : index
    %c0_4 = arith.constant 0 : index
    %2 = vector.load %arg3[%c0_3, %c0_4] : memref<1x8xf32, #tpu.memory_space<vmem>>, vector<1x8xf32>
    %cst = arith.constant dense<0.000000e+00> : vector<64xf32>
    %3 = vector.multi_reduction <add>, %0, %cst [1] : vector<64x8xf32> to vector<64xf32>
    %4 = vector.shape_cast %3 : vector<64xf32> to vector<64x1xf32>
    %cst_5 = arith.constant 8.000000e+00 : f32
    %5 = vector.broadcast %cst_5 : f32 to vector<64x1xf32>
    %6 = arith.divf %4, %5 : vector<64x1xf32>
    %7 = vector.broadcast %6 : vector<64x1xf32> to vector<64x8xf32>
    %8 = arith.subf %0, %7 : vector<64x8xf32>
    %9 = arith.mulf %8, %8 : vector<64x8xf32>
    %cst_6 = arith.constant dense<0.000000e+00> : vector<64xf32>
    %10 = vector.multi_reduction <add>, %9, %cst_6 [1] : vector<64x8xf32> to vector<64xf32>
    %11 = vector.shape_cast %10 : vector<64xf32> to vector<64x1xf32>
    %cst_7 = arith.constant 8.000000e+00 : f32
    %12 = vector.broadcast %cst_7 : f32 to vector<64x1xf32>
    %13 = arith.divf %11, %12 : vector<64x1xf32>
    %14 = vector.broadcast %6 : vector<64x1xf32> to vector<64x8xf32>
    %15 = arith.subf %0, %14 : vector<64x8xf32>
    %cst_8 = arith.constant 9.99999997E-7 : f32
    %16 = vector.broadcast %cst_8 : f32 to vector<64x1xf32>
    %17 = arith.addf %13, %16 : vector<64x1xf32>
    %18 = math.rsqrt %17 : vector<64x1xf32>
    %19 = vector.broadcast %18 : vector<64x1xf32> to vector<64x8xf32>
    %20 = arith.mulf %15, %19 : vector<64x8xf32>
    %21 = vector.broadcast %1 : vector<1x8xf32> to vector<64x8xf32>
    %22 = arith.mulf %20, %21 : vector<64x8xf32>
    %23 = vector.broadcast %2 : vector<1x8xf32> to vector<64x8xf32>
    %24 = arith.addf %22, %23 : vector<64x8xf32>
    %c0_9 = arith.constant 0 : index
    %c0_10 = arith.constant 0 : index
    %25 = vector.load %arg4[%c0_9, %c0_10] : memref<8x24xf32, #tpu.memory_space<vmem>>, vector<8x24xf32>
    %cst_11 = arith.constant dense<0.000000e+00> : vector<64x24xf32>
    %26 = tpu.matmul %24, %25, %cst_11 {dimension_numbers = #tpu.dot_dimension_numbers<[1], [0], [0], [1], [0, 0, 1, 1], [], []>} : vector<64x8xf32>, vector<8x24xf32>, vector<64x24xf32> -> vector<64x24xf32>
    %c0_12 = arith.constant 0 : index
    %c0_13 = arith.constant 0 : index
    %27 = vector.load %arg5[%c0_12, %c0_13] : memref<1x24xf32, #tpu.memory_space<vmem>>, vector<1x24xf32>
    %28 = vector.broadcast %27 : vector<1x24xf32> to vector<64x24xf32>
    %29 = arith.addf %26, %28 : vector<64x24xf32>
    %cst_14 = arith.constant 5.000000e-01 : f32
    %30 = vector.broadcast %cst_14 : f32 to vector<64x24xf32>
    %31 = arith.mulf %30, %29 : vector<64x24xf32>
    %cst_15 = arith.constant 4.471500e-02 : f32
    %32 = vector.broadcast %cst_15 : f32 to vector<64x24xf32>
    %33 = arith.mulf %32, %29 : vector<64x24xf32>
    %34 = arith.mulf %33, %29 : vector<64x24xf32>
    %35 = arith.mulf %34, %29 : vector<64x24xf32>
    %36 = arith.addf %29, %35 : vector<64x24xf32>
    %cst_16 = arith.constant 0.797884583 : f32
    %37 = vector.broadcast %cst_16 : f32 to vector<64x24xf32>
    %38 = arith.mulf %37, %36 : vector<64x24xf32>
    %39 = math.tanh %38 : vector<64x24xf32>
    %cst_17 = arith.constant 1.000000e+00 : f32
    %40 = vector.broadcast %cst_17 : f32 to vector<64x24xf32>
    %41 = arith.addf %40, %39 : vector<64x24xf32>
    %42 = arith.mulf %31, %41 : vector<64x24xf32>
    %c0_18 = arith.constant 0 : index
    %c0_19 = arith.constant 0 : index
    %43 = vector.load %arg6[%c0_18, %c0_19] : memref<24x8xf32, #tpu.memory_space<vmem>>, vector<24x8xf32>
    %cst_20 = arith.constant dense<0.000000e+00> : vector<64x8xf32>
    %44 = tpu.matmul %42, %43, %cst_20 {dimension_numbers = #tpu.dot_dimension_numbers<[1], [0], [0], [1], [0, 0, 1, 1], [], []>} : vector<64x24xf32>, vector<24x8xf32>, vector<64x8xf32> -> vector<64x8xf32>
    %c0_21 = arith.constant 0 : index
    %c0_22 = arith.constant 0 : index
    %45 = vector.load %arg7[%c0_21, %c0_22] : memref<1x8xf32, #tpu.memory_space<vmem>>, vector<1x8xf32>
    %46 = vector.broadcast %45 : vector<1x8xf32> to vector<64x8xf32>
    %47 = arith.addf %44, %46 : vector<64x8xf32>
    %48 = arith.addf %0, %47 : vector<64x8xf32>
    %c0_23 = arith.constant 0 : index
    %c0_24 = arith.constant 0 : index
    %49 = vector.load %arg8[%c0_23, %c0_24] : memref<64x8xf32, #tpu.memory_space<vmem>>, vector<64x8xf32>
    tpu.vector_store %arg8[%c0_23, %c0_24], %48 {strides = array<i32>} : memref<64x8xf32, #tpu.memory_space<vmem>>, vector<64x8xf32>,
    return
  }
  func.func @transform_0(%arg0: i32) -> (i32, i32) {
    %c0_i32 = arith.constant 0 : i32
    %c0_i32_0 = arith.constant 0 : i32
    return %arg0, %c0_i32 : i32, i32
  }
  func.func @transform_1(%arg0: i32) -> (i32, i32) {
    %c0_i32 = arith.constant 0 : i32
    %c0_i32_0 = arith.constant 0 : i32
    %c0_i32_1 = arith.constant 0 : i32
    return %c0_i32, %c0_i32_0 : i32, i32
  }
  func.func @transform_2(%arg0: i32) -> (i32, i32) {
    %c0_i32 = arith.constant 0 : i32
    %c0_i32_0 = arith.constant 0 : i32
    %c0_i32_1 = arith.constant 0 : i32
    return %c0_i32, %c0_i32_0 : i32, i32
  }
  func.func @transform_3(%arg0: i32) -> (i32, i32) {
    %c0_i32 = arith.constant 0 : i32
    %c0_i32_0 = arith.constant 0 : i32
    %c0_i32_1 = arith.constant 0 : i32
    return %c0_i32, %c0_i32_0 : i32, i32
  }
  func.func @transform_4(%arg0: i32) -> (i32, i32) {
    %c0_i32 = arith.constant 0 : i32
    %c0_i32_0 = arith.constant 0 : i32
    %c0_i32_1 = arith.constant 0 : i32
    return %c0_i32, %c0_i32_0 : i32, i32
  }
  func.func @transform_5(%arg0: i32) -> (i32, i32) {
    %c0_i32 = arith.constant 0 : i32
    %c0_i32_0 = arith.constant 0 : i32
    %c0_i32_1 = arith.constant 0 : i32
    return %c0_i32, %c0_i32_0 : i32, i32
  }
  func.func @transform_6(%arg0: i32) -> (i32, i32) {
    %c0_i32 = arith.constant 0 : i32
    %c0_i32_0 = arith.constant 0 : i32
    %c0_i32_1 = arith.constant 0 : i32
    return %c0_i32, %c0_i32_0 : i32, i32
  }
  func.func @transform_7(%arg0: i32) -> (i32, i32) {
    %c0_i32 = arith.constant 0 : i32
    %c0_i32_0 = arith.constant 0 : i32
    return %arg0, %c0_i32 : i32, i32
  }
}

module attributes {stable_mosaic.version = 11 : i64} {
  func.func @_merge_kernel(%arg0: memref<32x32xf32, #tpu.memory_space<vmem>>, %arg1: memref<1x32xf32, #tpu.memory_space<vmem>>, %arg2: memref<1x32xf32, #tpu.memory_space<vmem>>, %arg3: memref<32x16xf32, #tpu.memory_space<vmem>>, %arg4: memref<1x16xf32, #tpu.memory_space<vmem>>, %arg5: memref<32x16xf32, #tpu.memory_space<vmem>>) attributes {dimension_semantics = [], scalar_prefetch = 0 : i64, scratch_operands = 0 : i64, tpu.core_type = #tpu.core_type<tc>} {
    %c0 = arith.constant 0 : index
    %c0_0 = arith.constant 0 : index
    %0 = vector.load %arg0[%c0, %c0_0] : memref<32x32xf32, #tpu.memory_space<vmem>>, vector<32x32xf32>
    %c0_1 = arith.constant 0 : index
    %c0_2 = arith.constant 0 : index
    %1 = vector.load %arg1[%c0_1, %c0_2] : memref<1x32xf32, #tpu.memory_space<vmem>>, vector<1x32xf32>
    %c0_3 = arith.constant 0 : index
    %c0_4 = arith.constant 0 : index
    %2 = vector.load %arg2[%c0_3, %c0_4] : memref<1x32xf32, #tpu.memory_space<vmem>>, vector<1x32xf32>
    %cst = arith.constant dense<0.000000e+00> : vector<32xf32>
    %3 = vector.multi_reduction <add>, %0, %cst [1] : vector<32x32xf32> to vector<32xf32>
    %4 = vector.shape_cast %3 : vector<32xf32> to vector<32x1xf32>
    %cst_5 = arith.constant 3.200000e+01 : f32
    %5 = vector.broadcast %cst_5 : f32 to vector<32x1xf32>
    %6 = arith.divf %4, %5 : vector<32x1xf32>
    %7 = vector.broadcast %6 : vector<32x1xf32> to vector<32x32xf32>
    %8 = arith.subf %0, %7 : vector<32x32xf32>
    %9 = arith.mulf %8, %8 : vector<32x32xf32>
    %cst_6 = arith.constant dense<0.000000e+00> : vector<32xf32>
    %10 = vector.multi_reduction <add>, %9, %cst_6 [1] : vector<32x32xf32> to vector<32xf32>
    %11 = vector.shape_cast %10 : vector<32xf32> to vector<32x1xf32>
    %cst_7 = arith.constant 3.200000e+01 : f32
    %12 = vector.broadcast %cst_7 : f32 to vector<32x1xf32>
    %13 = arith.divf %11, %12 : vector<32x1xf32>
    %14 = vector.broadcast %6 : vector<32x1xf32> to vector<32x32xf32>
    %15 = arith.subf %0, %14 : vector<32x32xf32>
    %cst_8 = arith.constant 9.99999997E-7 : f32
    %16 = vector.broadcast %cst_8 : f32 to vector<32x1xf32>
    %17 = arith.addf %13, %16 : vector<32x1xf32>
    %18 = math.rsqrt %17 : vector<32x1xf32>
    %19 = vector.broadcast %18 : vector<32x1xf32> to vector<32x32xf32>
    %20 = arith.mulf %15, %19 : vector<32x32xf32>
    %21 = vector.broadcast %1 : vector<1x32xf32> to vector<32x32xf32>
    %22 = arith.mulf %20, %21 : vector<32x32xf32>
    %23 = vector.broadcast %2 : vector<1x32xf32> to vector<32x32xf32>
    %24 = arith.addf %22, %23 : vector<32x32xf32>
    %c0_9 = arith.constant 0 : index
    %c0_10 = arith.constant 0 : index
    %25 = vector.load %arg3[%c0_9, %c0_10] : memref<32x16xf32, #tpu.memory_space<vmem>>, vector<32x16xf32>
    %cst_11 = arith.constant dense<0.000000e+00> : vector<32x16xf32>
    %26 = tpu.matmul %24, %25, %cst_11 {dimension_numbers = #tpu.dot_dimension_numbers<[1], [0], [0], [1], [0, 0, 1, 1], [], []>} : vector<32x32xf32>, vector<32x16xf32>, vector<32x16xf32> -> vector<32x16xf32>
    %c0_12 = arith.constant 0 : index
    %c0_13 = arith.constant 0 : index
    %27 = vector.load %arg4[%c0_12, %c0_13] : memref<1x16xf32, #tpu.memory_space<vmem>>, vector<1x16xf32>
    %28 = vector.broadcast %27 : vector<1x16xf32> to vector<32x16xf32>
    %29 = arith.addf %26, %28 : vector<32x16xf32>
    %c0_14 = arith.constant 0 : index
    %c0_15 = arith.constant 0 : index
    %30 = vector.load %arg5[%c0_14, %c0_15] : memref<32x16xf32, #tpu.memory_space<vmem>>, vector<32x16xf32>
    tpu.vector_store %arg5[%c0_14, %c0_15], %29 {strides = array<i32>} : memref<32x16xf32, #tpu.memory_space<vmem>>, vector<32x16xf32>,
    return
  }
}

module attributes {stable_mosaic.version = 11 : i64} {
  func.func @_mlp_block_kernel(%arg0: i32, %arg1: memref<16x16xf32, #tpu.memory_space<vmem>>, %arg2: memref<1x16xf32, #tpu.memory_space<vmem>>, %arg3: memref<1x16xf32, #tpu.memory_space<vmem>>, %arg4: memref<16x48xf32, #tpu.memory_space<vmem>>, %arg5: memref<1x48xf32, #tpu.memory_space<vmem>>, %arg6: memref<48x16xf32, #tpu.memory_space<vmem>>, %arg7: memref<1x16xf32, #tpu.memory_space<vmem>>, %arg8: memref<16x16xf32, #tpu.memory_space<vmem>>) attributes {dimension_semantics = [#tpu.dimension_semantics<parallel>], iteration_bounds = array<i64: 2>, scalar_prefetch = 0 : i64, scratch_operands = 0 : i64, tpu.core_type = #tpu.core_type<tc>, window_params = [{transform_indices = @transform_0, window_bounds = array<i64: 16, 16>}, {pipeline_mode = #tpu.pipeline_mode<synchronous>, transform_indices = @transform_1, window_bounds = array<i64: 1, 16>}, {pipeline_mode = #tpu.pipeline_mode<synchronous>, transform_indices = @transform_2, window_bounds = array<i64: 1, 16>}, {pipeline_mode = #tpu.pipeline_mode<synchronous>, transform_indices = @transform_3, window_bounds = array<i64: 16, 48>}, {pipeline_mode = #tpu.pipeline_mode<synchronous>, transform_indices = @transform_4, window_bounds = array<i64: 1, 48>}, {pipeline_mode = #tpu.pipeline_mode<synchronous>, transform_indices = @transform_5, window_bounds = array<i64: 48, 16>}, {pipeline_mode = #tpu.pipeline_mode<synchronous>, transform_indices = @transform_6, window_bounds = array<i64: 1, 16>}, {transform_indices = @transform_7, window_bounds = array<i64: 16, 16>}]} {
    %c0 = arith.constant 0 : index
    %c0_0 = arith.constant 0 : index
    %0 = vector.load %arg1[%c0, %c0_0] : memref<16x16xf32, #tpu.memory_space<vmem>>, vector<16x16xf32>
    %c0_1 = arith.constant 0 : index
    %c0_2 = arith.constant 0 : index
    %1 = vector.load %arg2[%c0_1, %c0_2] : memref<1x16xf32, #tpu.memory_space<vmem>>, vector<1x16xf32>
    %c0_3 = arith.constant 0 : index
    %c0_4 = arith.constant 0 : index
    %2 = vector.load %arg3[%c0_3, %c0_4] : memref<1x16xf32, #tpu.memory_space<vmem>>, vector<1x16xf32>
    %cst = arith.constant dense<0.000000e+00> : vector<16xf32>
    %3 = vector.multi_reduction <add>, %0, %cst [1] : vector<16x16xf32> to vector<16xf32>
    %4 = vector.shape_cast %3 : vector<16xf32> to vector<16x1xf32>
    %cst_5 = arith.constant 1.600000e+01 : f32
    %5 = vector.broadcast %cst_5 : f32 to vector<16x1xf32>
    %6 = arith.divf %4, %5 : vector<16x1xf32>
    %7 = vector.broadcast %6 : vector<16x1xf32> to vector<16x16xf32>
    %8 = arith.subf %0, %7 : vector<16x16xf32>
    %9 = arith.mulf %8, %8 : vector<16x16xf32>
    %cst_6 = arith.constant dense<0.000000e+00> : vector<16xf32>
    %10 = vector.multi_reduction <add>, %9, %cst_6 [1] : vector<16x16xf32> to vector<16xf32>
    %11 = vector.shape_cast %10 : vector<16xf32> to vector<16x1xf32>
    %cst_7 = arith.constant 1.600000e+01 : f32
    %12 = vector.broadcast %cst_7 : f32 to vector<16x1xf32>
    %13 = arith.divf %11, %12 : vector<16x1xf32>
    %14 = vector.broadcast %6 : vector<16x1xf32> to vector<16x16xf32>
    %15 = arith.subf %0, %14 : vector<16x16xf32>
    %cst_8 = arith.constant 9.99999997E-7 : f32
    %16 = vector.broadcast %cst_8 : f32 to vector<16x1xf32>
    %17 = arith.addf %13, %16 : vector<16x1xf32>
    %18 = math.rsqrt %17 : vector<16x1xf32>
    %19 = vector.broadcast %18 : vector<16x1xf32> to vector<16x16xf32>
    %20 = arith.mulf %15, %19 : vector<16x16xf32>
    %21 = vector.broadcast %1 : vector<1x16xf32> to vector<16x16xf32>
    %22 = arith.mulf %20, %21 : vector<16x16xf32>
    %23 = vector.broadcast %2 : vector<1x16xf32> to vector<16x16xf32>
    %24 = arith.addf %22, %23 : vector<16x16xf32>
    %c0_9 = arith.constant 0 : index
    %c0_10 = arith.constant 0 : index
    %25 = vector.load %arg4[%c0_9, %c0_10] : memref<16x48xf32, #tpu.memory_space<vmem>>, vector<16x48xf32>
    %cst_11 = arith.constant dense<0.000000e+00> : vector<16x48xf32>
    %26 = tpu.matmul %24, %25, %cst_11 {dimension_numbers = #tpu.dot_dimension_numbers<[1], [0], [0], [1], [0, 0, 1, 1], [], []>} : vector<16x16xf32>, vector<16x48xf32>, vector<16x48xf32> -> vector<16x48xf32>
    %c0_12 = arith.constant 0 : index
    %c0_13 = arith.constant 0 : index
    %27 = vector.load %arg5[%c0_12, %c0_13] : memref<1x48xf32, #tpu.memory_space<vmem>>, vector<1x48xf32>
    %28 = vector.broadcast %27 : vector<1x48xf32> to vector<16x48xf32>
    %29 = arith.addf %26, %28 : vector<16x48xf32>
    %cst_14 = arith.constant 5.000000e-01 : f32
    %30 = vector.broadcast %cst_14 : f32 to vector<16x48xf32>
    %31 = arith.mulf %30, %29 : vector<16x48xf32>
    %cst_15 = arith.constant 4.471500e-02 : f32
    %32 = vector.broadcast %cst_15 : f32 to vector<16x48xf32>
    %33 = arith.mulf %32, %29 : vector<16x48xf32>
    %34 = arith.mulf %33, %29 : vector<16x48xf32>
    %35 = arith.mulf %34, %29 : vector<16x48xf32>
    %36 = arith.addf %29, %35 : vector<16x48xf32>
    %cst_16 = arith.constant 0.797884583 : f32
    %37 = vector.broadcast %cst_16 : f32 to vector<16x48xf32>
    %38 = arith.mulf %37, %36 : vector<16x48xf32>
    %39 = math.tanh %38 : vector<16x48xf32>
    %cst_17 = arith.constant 1.000000e+00 : f32
    %40 = vector.broadcast %cst_17 : f32 to vector<16x48xf32>
    %41 = arith.addf %40, %39 : vector<16x48xf32>
    %42 = arith.mulf %31, %41 : vector<16x48xf32>
    %c0_18 = arith.constant 0 : index
    %c0_19 = arith.constant 0 : index
    %43 = vector.load %arg6[%c0_18, %c0_19] : memref<48x16xf32, #tpu.memory_space<vmem>>, vector<48x16xf32>
    %cst_20 = arith.constant dense<0.000000e+00> : vector<16x16xf32>
    %44 = tpu.matmul %42, %43, %cst_20 {dimension_numbers = #tpu.dot_dimension_numbers<[1], [0], [0], [1], [0, 0, 1, 1], [], []>} : vector<16x48xf32>, vector<48x16xf32>, vector<16x16xf32> -> vector<16x16xf32>
    %c0_21 = arith.constant 0 : index
    %c0_22 = arith.constant 0 : index
    %45 = vector.load %arg7[%c0_21, %c0_22] : memref<1x16xf32, #tpu.memory_space<vmem>>, vector<1x16xf32>
    %46 = vector.broadcast %45 : vector<1x16xf32> to vector<16x16xf32>
    %47 = arith.addf %44, %46 : vector<16x16xf32>
    %48 = arith.addf %0, %47 : vector<16x16xf32>
    %c0_23 = arith.constant 0 : index
    %c0_24 = arith.constant 0 : index
    %49 = vector.load %arg8[%c0_23, %c0_24] : memref<16x16xf32, #tpu.memory_space<vmem>>, vector<16x16xf32>
    tpu.vector_store %arg8[%c0_23, %c0_24], %48 {strides = array<i32>} : memref<16x16xf32, #tpu.memory_space<vmem>>, vector<16x16xf32>,
    return
  }
  func.func @transform_0(%arg0: i32) -> (i32, i32) {
    %c0_i32 = arith.constant 0 : i32
    %c0_i32_0 = arith.constant 0 : i32
    return %arg0, %c0_i32 : i32, i32
  }
  func.func @transform_1(%arg0: i32) -> (i32, i32) {
    %c0_i32 = arith.constant 0 : i32
    %c0_i32_0 = arith.constant 0 : i32
    %c0_i32_1 = arith.constant 0 : i32
    return %c0_i32, %c0_i32_0 : i32, i32
  }
  func.func @transform_2(%arg0: i32) -> (i32, i32) {
    %c0_i32 = arith.constant 0 : i32
    %c0_i32_0 = arith.constant 0 : i32
    %c0_i32_1 = arith.constant 0 : i32
    return %c0_i32, %c0_i32_0 : i32, i32
  }
  func.func @transform_3(%arg0: i32) -> (i32, i32) {
    %c0_i32 = arith.constant 0 : i32
    %c0_i32_0 = arith.constant 0 : i32
    %c0_i32_1 = arith.constant 0 : i32
    return %c0_i32, %c0_i32_0 : i32, i32
  }
  func.func @transform_4(%arg0: i32) -> (i32, i32) {
    %c0_i32 = arith.constant 0 : i32
    %c0_i32_0 = arith.constant 0 : i32
    %c0_i32_1 = arith.constant 0 : i32
    return %c0_i32, %c0_i32_0 : i32, i32
  }
  func.func @transform_5(%arg0: i32) -> (i32, i32) {
    %c0_i32 = arith.constant 0 : i32
    %c0_i32_0 = arith.constant 0 : i32
    %c0_i32_1 = arith.constant 0 : i32
    return %c0_i32, %c0_i32_0 : i32, i32
  }
  func.func @transform_6(%arg0: i32) -> (i32, i32) {
    %c0_i32 = arith.constant 0 : i32
    %c0_i32_0 = arith.constant 0 : i32
    %c0_i32_1 = arith.constant 0 : i32
    return %c0_i32, %c0_i32_0 : i32, i32
  }
  func.func @transform_7(%arg0: i32) -> (i32, i32) {
    %c0_i32 = arith.constant 0 : i32
    %c0_i32_0 = arith.constant 0 : i32
    return %arg0, %c0_i32 : i32, i32
  }
}

module attributes {stable_mosaic.version = 11 : i64} {
  func.func @_merge_kernel(%arg0: memref<8x64xf32, #tpu.memory_space<vmem>>, %arg1: memref<1x64xf32, #tpu.memory_space<vmem>>, %arg2: memref<1x64xf32, #tpu.memory_space<vmem>>, %arg3: memref<64x32xf32, #tpu.memory_space<vmem>>, %arg4: memref<1x32xf32, #tpu.memory_space<vmem>>, %arg5: memref<8x32xf32, #tpu.memory_space<vmem>>) attributes {dimension_semantics = [], scalar_prefetch = 0 : i64, scratch_operands = 0 : i64, tpu.core_type = #tpu.core_type<tc>} {
    %c0 = arith.constant 0 : index
    %c0_0 = arith.constant 0 : index
    %0 = vector.load %arg0[%c0, %c0_0] : memref<8x64xf32, #tpu.memory_space<vmem>>, vector<8x64xf32>
    %c0_1 = arith.constant 0 : index
    %c0_2 = arith.constant 0 : index
    %1 = vector.load %arg1[%c0_1, %c0_2] : memref<1x64xf32, #tpu.memory_space<vmem>>, vector<1x64xf32>
    %c0_3 = arith.constant 0 : index
    %c0_4 = arith.constant 0 : index
    %2 = vector.load %arg2[%c0_3, %c0_4] : memref<1x64xf32, #tpu.memory_space<vmem>>, vector<1x64xf32>
    %cst = arith.constant dense<0.000000e+00> : vector<8xf32>
    %3 = vector.multi_reduction <add>, %0, %cst [1] : vector<8x64xf32> to vector<8xf32>
    %4 = vector.shape_cast %3 : vector<8xf32> to vector<8x1xf32>
    %cst_5 = arith.constant 6.400000e+01 : f32
    %5 = vector.broadcast %cst_5 : f32 to vector<8x1xf32>
    %6 = arith.divf %4, %5 : vector<8x1xf32>
    %7 = vector.broadcast %6 : vector<8x1xf32> to vector<8x64xf32>
    %8 = arith.subf %0, %7 : vector<8x64xf32>
    %9 = arith.mulf %8, %8 : vector<8x64xf32>
    %cst_6 = arith.constant dense<0.000000e+00> : vector<8xf32>
    %10 = vector.multi_reduction <add>, %9, %cst_6 [1] : vector<8x64xf32> to vector<8xf32>
    %11 = vector.shape_cast %10 : vector<8xf32> to vector<8x1xf32>
    %cst_7 = arith.constant 6.400000e+01 : f32
    %12 = vector.broadcast %cst_7 : f32 to vector<8x1xf32>
    %13 = arith.divf %11, %12 : vector<8x1xf32>
    %14 = vector.broadcast %6 : vector<8x1xf32> to vector<8x64xf32>
    %15 = arith.subf %0, %14 : vector<8x64xf32>
    %cst_8 = arith.constant 9.99999997E-7 : f32
    %16 = vector.broadcast %cst_8 : f32 to vector<8x1xf32>
    %17 = arith.addf %13, %16 : vector<8x1xf32>
    %18 = math.rsqrt %17 : vector<8x1xf32>
    %19 = vector.broadcast %18 : vector<8x1xf32> to vector<8x64xf32>
    %20 = arith.mulf %15, %19 : vector<8x64xf32>
    %21 = vector.broadcast %1 : vector<1x64xf32> to vector<8x64xf32>
    %22 = arith.mulf %20, %21 : vector<8x64xf32>
    %23 = vector.broadcast %2 : vector<1x64xf32> to vector<8x64xf32>
    %24 = arith.addf %22, %23 : vector<8x64xf32>
    %c0_9 = arith.constant 0 : index
    %c0_10 = arith.constant 0 : index
    %25 = vector.load %arg3[%c0_9, %c0_10] : memref<64x32xf32, #tpu.memory_space<vmem>>, vector<64x32xf32>
    %cst_11 = arith.constant dense<0.000000e+00> : vector<8x32xf32>
    %26 = tpu.matmul %24, %25, %cst_11 {dimension_numbers = #tpu.dot_dimension_numbers<[1], [0], [0], [1], [0, 0, 1, 1], [], []>} : vector<8x64xf32>, vector<64x32xf32>, vector<8x32xf32> -> vector<8x32xf32>
    %c0_12 = arith.constant 0 : index
    %c0_13 = arith.constant 0 : index
    %27 = vector.load %arg4[%c0_12, %c0_13] : memref<1x32xf32, #tpu.memory_space<vmem>>, vector<1x32xf32>
    %28 = vector.broadcast %27 : vector<1x32xf32> to vector<8x32xf32>
    %29 = arith.addf %26, %28 : vector<8x32xf32>
    %c0_14 = arith.constant 0 : index
    %c0_15 = arith.constant 0 : index
    %30 = vector.load %arg5[%c0_14, %c0_15] : memref<8x32xf32, #tpu.memory_space<vmem>>, vector<8x32xf32>
    tpu.vector_store %arg5[%c0_14, %c0_15], %29 {strides = array<i32>} : memref<8x32xf32, #tpu.memory_space<vmem>>, vector<8x32xf32>,
    return
  }
}

module attributes {stable_mosaic.version = 11 : i64} {
  func.func @_attn_block_kernel(%arg0: i32, %arg1: memref<1x4x32xf32, #tpu.memory_space<vmem>>, %arg2: memref<1x32xf32, #tpu.memory_space<vmem>>, %arg3: memref<1x32xf32, #tpu.memory_space<vmem>>, %arg4: memref<32x96xf32, #tpu.memory_space<vmem>>, %arg5: memref<1x96xf32, #tpu.memory_space<vmem>>, %arg6: memref<32x32xf32, #tpu.memory_space<vmem>>, %arg7: memref<1x32xf32, #tpu.memory_space<vmem>>, %arg8: memref<1x32xf32, #tpu.memory_space<vmem>>, %arg9: memref<1x32xf32, #tpu.memory_space<vmem>>, %arg10: memref<32x128xf32, #tpu.memory_space<vmem>>, %arg11: memref<1x128xf32, #tpu.memory_space<vmem>>, %arg12: memref<128x32xf32, #tpu.memory_space<vmem>>, %arg13: memref<1x32xf32, #tpu.memory_space<vmem>>, %arg14: memref<1x4x32xf32, #tpu.memory_space<vmem>>) attributes {dimension_semantics = [#tpu.dimension_semantics<parallel>], iteration_bounds = array<i64: 2>, scalar_prefetch = 0 : i64, scratch_operands = 0 : i64, tpu.core_type = #tpu.core_type<tc>, window_params = [{transform_indices = @transform_0, window_bounds = array<i64: 1, 4, 32>}, {pipeline_mode = #tpu.pipeline_mode<synchronous>, transform_indices = @transform_1, window_bounds = array<i64: 1, 32>}, {pipeline_mode = #tpu.pipeline_mode<synchronous>, transform_indices = @transform_2, window_bounds = array<i64: 1, 32>}, {pipeline_mode = #tpu.pipeline_mode<synchronous>, transform_indices = @transform_3, window_bounds = array<i64: 32, 96>}, {pipeline_mode = #tpu.pipeline_mode<synchronous>, transform_indices = @transform_4, window_bounds = array<i64: 1, 96>}, {pipeline_mode = #tpu.pipeline_mode<synchronous>, transform_indices = @transform_5, window_bounds = array<i64: 32, 32>}, {pipeline_mode = #tpu.pipeline_mode<synchronous>, transform_indices = @transform_6, window_bounds = array<i64: 1, 32>}, {pipeline_mode = #tpu.pipeline_mode<synchronous>, transform_indices = @transform_7, window_bounds = array<i64: 1, 32>}, {pipeline_mode = #tpu.pipeline_mode<synchronous>, transform_indices = @transform_8, window_bounds = array<i64: 1, 32>}, {pipeline_mode = #tpu.pipeline_mode<synchronous>, transform_indices = @transform_9, window_bounds = array<i64: 32, 128>}, {pipeline_mode = #tpu.pipeline_mode<synchronous>, transform_indices = @transform_10, window_bounds = array<i64: 1, 128>}, {pipeline_mode = #tpu.pipeline_mode<synchronous>, transform_indices = @transform_11, window_bounds = array<i64: 128, 32>}, {pipeline_mode = #tpu.pipeline_mode<synchronous>, transform_indices = @transform_12, window_bounds = array<i64: 1, 32>}, {transform_indices = @transform_13, window_bounds = array<i64: 1, 4, 32>}]} {
    %c0 = arith.constant 0 : index
    %c0_0 = arith.constant 0 : index
    %c0_1 = arith.constant 0 : index
    %0 = vector.load %arg1[%c0, %c0_0, %c0_1] : memref<1x4x32xf32, #tpu.memory_space<vmem>>, vector<1x4x32xf32>
    %1 = vector.shape_cast %0 : vector<1x4x32xf32> to vector<4x32xf32>
    %c0_2 = arith.constant 0 : index
    %c0_3 = arith.constant 0 : index
    %2 = vector.load %arg2[%c0_2, %c0_3] : memref<1x32xf32, #tpu.memory_space<vmem>>, vector<1x32xf32>
    %c0_4 = arith.constant 0 : index
    %c0_5 = arith.constant 0 : index
    %3 = vector.load %arg3[%c0_4, %c0_5] : memref<1x32xf32, #tpu.memory_space<vmem>>, vector<1x32xf32>
    %cst = arith.constant dense<0.000000e+00> : vector<4xf32>
    %4 = vector.multi_reduction <add>, %1, %cst [1] : vector<4x32xf32> to vector<4xf32>
    %5 = vector.shape_cast %4 : vector<4xf32> to vector<4x1xf32>
    %cst_6 = arith.constant 3.200000e+01 : f32
    %6 = vector.broadcast %cst_6 : f32 to vector<4x1xf32>
    %7 = arith.divf %5, %6 : vector<4x1xf32>
    %8 = vector.broadcast %7 : vector<4x1xf32> to vector<4x32xf32>
    %9 = arith.subf %1, %8 : vector<4x32xf32>
    %10 = arith.mulf %9, %9 : vector<4x32xf32>
    %cst_7 = arith.constant dense<0.000000e+00> : vector<4xf32>
    %11 = vector.multi_reduction <add>, %10, %cst_7 [1] : vector<4x32xf32> to vector<4xf32>
    %12 = vector.shape_cast %11 : vector<4xf32> to vector<4x1xf32>
    %cst_8 = arith.constant 3.200000e+01 : f32
    %13 = vector.broadcast %cst_8 : f32 to vector<4x1xf32>
    %14 = arith.divf %12, %13 : vector<4x1xf32>
    %15 = vector.broadcast %7 : vector<4x1xf32> to vector<4x32xf32>
    %16 = arith.subf %1, %15 : vector<4x32xf32>
    %cst_9 = arith.constant 9.99999997E-7 : f32
    %17 = vector.broadcast %cst_9 : f32 to vector<4x1xf32>
    %18 = arith.addf %14, %17 : vector<4x1xf32>
    %19 = math.rsqrt %18 : vector<4x1xf32>
    %20 = vector.broadcast %19 : vector<4x1xf32> to vector<4x32xf32>
    %21 = arith.mulf %16, %20 : vector<4x32xf32>
    %22 = vector.broadcast %2 : vector<1x32xf32> to vector<4x32xf32>
    %23 = arith.mulf %21, %22 : vector<4x32xf32>
    %24 = vector.broadcast %3 : vector<1x32xf32> to vector<4x32xf32>
    %25 = arith.addf %23, %24 : vector<4x32xf32>
    %c0_10 = arith.constant 0 : index
    %c0_11 = arith.constant 0 : index
    %26 = vector.load %arg4[%c0_10, %c0_11] : memref<32x96xf32, #tpu.memory_space<vmem>>, vector<32x96xf32>
    %cst_12 = arith.constant dense<0.000000e+00> : vector<4x96xf32>
    %27 = tpu.matmul %25, %26, %cst_12 {dimension_numbers = #tpu.dot_dimension_numbers<[1], [0], [0], [1], [0, 0, 1, 1], [], []>} : vector<4x32xf32>, vector<32x96xf32>, vector<4x96xf32> -> vector<4x96xf32>
    %c0_13 = arith.constant 0 : index
    %c0_14 = arith.constant 0 : index
    %28 = vector.load %arg5[%c0_13, %c0_14] : memref<1x96xf32, #tpu.memory_space<vmem>>, vector<1x96xf32>
    %29 = vector.broadcast %28 : vector<1x96xf32> to vector<4x96xf32>
    %30 = arith.addf %27, %29 : vector<4x96xf32>
    %31 = vector.extract_strided_slice %30 {offsets = [0, 0], sizes = [4, 8], strides = [1, 1]} : vector<4x96xf32> to vector<4x8xf32>
    %cst_15 = arith.constant 0.353553385 : f32
    %32 = vector.broadcast %cst_15 : f32 to vector<4x8xf32>
    %33 = arith.mulf %31, %32 : vector<4x8xf32>
    %34 = vector.extract_strided_slice %30 {offsets = [0, 32], sizes = [4, 8], strides = [1, 1]} : vector<4x96xf32> to vector<4x8xf32>
    %35 = vector.extract_strided_slice %30 {offsets = [0, 64], sizes = [4, 8], strides = [1, 1]} : vector<4x96xf32> to vector<4x8xf32>
    %cst_16 = arith.constant dense<0.000000e+00> : vector<4x4xf32>
    %36 = tpu.matmul %33, %34, %cst_16 {dimension_numbers = #tpu.dot_dimension_numbers<[1], [1], [0], [0], [0, 0, 1, 0], [], []>} : vector<4x8xf32>, vector<4x8xf32>, vector<4x4xf32> -> vector<4x4xf32>
    %cst_17 = arith.constant dense<0xFF800000> : vector<4xf32>
    %37 = vector.multi_reduction <maximumf>, %36, %cst_17 [1] : vector<4x4xf32> to vector<4xf32>
    %38 = vector.shape_cast %37 : vector<4xf32> to vector<4x1xf32>
    %39 = vector.broadcast %38 : vector<4x1xf32> to vector<4x4xf32>
    %40 = arith.subf %36, %39 : vector<4x4xf32>
    %41 = math.exp %40 : vector<4x4xf32>
    %cst_18 = arith.constant dense<0.000000e+00> : vector<4xf32>
    %42 = vector.multi_reduction <add>, %41, %cst_18 [1] : vector<4x4xf32> to vector<4xf32>
    %43 = vector.shape_cast %42 : vector<4xf32> to vector<4x1xf32>
    %44 = tpu.reciprocal %43 {approx = true} : vector<4x1xf32> -> vector<4x1xf32>
    %45 = vector.broadcast %44 : vector<4x1xf32> to vector<4x4xf32>
    %46 = arith.mulf %41, %45 : vector<4x4xf32>
    %cst_19 = arith.constant dense<0.000000e+00> : vector<4x8xf32>
    %47 = tpu.matmul %46, %35, %cst_19 {dimension_numbers = #tpu.dot_dimension_numbers<[1], [0], [0], [1], [0, 0, 1, 1], [], []>} : vector<4x4xf32>, vector<4x8xf32>, vector<4x8xf32> -> vector<4x8xf32>
    %48 = vector.extract_strided_slice %30 {offsets = [0, 8], sizes = [4, 8], strides = [1, 1]} : vector<4x96xf32> to vector<4x8xf32>
    %cst_20 = arith.constant 0.353553385 : f32
    %49 = vector.broadcast %cst_20 : f32 to vector<4x8xf32>
    %50 = arith.mulf %48, %49 : vector<4x8xf32>
    %51 = vector.extract_strided_slice %30 {offsets = [0, 40], sizes = [4, 8], strides = [1, 1]} : vector<4x96xf32> to vector<4x8xf32>
    %52 = vector.extract_strided_slice %30 {offsets = [0, 72], sizes = [4, 8], strides = [1, 1]} : vector<4x96xf32> to vector<4x8xf32>
    %cst_21 = arith.constant dense<0.000000e+00> : vector<4x4xf32>
    %53 = tpu.matmul %50, %51, %cst_21 {dimension_numbers = #tpu.dot_dimension_numbers<[1], [1], [0], [0], [0, 0, 1, 0], [], []>} : vector<4x8xf32>, vector<4x8xf32>, vector<4x4xf32> -> vector<4x4xf32>
    %cst_22 = arith.constant dense<0xFF800000> : vector<4xf32>
    %54 = vector.multi_reduction <maximumf>, %53, %cst_22 [1] : vector<4x4xf32> to vector<4xf32>
    %55 = vector.shape_cast %54 : vector<4xf32> to vector<4x1xf32>
    %56 = vector.broadcast %55 : vector<4x1xf32> to vector<4x4xf32>
    %57 = arith.subf %53, %56 : vector<4x4xf32>
    %58 = math.exp %57 : vector<4x4xf32>
    %cst_23 = arith.constant dense<0.000000e+00> : vector<4xf32>
    %59 = vector.multi_reduction <add>, %58, %cst_23 [1] : vector<4x4xf32> to vector<4xf32>
    %60 = vector.shape_cast %59 : vector<4xf32> to vector<4x1xf32>
    %61 = tpu.reciprocal %60 {approx = true} : vector<4x1xf32> -> vector<4x1xf32>
    %62 = vector.broadcast %61 : vector<4x1xf32> to vector<4x4xf32>
    %63 = arith.mulf %58, %62 : vector<4x4xf32>
    %cst_24 = arith.constant dense<0.000000e+00> : vector<4x8xf32>
    %64 = tpu.matmul %63, %52, %cst_24 {dimension_numbers = #tpu.dot_dimension_numbers<[1], [0], [0], [1], [0, 0, 1, 1], [], []>} : vector<4x4xf32>, vector<4x8xf32>, vector<4x8xf32> -> vector<4x8xf32>
    %65 = vector.extract_strided_slice %30 {offsets = [0, 16], sizes = [4, 8], strides = [1, 1]} : vector<4x96xf32> to vector<4x8xf32>
    %cst_25 = arith.constant 0.353553385 : f32
    %66 = vector.broadcast %cst_25 : f32 to vector<4x8xf32>
    %67 = arith.mulf %65, %66 : vector<4x8xf32>
    %68 = vector.extract_strided_slice %30 {offsets = [0, 48], sizes = [4, 8], strides = [1, 1]} : vector<4x96xf32> to vector<4x8xf32>
    %69 = vector.extract_strided_slice %30 {offsets = [0, 80], sizes = [4, 8], strides = [1, 1]} : vector<4x96xf32> to vector<4x8xf32>
    %cst_26 = arith.constant dense<0.000000e+00> : vector<4x4xf32>
    %70 = tpu.matmul %67, %68, %cst_26 {dimension_numbers = #tpu.dot_dimension_numbers<[1], [1], [0], [0], [0, 0, 1, 0], [], []>} : vector<4x8xf32>, vector<4x8xf32>, vector<4x4xf32> -> vector<4x4xf32>
    %cst_27 = arith.constant dense<0xFF800000> : vector<4xf32>
    %71 = vector.multi_reduction <maximumf>, %70, %cst_27 [1] : vector<4x4xf32> to vector<4xf32>
    %72 = vector.shape_cast %71 : vector<4xf32> to vector<4x1xf32>
    %73 = vector.broadcast %72 : vector<4x1xf32> to vector<4x4xf32>
    %74 = arith.subf %70, %73 : vector<4x4xf32>
    %75 = math.exp %74 : vector<4x4xf32>
    %cst_28 = arith.constant dense<0.000000e+00> : vector<4xf32>
    %76 = vector.multi_reduction <add>, %75, %cst_28 [1] : vector<4x4xf32> to vector<4xf32>
    %77 = vector.shape_cast %76 : vector<4xf32> to vector<4x1xf32>
    %78 = tpu.reciprocal %77 {approx = true} : vector<4x1xf32> -> vector<4x1xf32>
    %79 = vector.broadcast %78 : vector<4x1xf32> to vector<4x4xf32>
    %80 = arith.mulf %75, %79 : vector<4x4xf32>
    %cst_29 = arith.constant dense<0.000000e+00> : vector<4x8xf32>
    %81 = tpu.matmul %80, %69, %cst_29 {dimension_numbers = #tpu.dot_dimension_numbers<[1], [0], [0], [1], [0, 0, 1, 1], [], []>} : vector<4x4xf32>, vector<4x8xf32>, vector<4x8xf32> -> vector<4x8xf32>
    %82 = vector.extract_strided_slice %30 {offsets = [0, 24], sizes = [4, 8], strides = [1, 1]} : vector<4x96xf32> to vector<4x8xf32>
    %cst_30 = arith.constant 0.353553385 : f32
    %83 = vector.broadcast %cst_30 : f32 to vector<4x8xf32>
    %84 = arith.mulf %82, %83 : vector<4x8xf32>
    %85 = vector.extract_strided_slice %30 {offsets = [0, 56], sizes = [4, 8], strides = [1, 1]} : vector<4x96xf32> to vector<4x8xf32>
    %86 = vector.extract_strided_slice %30 {offsets = [0, 88], sizes = [4, 8], strides = [1, 1]} : vector<4x96xf32> to vector<4x8xf32>
    %cst_31 = arith.constant dense<0.000000e+00> : vector<4x4xf32>
    %87 = tpu.matmul %84, %85, %cst_31 {dimension_numbers = #tpu.dot_dimension_numbers<[1], [1], [0], [0], [0, 0, 1, 0], [], []>} : vector<4x8xf32>, vector<4x8xf32>, vector<4x4xf32> -> vector<4x4xf32>
    %cst_32 = arith.constant dense<0xFF800000> : vector<4xf32>
    %88 = vector.multi_reduction <maximumf>, %87, %cst_32 [1] : vector<4x4xf32> to vector<4xf32>
    %89 = vector.shape_cast %88 : vector<4xf32> to vector<4x1xf32>
    %90 = vector.broadcast %89 : vector<4x1xf32> to vector<4x4xf32>
    %91 = arith.subf %87, %90 : vector<4x4xf32>
    %92 = math.exp %91 : vector<4x4xf32>
    %cst_33 = arith.constant dense<0.000000e+00> : vector<4xf32>
    %93 = vector.multi_reduction <add>, %92, %cst_33 [1] : vector<4x4xf32> to vector<4xf32>
    %94 = vector.shape_cast %93 : vector<4xf32> to vector<4x1xf32>
    %95 = tpu.reciprocal %94 {approx = true} : vector<4x1xf32> -> vector<4x1xf32>
    %96 = vector.broadcast %95 : vector<4x1xf32> to vector<4x4xf32>
    %97 = arith.mulf %92, %96 : vector<4x4xf32>
    %cst_34 = arith.constant dense<0.000000e+00> : vector<4x8xf32>
    %98 = tpu.matmul %97, %86, %cst_34 {dimension_numbers = #tpu.dot_dimension_numbers<[1], [0], [0], [1], [0, 0, 1, 1], [], []>} : vector<4x4xf32>, vector<4x8xf32>, vector<4x8xf32> -> vector<4x8xf32>
    %99 = tpu.concatenate %47, %64, %81, %98 in 1 : vector<4x8xf32>, vector<4x8xf32>, vector<4x8xf32>, vector<4x8xf32> -> vector<4x32xf32>
    %c0_35 = arith.constant 0 : index
    %c0_36 = arith.constant 0 : index
    %100 = vector.load %arg6[%c0_35, %c0_36] : memref<32x32xf32, #tpu.memory_space<vmem>>, vector<32x32xf32>
    %cst_37 = arith.constant dense<0.000000e+00> : vector<4x32xf32>
    %101 = tpu.matmul %99, %100, %cst_37 {dimension_numbers = #tpu.dot_dimension_numbers<[1], [0], [0], [1], [0, 0, 1, 1], [], []>} : vector<4x32xf32>, vector<32x32xf32>, vector<4x32xf32> -> vector<4x32xf32>
    %102 = arith.addf %1, %101 : vector<4x32xf32>
    %c0_38 = arith.constant 0 : index
    %c0_39 = arith.constant 0 : index
    %103 = vector.load %arg7[%c0_38, %c0_39] : memref<1x32xf32, #tpu.memory_space<vmem>>, vector<1x32xf32>
    %104 = vector.broadcast %103 : vector<1x32xf32> to vector<4x32xf32>
    %105 = arith.addf %102, %104 : vector<4x32xf32>
    %c0_40 = arith.constant 0 : index
    %c0_41 = arith.constant 0 : index
    %106 = vector.load %arg8[%c0_40, %c0_41] : memref<1x32xf32, #tpu.memory_space<vmem>>, vector<1x32xf32>
    %c0_42 = arith.constant 0 : index
    %c0_43 = arith.constant 0 : index
    %107 = vector.load %arg9[%c0_42, %c0_43] : memref<1x32xf32, #tpu.memory_space<vmem>>, vector<1x32xf32>
    %cst_44 = arith.constant dense<0.000000e+00> : vector<4xf32>
    %108 = vector.multi_reduction <add>, %105, %cst_44 [1] : vector<4x32xf32> to vector<4xf32>
    %109 = vector.shape_cast %108 : vector<4xf32> to vector<4x1xf32>
    %cst_45 = arith.constant 3.200000e+01 : f32
    %110 = vector.broadcast %cst_45 : f32 to vector<4x1xf32>
    %111 = arith.divf %109, %110 : vector<4x1xf32>
    %112 = vector.broadcast %111 : vector<4x1xf32> to vector<4x32xf32>
    %113 = arith.subf %105, %112 : vector<4x32xf32>
    %114 = arith.mulf %113, %113 : vector<4x32xf32>
    %cst_46 = arith.constant dense<0.000000e+00> : vector<4xf32>
    %115 = vector.multi_reduction <add>, %114, %cst_46 [1] : vector<4x32xf32> to vector<4xf32>
    %116 = vector.shape_cast %115 : vector<4xf32> to vector<4x1xf32>
    %cst_47 = arith.constant 3.200000e+01 : f32
    %117 = vector.broadcast %cst_47 : f32 to vector<4x1xf32>
    %118 = arith.divf %116, %117 : vector<4x1xf32>
    %119 = vector.broadcast %111 : vector<4x1xf32> to vector<4x32xf32>
    %120 = arith.subf %105, %119 : vector<4x32xf32>
    %cst_48 = arith.constant 9.99999997E-7 : f32
    %121 = vector.broadcast %cst_48 : f32 to vector<4x1xf32>
    %122 = arith.addf %118, %121 : vector<4x1xf32>
    %123 = math.rsqrt %122 : vector<4x1xf32>
    %124 = vector.broadcast %123 : vector<4x1xf32> to vector<4x32xf32>
    %125 = arith.mulf %120, %124 : vector<4x32xf32>
    %126 = vector.broadcast %106 : vector<1x32xf32> to vector<4x32xf32>
    %127 = arith.mulf %125, %126 : vector<4x32xf32>
    %128 = vector.broadcast %107 : vector<1x32xf32> to vector<4x32xf32>
    %129 = arith.addf %127, %128 : vector<4x32xf32>
    %c0_49 = arith.constant 0 : index
    %c0_50 = arith.constant 0 : index
    %130 = vector.load %arg10[%c0_49, %c0_50] : memref<32x128xf32, #tpu.memory_space<vmem>>, vector<32x128xf32>
    %cst_51 = arith.constant dense<0.000000e+00> : vector<4x128xf32>
    %131 = tpu.matmul %129, %130, %cst_51 {dimension_numbers = #tpu.dot_dimension_numbers<[1], [0], [0], [1], [0, 0, 1, 1], [], []>} : vector<4x32xf32>, vector<32x128xf32>, vector<4x128xf32> -> vector<4x128xf32>
    %c0_52 = arith.constant 0 : index
    %c0_53 = arith.constant 0 : index
    %132 = vector.load %arg11[%c0_52, %c0_53] : memref<1x128xf32, #tpu.memory_space<vmem>>, vector<1x128xf32>
    %133 = vector.broadcast %132 : vector<1x128xf32> to vector<4x128xf32>
    %134 = arith.addf %131, %133 : vector<4x128xf32>
    %cst_54 = arith.constant 5.000000e-01 : f32
    %135 = vector.broadcast %cst_54 : f32 to vector<4x128xf32>
    %136 = arith.mulf %135, %134 : vector<4x128xf32>
    %cst_55 = arith.constant 4.471500e-02 : f32
    %137 = vector.broadcast %cst_55 : f32 to vector<4x128xf32>
    %138 = arith.mulf %137, %134 : vector<4x128xf32>
    %139 = arith.mulf %138, %134 : vector<4x128xf32>
    %140 = arith.mulf %139, %134 : vector<4x128xf32>
    %141 = arith.addf %134, %140 : vector<4x128xf32>
    %cst_56 = arith.constant 0.797884583 : f32
    %142 = vector.broadcast %cst_56 : f32 to vector<4x128xf32>
    %143 = arith.mulf %142, %141 : vector<4x128xf32>
    %144 = math.tanh %143 : vector<4x128xf32>
    %cst_57 = arith.constant 1.000000e+00 : f32
    %145 = vector.broadcast %cst_57 : f32 to vector<4x128xf32>
    %146 = arith.addf %145, %144 : vector<4x128xf32>
    %147 = arith.mulf %136, %146 : vector<4x128xf32>
    %c0_58 = arith.constant 0 : index
    %c0_59 = arith.constant 0 : index
    %148 = vector.load %arg12[%c0_58, %c0_59] : memref<128x32xf32, #tpu.memory_space<vmem>>, vector<128x32xf32>
    %cst_60 = arith.constant dense<0.000000e+00> : vector<4x32xf32>
    %149 = tpu.matmul %147, %148, %cst_60 {dimension_numbers = #tpu.dot_dimension_numbers<[1], [0], [0], [1], [0, 0, 1, 1], [], []>} : vector<4x128xf32>, vector<128x32xf32>, vector<4x32xf32> -> vector<4x32xf32>
    %c0_61 = arith.constant 0 : index
    %c0_62 = arith.constant 0 : index
    %150 = vector.load %arg13[%c0_61, %c0_62] : memref<1x32xf32, #tpu.memory_space<vmem>>, vector<1x32xf32>
    %151 = vector.broadcast %150 : vector<1x32xf32> to vector<4x32xf32>
    %152 = arith.addf %149, %151 : vector<4x32xf32>
    %153 = arith.addf %105, %152 : vector<4x32xf32>
    %154 = vector.shape_cast %153 : vector<4x32xf32> to vector<1x4x32xf32>
    %c0_63 = arith.constant 0 : index
    %c0_64 = arith.constant 0 : index
    %c0_65 = arith.constant 0 : index
    %155 = vector.load %arg14[%c0_63, %c0_64, %c0_65] : memref<1x4x32xf32, #tpu.memory_space<vmem>>, vector<1x4x32xf32>
    tpu.vector_store %arg14[%c0_63, %c0_64, %c0_65], %154 {strides = array<i32>} : memref<1x4x32xf32, #tpu.memory_space<vmem>>, vector<1x4x32xf32>,
    return
  }
  func.func @transform_0(%arg0: i32) -> (i32, i32, i32) {
    %c0_i32 = arith.constant 0 : i32
    %c0_i32_0 = arith.constant 0 : i32
    %c0_i32_1 = arith.constant 0 : i32
    return %arg0, %c0_i32, %c0_i32_0 : i32, i32, i32
  }
  func.func @transform_1(%arg0: i32) -> (i32, i32) {
    %c0_i32 = arith.constant 0 : i32
    %c0_i32_0 = arith.constant 0 : i32
    %c0_i32_1 = arith.constant 0 : i32
    return %c0_i32, %c0_i32_0 : i32, i32
  }
  func.func @transform_2(%arg0: i32) -> (i32, i32) {
    %c0_i32 = arith.constant 0 : i32
    %c0_i32_0 = arith.constant 0 : i32
    %c0_i32_1 = arith.constant 0 : i32
    return %c0_i32, %c0_i32_0 : i32, i32
  }
  func.func @transform_3(%arg0: i32) -> (i32, i32) {
    %c0_i32 = arith.constant 0 : i32
    %c0_i32_0 = arith.constant 0 : i32
    %c0_i32_1 = arith.constant 0 : i32
    return %c0_i32, %c0_i32_0 : i32, i32
  }
  func.func @transform_4(%arg0: i32) -> (i32, i32) {
    %c0_i32 = arith.constant 0 : i32
    %c0_i32_0 = arith.constant 0 : i32
    %c0_i32_1 = arith.constant 0 : i32
    return %c0_i32, %c0_i32_0 : i32, i32
  }
  func.func @transform_5(%arg0: i32) -> (i32, i32) {
    %c0_i32 = arith.constant 0 : i32
    %c0_i32_0 = arith.constant 0 : i32
    %c0_i32_1 = arith.constant 0 : i32
    return %c0_i32, %c0_i32_0 : i32, i32
  }
  func.func @transform_6(%arg0: i32) -> (i32, i32) {
    %c0_i32 = arith.constant 0 : i32
    %c0_i32_0 = arith.constant 0 : i32
    %c0_i32_1 = arith.constant 0 : i32
    return %c0_i32, %c0_i32_0 : i32, i32
  }
  func.func @transform_7(%arg0: i32) -> (i32, i32) {
    %c0_i32 = arith.constant 0 : i32
    %c0_i32_0 = arith.constant 0 : i32
    %c0_i32_1 = arith.constant 0 : i32
    return %c0_i32, %c0_i32_0 : i32, i32
  }
  func.func @transform_8(%arg0: i32) -> (i32, i32) {
    %c0_i32 = arith.constant 0 : i32
    %c0_i32_0 = arith.constant 0 : i32
    %c0_i32_1 = arith.constant 0 : i32
    return %c0_i32, %c0_i32_0 : i32, i32
  }
  func.func @transform_9(%arg0: i32) -> (i32, i32) {
    %c0_i32 = arith.constant 0 : i32
    %c0_i32_0 = arith.constant 0 : i32
    %c0_i32_1 = arith.constant 0 : i32
    return %c0_i32, %c0_i32_0 : i32, i32
  }
  func.func @transform_10(%arg0: i32) -> (i32, i32) {
    %c0_i32 = arith.constant 0 : i32
    %c0_i32_0 = arith.constant 0 : i32
    %c0_i32_1 = arith.constant 0 : i32
    return %c0_i32, %c0_i32_0 : i32, i32
  }
  func.func @transform_11(%arg0: i32) -> (i32, i32) {
    %c0_i32 = arith.constant 0 : i32
    %c0_i32_0 = arith.constant 0 : i32
    %c0_i32_1 = arith.constant 0 : i32
    return %c0_i32, %c0_i32_0 : i32, i32
  }
  func.func @transform_12(%arg0: i32) -> (i32, i32) {
    %c0_i32 = arith.constant 0 : i32
    %c0_i32_0 = arith.constant 0 : i32
    %c0_i32_1 = arith.constant 0 : i32
    return %c0_i32, %c0_i32_0 : i32, i32
  }
  func.func @transform_13(%arg0: i32) -> (i32, i32, i32) {
    %c0_i32 = arith.constant 0 : i32
    %c0_i32_0 = arith.constant 0 : i32
    %c0_i32_1 = arith.constant 0 : i32
    return %arg0, %c0_i32, %c0_i32_0 : i32, i32, i32
  }
}

module attributes {stable_mosaic.version = 11 : i64} {
  func.func @_head_kernel(%arg0: memref<2x4x32xf32, #tpu.memory_space<vmem>>, %arg1: memref<1x32xf32, #tpu.memory_space<vmem>>, %arg2: memref<1x32xf32, #tpu.memory_space<vmem>>, %arg3: memref<32x10xf32, #tpu.memory_space<vmem>>, %arg4: memref<1x10xf32, #tpu.memory_space<vmem>>, %arg5: memref<2x10xf32, #tpu.memory_space<vmem>>) attributes {dimension_semantics = [], scalar_prefetch = 0 : i64, scratch_operands = 0 : i64, tpu.core_type = #tpu.core_type<tc>} {
    %c0 = arith.constant 0 : index
    %c0_0 = arith.constant 0 : index
    %c0_1 = arith.constant 0 : index
    %0 = vector.load %arg0[%c0, %c0_0, %c0_1] : memref<2x4x32xf32, #tpu.memory_space<vmem>>, vector<2x4x32xf32>
    %cst = arith.constant dense<0.000000e+00> : vector<2x32xf32>
    %1 = vector.multi_reduction <add>, %0, %cst [1] : vector<2x4x32xf32> to vector<2x32xf32>
    %cst_2 = arith.constant 4.000000e+00 : f32
    %2 = vector.broadcast %cst_2 : f32 to vector<2x32xf32>
    %3 = arith.divf %1, %2 : vector<2x32xf32>
    %cst_3 = arith.constant dense<0.000000e+00> : vector<2xf32>
    %4 = vector.multi_reduction <add>, %3, %cst_3 [1] : vector<2x32xf32> to vector<2xf32>
    %5 = vector.shape_cast %4 : vector<2xf32> to vector<2x1xf32>
    %cst_4 = arith.constant 3.200000e+01 : f32
    %6 = vector.broadcast %cst_4 : f32 to vector<2x1xf32>
    %7 = arith.divf %5, %6 : vector<2x1xf32>
    %8 = vector.broadcast %7 : vector<2x1xf32> to vector<2x32xf32>
    %9 = arith.subf %3, %8 : vector<2x32xf32>
    %10 = arith.mulf %9, %9 : vector<2x32xf32>
    %cst_5 = arith.constant dense<0.000000e+00> : vector<2xf32>
    %11 = vector.multi_reduction <add>, %10, %cst_5 [1] : vector<2x32xf32> to vector<2xf32>
    %12 = vector.shape_cast %11 : vector<2xf32> to vector<2x1xf32>
    %cst_6 = arith.constant 3.200000e+01 : f32
    %13 = vector.broadcast %cst_6 : f32 to vector<2x1xf32>
    %14 = arith.divf %12, %13 : vector<2x1xf32>
    %15 = vector.broadcast %7 : vector<2x1xf32> to vector<2x32xf32>
    %16 = arith.subf %3, %15 : vector<2x32xf32>
    %cst_7 = arith.constant 9.99999997E-7 : f32
    %17 = vector.broadcast %cst_7 : f32 to vector<2x1xf32>
    %18 = arith.addf %14, %17 : vector<2x1xf32>
    %19 = math.rsqrt %18 : vector<2x1xf32>
    %20 = vector.broadcast %19 : vector<2x1xf32> to vector<2x32xf32>
    %21 = arith.mulf %16, %20 : vector<2x32xf32>
    %c0_8 = arith.constant 0 : index
    %c0_9 = arith.constant 0 : index
    %22 = vector.load %arg1[%c0_8, %c0_9] : memref<1x32xf32, #tpu.memory_space<vmem>>, vector<1x32xf32>
    %23 = vector.broadcast %22 : vector<1x32xf32> to vector<2x32xf32>
    %24 = arith.mulf %21, %23 : vector<2x32xf32>
    %c0_10 = arith.constant 0 : index
    %c0_11 = arith.constant 0 : index
    %25 = vector.load %arg2[%c0_10, %c0_11] : memref<1x32xf32, #tpu.memory_space<vmem>>, vector<1x32xf32>
    %26 = vector.broadcast %25 : vector<1x32xf32> to vector<2x32xf32>
    %27 = arith.addf %24, %26 : vector<2x32xf32>
    %cst_12 = arith.constant dense<0.000000e+00> : vector<32xf32>
    %28 = vector.multi_reduction <add>, %27, %cst_12 [0] : vector<2x32xf32> to vector<32xf32>
    %29 = vector.shape_cast %28 : vector<32xf32> to vector<1x32xf32>
    %cst_13 = arith.constant 2.000000e+00 : f32
    %30 = vector.broadcast %cst_13 : f32 to vector<1x32xf32>
    %31 = arith.divf %29, %30 : vector<1x32xf32>
    %32 = vector.broadcast %31 : vector<1x32xf32> to vector<2x32xf32>
    %33 = arith.subf %27, %32 : vector<2x32xf32>
    %34 = arith.mulf %33, %33 : vector<2x32xf32>
    %cst_14 = arith.constant dense<0.000000e+00> : vector<32xf32>
    %35 = vector.multi_reduction <add>, %34, %cst_14 [0] : vector<2x32xf32> to vector<32xf32>
    %36 = vector.shape_cast %35 : vector<32xf32> to vector<1x32xf32>
    %cst_15 = arith.constant 2.000000e+00 : f32
    %37 = vector.broadcast %cst_15 : f32 to vector<1x32xf32>
    %38 = arith.divf %36, %37 : vector<1x32xf32>
    %39 = vector.broadcast %31 : vector<1x32xf32> to vector<2x32xf32>
    %40 = arith.subf %27, %39 : vector<2x32xf32>
    %cst_16 = arith.constant 9.99999997E-7 : f32
    %41 = vector.broadcast %cst_16 : f32 to vector<1x32xf32>
    %42 = arith.addf %38, %41 : vector<1x32xf32>
    %43 = math.rsqrt %42 : vector<1x32xf32>
    %44 = vector.broadcast %43 : vector<1x32xf32> to vector<2x32xf32>
    %45 = arith.mulf %40, %44 : vector<2x32xf32>
    %c0_17 = arith.constant 0 : index
    %c0_18 = arith.constant 0 : index
    %46 = vector.load %arg3[%c0_17, %c0_18] : memref<32x10xf32, #tpu.memory_space<vmem>>, vector<32x10xf32>
    %cst_19 = arith.constant dense<0.000000e+00> : vector<2x10xf32>
    %47 = tpu.matmul %45, %46, %cst_19 {dimension_numbers = #tpu.dot_dimension_numbers<[1], [0], [0], [1], [0, 0, 1, 1], [], []>} : vector<2x32xf32>, vector<32x10xf32>, vector<2x10xf32> -> vector<2x10xf32>
    %c0_20 = arith.constant 0 : index
    %c0_21 = arith.constant 0 : index
    %48 = vector.load %arg4[%c0_20, %c0_21] : memref<1x10xf32, #tpu.memory_space<vmem>>, vector<1x10xf32>
    %49 = vector.broadcast %48 : vector<1x10xf32> to vector<2x10xf32>
    %50 = arith.addf %47, %49 : vector<2x10xf32>
    %c0_22 = arith.constant 0 : index
    %c0_23 = arith.constant 0 : index
    %51 = vector.load %arg5[%c0_22, %c0_23] : memref<2x10xf32, #tpu.memory_space<vmem>>, vector<2x10xf32>
    tpu.vector_store %arg5[%c0_22, %c0_23], %50 {strides = array<i32>} : memref<2x10xf32, #tpu.memory_space<vmem>>, vector<2x10xf32>,
    return
  }
}

</mosaic_0001>

<bundles_post_ra>
// kernel: custom_clip_forward.8
= control target key start
LH: loop header
LB: loop body
LE: loop exit
PB: predicated region body
PF: predicated region fallthrough
CT: control target
= control target key end

     0   :  { %s381_s12 = smov 0   ;;  %s423_s0 = inlined_call_operand.vmem [shape: f32[128,16], index: 0, kind: input, shape index: {}]   ;;  %s424_s1 = inlined_call_operand.vmem [shape: f32[16,8], index: 1, kind: input, shape index: {}]   ;;  %s425_s2 = inlined_call_operand.vmem [shape: f32[1,8], index: 2, kind: input, shape index: {}]   ;;  %s426_s3 = inlined_call_operand.vmem [shape: f32[128,8], index: 3, kind: output, shape index: {}]  }
   0x1 LB: > { %s319_s13 = sadd.s32 4294967295, %s359_s12   ;;  %p323_p0 = scmp.ge.s32.totalorder %s359_s12, 1  ;;  %s359_s12 = sphi %s381_s12, %s13_s12  }
   0x2   : > { %p138_p1 = scmp.lt.s32.totalorder %s359_s12, 3 }
   0x4   : > { %p139_p2 = pnand %p323_p0, %p138_p1 }
   0x5   : > { %s324_s18 = sshll.u32 (!%p139_p2), %s319_s13, 3 }
   0x6   : > { %142 = sbr.rel (%p139_p2) target bundleno = 160 (0xa0), region = 32  ;;  %p163_p3 = scmp.lt.s32.totalorder (!%p139_p2), %s324_s18, 15 }
   0xb   : > { %v183_v0 = vld [vmem:[%s424_s1 + $0x8] sm:$0xff]  ;;  %v182_v1 = vld [vmem:[%s424_s1] sm:$0xff]  ;;  %s428_s18 = smov (!%p163_p3, %s324_s18), 15  ;;  %vm188_vm0 = vcmask 130048   ;;  %vm254_vm1 = vcmask 64512  }
   0xc   : > { %339 = vmatpush.msra.mxu2 %v183_v0  ;;  %340 = vmatpush.msra.mxu3 %v183_v0  ;;  %s325_s19 = sshll.u32 %s428_s18, 3  ;;  %v352_v10 = vld [vmem:[%s425_s2] ss:$0 sm:$0xff] }
   0xd   : > { %227 = vmatpush.msra.mxu0 %v183_v0  ;;  %338 = vmatpush.msra.mxu1 %v183_v0  ;;  %s166_s22 = scalar_lea.vmem %s423_s0, %s325_s19  ;;  %s172_s27 = scalar_lea.vmem %s426_s3, %s325_s19 }
   0xe   : > { %342 = vmatpush.msra.mxu2 %v182_v1  ;;  %343 = vmatpush.msra.mxu3 %v182_v1  ;;  %v178_v2 = vld [vmem:[%s166_s22 + $0x20] sm:$0xff]  ;;  %v180_v3 = vld [vmem:[%s166_s22 + $0x30] sm:$0xff]  ;;  %v179_v6 = vld [vmem:[%s166_s22 + $0x28] sm:$0xff] }
   0xf   : > { %228 = vmatpush.msra.mxu0 %v182_v1  ;;  %341 = vmatpush.msra.mxu1 %v182_v1  ;;  %v174_v4 = vld [vmem:[%s166_s22] sm:$0xff]  ;;  %v176_v5 = vld [vmem:[%s166_s22 + $0x10] sm:$0xff]  ;;  %v181_v7 = vld [vmem:[%s166_s22 + $0x38] sm:$0xff] }
  0x10   : > { %332 = vmatmul.msk.f32.vlgmr.msra.gmra.mxu2 %vm188_vm0, %v178_v2  ;;  %334 = vmatmul.msk.f32.vlgmr.msra.gmra.mxu3 %vm188_vm0, %v180_v3  ;;  %v175_v8 = vld [vmem:[%s166_s22 + $0x8] sm:$0xff]  ;;  %v177_v9 = vld [vmem:[%s166_s22 + $0x18] sm:$0xff] }
  0x11   : > { %328 = vmatmul.msk.f32.vlgmr.msra.gmra.mxu0 %vm188_vm0, %v174_v4  ;;  %330 = vmatmul.msk.f32.vlgmr.msra.gmra.mxu1 %vm188_vm0, %v176_v5 }
  0x18   : > { %333 = vmatmul.msk.f32.gmra.mxu2 %vm188_vm0, %v179_v6  ;;  %335 = vmatmul.msk.f32.gmra.mxu3 %vm188_vm0, %v181_v7 }
  0x19   : > { %329 = vmatmul.msk.f32.gmra.mxu0 %vm188_vm0, %v175_v8  ;;  %331 = vmatmul.msk.f32.gmra.mxu1 %vm188_vm0, %v177_v9 }
  0x8e   : > { %v230_v11 = vpop.f32.mrf.mxu0  ;;  %v236_v12 = vpop.f32.mrf.mxu1 }
  0x8f   : > { %v231_v13 = vadd.f32 %v352_v10, %v230_v11  ;;  %v237_v14 = vadd.f32 %v352_v10, %v236_v12 }
  0x91   : > { %255 = vst.msk [vmem:[%s172_s27] sm:$0xff] %vm254_vm1, %v231_v13 }
  0x92   : > { %257 = vst.msk [vmem:[%s172_s27 + $0x10] sm:$0xff] %vm254_vm1, %v237_v14 }
  0x93   : > { %v242_v15 = vpop.f32.mrf.mxu2  ;;  %v248_v16 = vpop.f32.mrf.mxu3 }
  0x94   : > { %v243_v17 = vadd.f32 %v352_v10, %v242_v15  ;;  %v249_v18 = vadd.f32 %v352_v10, %v248_v16 }
  0x96   : > { %259 = vst.msk [vmem:[%s172_s27 + $0x20] sm:$0xff] %vm254_vm1, %v243_v17  ;;  %v233_v19 = vpop.f32.mrf.mxu0  ;;  %v239_v20 = vpop.f32.mrf.mxu1 }
  0x97   : > { %261 = vst.msk [vmem:[%s172_s27 + $0x30] sm:$0xff] %vm254_vm1, %v249_v18  ;;  %v234_v21 = vadd.f32 %v352_v10, %v233_v19  ;;  %v240_v22 = vadd.f32 %v352_v10, %v239_v20 }
  0x99   : > { %256 = vst.msk [vmem:[%s172_s27 + $0x8] sm:$0xff] %vm254_vm1, %v234_v21 }
  0x9a   : > { %258 = vst.msk [vmem:[%s172_s27 + $0x18] sm:$0xff] %vm254_vm1, %v240_v22 }
  0x9b   : > { %v245_v23 = vpop.f32.mrf.mxu2  ;;  %v251_v24 = vpop.f32.mrf.mxu3 }
  0x9c   : > { %v246_v25 = vadd.f32 %v352_v10, %v245_v23  ;;  %v252_v26 = vadd.f32 %v352_v10, %v251_v24 }
  0x9e   : > { %260 = vst.msk [vmem:[%s172_s27 + $0x28] sm:$0xff] %vm254_vm1, %v246_v25 }
  0x9f   : > { %262 = vst.msk [vmem:[%s172_s27 + $0x38] sm:$0xff] %vm254_vm1, %v252_v26 }
  0xa0 PF: > { %s13_s12 = sadd.s32 1, %s359_s12  }
  0xa1   : > { %p10_p4 = scmp.ge.s32.totalorder %s13_s12, 4  }
  0xa3   :  { %12 = sbr.rel (!%p10_p4) target bundleno = 1 (0x1), region = 62 }

// kernel: custom_clip_forward.9
= control target key start
LH: loop header
LB: loop body
LE: loop exit
PB: predicated region body
PF: predicated region fallthrough
CT: control target
= control target key end

     0   :  { %s912_s24 = smov 0   ;;  %s1199_s0 = inlined_call_operand.vmem [shape: f32[128,8], index: 0, kind: input, shape index: {}]   ;;  %s1200_s1 = inlined_call_operand.vmem [shape: f32[1,8], index: 1, kind: input, shape index: {}]   ;;  %s1201_s2 = inlined_call_operand.vmem [shape: f32[1,8], index: 2, kind: input, shape index: {}]   ;;  %s1202_s3 = inlined_call_operand.vmem [shape: f32[8,24], index: 3, kind: input, shape index: {}]   ;;  %s1203_s4 = inlined_call_operand.vmem [shape: f32[1,24], index: 4, kind: input, shape index: {}]   ;;  %s1204_s5 = inlined_call_operand.vmem [shape: f32[24,8], index: 5, kind: input, shape index: {}]   ;;  %s1205_s6 = inlined_call_operand.vmem [shape: f32[1,8], index: 6, kind: input, shape index: {}]   ;;  %s1206_s7 = inlined_call_operand.vmem [shape: f32[128,8], index: 7, kind: output, shape index: {}]  }
   0x1 LB: > { %s785_s25 = sadd.s32 4294967295, %s869_s24   ;;  %p789_p0 = scmp.ge.s32.totalorder %s869_s24, 1  ;;  %s869_s24 = sphi %s912_s24, %s17_s24  }
   0x2   : > { %p238_p1 = scmp.lt.s32.totalorder %s869_s24, 3 }
   0x4   : > { %p239_p2 = pnand %p789_p0, %p238_p1 }
   0x5   : > { %s790_s26 = sshll.u32 (!%p239_p2), %s785_s25, 3 }
   0x6   : > { %242 = sbr.rel (%p239_p2) target bundleno = 627 (0x273), region = 48  ;;  %p271_p3 = scmp.lt.s32.totalorder (!%p239_p2), %s790_s26, 15 }
   0xb   : > { %s1216_s26 = smov (!%p271_p3, %s790_s26), 15  ;;  %vm292_vm0 = vcmask 64512   ;;  %v871_v16 = vmov 8.0   ;;  %v498_v63 = vld [vmem:[%s1202_s3] sm:$0xff] }
   0xc   : > { %s791_s27 = sshll.u32 %s1216_s26, 3  ;;  %829 = vrcp.f32 %v871_v16  ;;  %542 = vmatpush.msra.mxu0 %v498_v63  ;;  %812 = vmatpush.msra.mxu3 %v498_v63 }
   0xd   : > { %s274_s30 = scalar_lea.vmem %s1199_s0, %s791_s27  ;;  %s280_s29 = scalar_lea.vmem %s1206_s7, %s791_s27 }
   0xe   : > { %v928_v0 = vld [vmem:[%s274_s30 + $0x10] sm:$0xff]  ;;  %v930_v1 = vld [vmem:[%s274_s30] sm:$0xff]  ;;  %v940_v6 = vld [vmem:[%s274_s30 + $0x18] sm:$0xff] }
   0xf   : > { %v932_v2 = vld [vmem:[%s274_s30 + $0x20] sm:$0xff]  ;;  %v299_v3 = vsel %vm292_vm0, %v928_v0, 0.0  ;;  %v293_v4 = vsel %vm292_vm0, %v930_v1, 0.0  ;;  %v942_v7 = vld [vmem:[%s274_s30 + $0x8] sm:$0xff]  ;;  %v302_v9 = vsel %vm292_vm0, %v940_v6, 0.0  ;;  %v952_v12 = vld [vmem:[%s274_s30 + $0x30] sm:$0xff] }
  0x10   : > { %v305_v5 = vsel %vm292_vm0, %v932_v2, 0.0  ;;  %300 = vadd.xlane.f32.xlu1 %v299_v3  ;;  %294 = vadd.xlane.f32.xlu0 %v293_v4  ;;  %v944_v8 = vld [vmem:[%s274_s30 + $0x28] sm:$0xff]  ;;  %v296_v10 = vsel %vm292_vm0, %v942_v7, 0.0  ;;  %v954_v13 = vld [vmem:[%s274_s30 + $0x38] sm:$0xff]  ;;  %v311_v14 = vsel %vm292_vm0, %v952_v12, 0.0 }
  0x11   : > { %306 = vadd.xlane.f32.xlu2 %v305_v5  ;;  %v308_v11 = vsel %vm292_vm0, %v944_v8, 0.0  ;;  %v314_v15 = vsel %vm292_vm0, %v954_v13, 0.0 }
  0x12   : > { %v830_v17 = vpop.eup %829 }
  0x13   : > { %v318_v18 = vmul.f32 8.0, %v830_v17  ;;  %vm322_vm1 = vweird.f32 %v830_v17 }
  0x15   : > { %v319_v19 = vsub.f32 1.0, %v318_v18 }
  0x17   : > { %v320_v20 = vmul.f32 %v830_v17, %v319_v19 }
  0x18   : > { %303 = vadd.xlane.f32.xlu1 %v302_v9  ;;  %297 = vadd.xlane.f32.xlu0 %v296_v10 }
  0x19   : > { %309 = vadd.xlane.f32.xlu2 %v308_v11  ;;  %v321_v21 = vadd.f32 %v830_v17, %v320_v20 }
  0x1b   : > { %v960_v22 = vsel %vm322_vm1, %v830_v17, %v321_v21 }
  0x20   : > { %312 = vadd.xlane.f32.xlu0 %v311_v14 }
  0x21   : > { %315 = vadd.xlane.f32.xlu2 %v314_v15 }
  0x83   : > { %v301_v23 = vpop.xlane.xlu1 %300  ;;  %v295_v24 = vpop.xlane.xlu0 %294 }
  0x84   : > { %v326_v25 = vmul.f32 %v960_v22, %v301_v23  ;;  %v324_v26 = vmul.f32 %v960_v22, %v295_v24  ;;  %v307_v27 = vpop.xlane.xlu2 %306 }
  0x85   : > { %v328_v38 = vmul.f32 %v960_v22, %v307_v27 }
  0x86   : > { %v965_v28 = vsub.f32 %v930_v1, %v324_v26  ;;  %v968_v29 = vsub.f32 %v928_v0, %v326_v25 }
  0x87   : > { %v994_v46 = vsub.f32 %v932_v2, %v328_v38 }
  0x88   : > { %v340_v30 = vmul.f32 %v965_v28, %v965_v28  ;;  %v342_v37 = vmul.f32 %v968_v29, %v968_v29 }
  0x89   : > { %v344_v54 = vmul.f32 %v994_v46, %v994_v46 }
  0x8a   : > { %v348_v31 = vsel %vm292_vm0, %v340_v30, 0.0  ;;  %v354_v44 = vsel %vm292_vm0, %v342_v37, 0.0 }
  0x8b   : > { %v304_v32 = vpop.xlane.xlu1 %303  ;;  %349 = vadd.xlane.f32.xlu1 %v348_v31  ;;  %v298_v33 = vpop.xlane.xlu0 %297  ;;  %v360_v59 = vsel %vm292_vm0, %v344_v54, 0.0 }
  0x8c   : > { %v327_v34 = vmul.f32 %v960_v22, %v304_v32  ;;  %v325_v35 = vmul.f32 %v960_v22, %v298_v33  ;;  %v310_v36 = vpop.xlane.xlu2 %309 }
  0x8d   : > { %v329_v39 = vmul.f32 %v960_v22, %v310_v36 }
  0x8e   : > { %v980_v40 = vsub.f32 %v940_v6, %v327_v34  ;;  %v983_v41 = vsub.f32 %v942_v7, %v325_v35 }
  0x8f   : > { %v986_v42 = vsub.f32 %v944_v8, %v329_v39 }
  0x90   : > { %v343_v43 = vmul.f32 %v980_v40, %v980_v40  ;;  %v341_v45 = vmul.f32 %v983_v41, %v983_v41 }
  0x91   : > { %v345_v52 = vmul.f32 %v986_v42, %v986_v42 }
  0x92   : > { %v357_v47 = vsel %vm292_vm0, %v343_v43, 0.0  ;;  %v351_v48 = vsel %vm292_vm0, %v341_v45, 0.0 }
  0x93   : > { %358 = vadd.xlane.f32.xlu2 %v357_v47  ;;  %355 = vadd.xlane.f32.xlu1 %v354_v44  ;;  %v313_v49 = vpop.xlane.xlu0 %312  ;;  %v363_v56 = vsel %vm292_vm0, %v345_v52, 0.0 }
  0x94   : > { %352 = vadd.xlane.f32.xlu0 %v351_v48  ;;  %v330_v50 = vmul.f32 %v960_v22, %v313_v49  ;;  %v316_v51 = vpop.xlane.xlu2 %315  ;;  %v1049_v49 = vld [vmem:[%s1200_s1] ss:$0 sm:$0xff] }
  0x95   : > { %v331_v53 = vmul.f32 %v960_v22, %v316_v51 }
  0x96   : > { %v1005_v55 = vsub.f32 %v952_v12, %v330_v50 }
  0x97   : > { %v1011_v58 = vsub.f32 %v954_v13, %v331_v53 }
  0x98   : > { %v346_v57 = vmul.f32 %v1005_v55, %v1005_v55 }
  0x99   : > { %v347_v61 = vmul.f32 %v1011_v58, %v1011_v58 }
  0x9a   : > { %v366_v60 = vsel %vm292_vm0, %v346_v57, 0.0  ;;  %v1059_v57 = vld [vmem:[%s1201_s2] ss:$0 sm:$0xff] }
  0x9b   : > { %364 = vadd.xlane.f32.xlu1 %v363_v56  ;;  %367 = vadd.xlane.f32.xlu2 %v366_v60  ;;  %v369_v62 = vsel %vm292_vm0, %v347_v61, 0.0 }
  0x9c   : > { %361 = vadd.xlane.f32.xlu0 %v360_v59 }
  0xa4   : > { %370 = vadd.xlane.f32.xlu0 %v369_v62 }
  0xfe   : > { %v350_v3 = vpop.xlane.xlu1 %349 }
  0xff   : > { %v372_v4 = vmul.f32 %v350_v3, %v960_v22 }
 0x101   : > { %v380_v5 = vadd.f32 1e-06, %v372_v4 }
 0x103   : > { %831 = vrsqrt.f32 %v380_v5  ;;  %vm394_vm3 = vweird.f32 %v380_v5 }
 0x106   : > { %v359_v9 = vpop.xlane.xlu2 %358  ;;  %v356_v10 = vpop.xlane.xlu1 %355 }
 0x107   : > { %v375_v11 = vmul.f32 %v359_v9, %v960_v22  ;;  %v374_v14 = vmul.f32 %v356_v10, %v960_v22  ;;  %v353_v15 = vpop.xlane.xlu0 %352 }
 0x108   : > { %v373_v16 = vmul.f32 %v353_v15, %v960_v22 }
 0x109   : > { %v832_v17 = vpop.eup %831  ;;  %v1025_v18 = vadd.f32 1e-06, %v375_v11  ;;  %v1027_v19 = vadd.f32 1e-06, %v374_v14 }
 0x10a   : > { %v389_v20 = vmul.f32 %v832_v17, %v380_v5  ;;  %v381_v21 = vadd.f32 1e-06, %v373_v16  ;;  %vm395_vm2 = vweird.f32 %v832_v17 }
 0x10b   : > { %833 = vrsqrt.f32 %v1025_v18  ;;  %vm396_vm4 = vmor %vm394_vm3, %vm395_vm2  ;;  %vm414_vm5 = vweird.f32 %v1027_v19  ;;  %vm424_vm1 = vweird.f32 %v1025_v18 }
 0x10c   : > { %v390_v23 = vmul.f32 %v832_v17, %v389_v20  ;;  %835 = vrsqrt.f32 %v1027_v19  ;;  %vm404_vm8 = vweird.f32 %v381_v21 }
 0x10d   : > { %837 = vrsqrt.f32 %v381_v21 }
 0x10e   : > { %v391_v24 = vmul.f32 0.5, %v390_v23  ;;  %v365_v25 = vpop.xlane.xlu1 %364  ;;  %v368_v26 = vpop.xlane.xlu2 %367 }
 0x10f   : > { %v377_v27 = vmul.f32 %v365_v25, %v960_v22  ;;  %v378_v30 = vmul.f32 %v368_v26, %v960_v22  ;;  %v362_v31 = vpop.xlane.xlu0 %361 }
 0x110   : > { %v392_v32 = vsub.f32 1.5, %v391_v24  ;;  %v376_v33 = vmul.f32 %v362_v31, %v960_v22 }
 0x111   : > { %v1034_v34 = vpop.eup %833  ;;  %v385_v35 = vadd.f32 1e-06, %v377_v27  ;;  %v1036_v36 = vadd.f32 1e-06, %v378_v30 }
 0x112   : > { %v1038_v37 = vpop.eup %835  ;;  %v393_v38 = vmul.f32 %v832_v17, %v392_v32  ;;  %v1040_v39 = vadd.f32 1e-06, %v376_v33  ;;  %v419_v44 = vmul.f32 %v1034_v34, %v1025_v18  ;;  %vm425_vm2 = vweird.f32 %v1034_v34 }
 0x113   : > { %v838_v43 = vpop.eup %837  ;;  %v409_v45 = vmul.f32 %v1038_v37, %v1027_v19  ;;  %839 = vrsqrt.f32 %v385_v35  ;;  %vm415_vm6 = vweird.f32 %v1038_v37  ;;  %vm444_vm10 = vweird.f32 %v385_v35 }
 0x114   : > { %v397_v47 = vsel %vm396_vm4, %v832_v17, %v393_v38  ;;  %v399_v48 = vmul.f32 %v838_v43, %v381_v21  ;;  %841 = vrsqrt.f32 %v1036_v36  ;;  %v420_v53 = vmul.f32 %v1034_v34, %v419_v44  ;;  %vm1077_vm12 = vmor %vm414_vm5, %vm415_vm6 }
 0x115   : > { %v410_v50 = vmul.f32 %v1038_v37, %v409_v45  ;;  %843 = vrsqrt.f32 %v1040_v39  ;;  %v468_v52 = vmul.f32 %v397_v47, %v965_v28  ;;  %vm405_vm7 = vweird.f32 %v838_v43  ;;  %vm1105_vm4 = vmor %vm424_vm1, %vm425_vm2 }
 0x116   : > { %v400_v51 = vmul.f32 %v838_v43, %v399_v48  ;;  %v421_v5 = vmul.f32 0.5, %v420_v53  ;;  %vm406_vm9 = vmor %vm404_vm8, %vm405_vm7  ;;  %vm454_vm13 = vweird.f32 %v1036_v36  ;;  %vm434_vm7 = vweird.f32 %v1040_v39 }
 0x117   : > { %v411_v54 = vmul.f32 0.5, %v410_v50  ;;  %v371_v56 = vpop.xlane.xlu0 %370  ;;  %v479_v61 = vmul.f32 %v1049_v49, %v468_v52 }
 0x118   : > { %v401_v59 = vmul.f32 0.5, %v400_v51  ;;  %v379_v60 = vmul.f32 %v371_v56, %v960_v22  ;;  %v422_v25 = vsub.f32 1.5, %v421_v5 }
 0x119   : > { %v840_v62 = vpop.eup %839  ;;  %v412_v63 = vsub.f32 1.5, %v411_v54  ;;  %v490_v11 = vadd.f32 %v1059_v57, %v479_v61 }
 0x11a   : > { %v402_v28 = vsub.f32 1.5, %v401_v59  ;;  %v439_v3 = vmul.f32 %v840_v62, %v385_v35  ;;  %v842_v4 = vpop.eup %841  ;;  %v387_v10 = vadd.f32 1e-06, %v379_v60  ;;  %vm445_vm11 = vweird.f32 %v840_v62 }
 0x11b   : > { %v413_v9 = vmul.f32 %v1038_v37, %v412_v63  ;;  %v1067_v14 = vpop.eup %843  ;;  %v449_v16 = vmul.f32 %v842_v4, %v1036_v36  ;;  %794 = vmatmul.msk.f32.vlgmr.msra.gmra.mxu0 %vm292_vm0, %v490_v11  ;;  %vm455_vm14 = vweird.f32 %v842_v4  ;;  %vm1089_vm15 = vmor %vm444_vm10, %vm445_vm11  ;;  %v423_v44 = vmul.f32 %v1034_v34, %v422_v25 }
 0x11c   : > { %v403_v22 = vmul.f32 %v838_v43, %v402_v28  ;;  %v440_v15 = vmul.f32 %v840_v62, %v439_v3  ;;  %v429_v17 = vmul.f32 %v1067_v14, %v1040_v39  ;;  %845 = vrsqrt.f32 %v387_v10  ;;  %vm1096_vm3 = vmor %vm454_vm13, %vm455_vm14 }
 0x11d   : > { %v450_v24 = vmul.f32 %v842_v4, %v449_v16  ;;  %v417_v26 = vsel %vm1077_vm12, %v1038_v37, %v413_v9  ;;  %v427_v56 = vsel %vm1105_vm4, %v1034_v34, %v423_v44  ;;  %vm464_vm5 = vweird.f32 %v387_v10 }
 0x11e   : > { %v407_v21 = vsel %vm406_vm9, %v838_v43, %v403_v22  ;;  %v441_v23 = vmul.f32 0.5, %v440_v15  ;;  %v430_v19 = vmul.f32 %v1067_v14, %v429_v17  ;;  %v470_v35 = vmul.f32 %v417_v26, %v968_v29 }
 0x11f   : > { %v469_v27 = vmul.f32 %v407_v21, %v983_v41  ;;  %v451_v31 = vmul.f32 0.5, %v450_v24  ;;  %v471_v28 = vmul.f32 %v427_v56, %v980_v40  ;;  %vm435_vm8 = vweird.f32 %v1067_v14 }
 0x120   : > { %v442_v30 = vsub.f32 1.5, %v441_v23  ;;  %v431_v18 = vmul.f32 0.5, %v430_v19  ;;  %v481_v53 = vmul.f32 %v1049_v49, %v470_v35  ;;  %vm436_vm10 = vmor %vm434_vm7, %vm435_vm8  ;;  %vm647_vm11 = vcmask 195584  }
 0x121   : > { %v480_v33 = vmul.f32 %v1049_v49, %v469_v27  ;;  %v452_v37 = vsub.f32 1.5, %v451_v31  ;;  %v482_v5 = vmul.f32 %v1049_v49, %v471_v28 }
 0x122   : > { %v443_v36 = vmul.f32 %v840_v62, %v442_v30  ;;  %v846_v43 = vpop.eup %845  ;;  %v432_v59 = vsub.f32 1.5, %v431_v18  ;;  %v492_v63 = vadd.f32 %v1059_v57, %v481_v53 }
 0x123   : > { %v491_v38 = vadd.f32 %v1059_v57, %v480_v33  ;;  %v453_v47 = vmul.f32 %v842_v4, %v452_v37  ;;  %v459_v50 = vmul.f32 %v846_v43, %v387_v10  ;;  %vm465_vm6 = vweird.f32 %v846_v43 }
 0x124   : > { %v447_v45 = vsel %vm1089_vm15, %v840_v62, %v443_v36  ;;  %v433_v3 = vmul.f32 %v1067_v14, %v432_v59  ;;  %vm466_vm9 = vmor %vm464_vm5, %vm465_vm6  ;;  %v493_v39 = vadd.f32 %v1059_v57, %v482_v5 }
 0x125   : > { %795 = vmatmul.msk.f32.gmra.mxu0 %vm292_vm0, %v491_v38  ;;  %v473_v51 = vmul.f32 %v447_v45, %v986_v42  ;;  %v457_v29 = vsel %vm1096_vm3, %v842_v4, %v453_v47  ;;  %v460_v52 = vmul.f32 %v846_v43, %v459_v50 }
 0x126   : > { %v474_v42 = vmul.f32 %v457_v29, %v1005_v55  ;;  %v437_v9 = vsel %vm436_vm10, %v1067_v14, %v433_v3 }
 0x127   : > { %v484_v54 = vmul.f32 %v1049_v49, %v473_v51  ;;  %v461_v60 = vmul.f32 0.5, %v460_v52  ;;  %v472_v11 = vmul.f32 %v437_v9, %v994_v46  ;;  %v641_v46 = vld [vmem:[%s1204_s5 + $0x8] sm:$0xff] }
 0x128   : > { %v485_v4 = vmul.f32 %v1049_v49, %v474_v42 }
 0x129   : > { %v495_v61 = vadd.f32 %v1059_v57, %v484_v54  ;;  %v462_v62 = vsub.f32 1.5, %v461_v60  ;;  %v483_v15 = vmul.f32 %v1049_v49, %v472_v11 }
 0x12a   : > { %v496_v40 = vadd.f32 %v1059_v57, %v485_v4 }
 0x12b   : > { %799 = vmatmul.msk.f32.vlgmr.msra.gmra.mxu3 %vm292_vm0, %v495_v61  ;;  %v463_v34 = vmul.f32 %v846_v43, %v462_v62  ;;  %v494_v14 = vadd.f32 %v1059_v57, %v483_v15 }
 0x12d   : > { %796 = vmatmul.msk.f32.gmra.mxu0 %vm292_vm0, %v492_v63  ;;  %v467_v55 = vsel %vm466_vm9, %v846_v43, %v463_v34 }
 0x12e   : > { %v475_v10 = vmul.f32 %v467_v55, %v1011_v58  ;;  %v642_v58 = vld [vmem:[%s1204_s5 + $0x10] sm:$0xff] }
 0x12f   : > { %685 = vmatpush.msra.mxu1 %v642_v58  ;;  %813 = vmatpush.msra.mxu2 %v642_v58 }
 0x130   : > { %v486_v22 = vmul.f32 %v1049_v49, %v475_v10  ;;  %v640_v49 = vld [vmem:[%s1204_s5] sm:$0xff] }
 0x131   : > { %686 = vmatpush.msra.mxu1 %v641_v46  ;;  %814 = vmatpush.msra.mxu2 %v641_v46 }
 0x132   : > { %v497_v16 = vadd.f32 %v1059_v57, %v486_v22  ;;  %v1154_v57 = vld [vmem:[%s1203_s4] ss:$0 sm:$0xff] }
 0x133   : > { %800 = vmatmul.msk.f32.gmra.mxu3 %vm292_vm0, %v496_v40  ;;  %687 = vmatpush.msra.mxu1 %v640_v49 }
 0x134   : > { %815 = vmatpush.msra.mxu2 %v640_v49 }
 0x135   : > { %797 = vmatmul.msk.f32.gmra.mxu0 %vm292_vm0, %v493_v39 }
 0x13b   : > { %801 = vmatmul.msk.f32.gmra.mxu3 %vm292_vm0, %v497_v16 }
 0x13d   : > { %798 = vmatmul.msk.f32.gmra.mxu0 %vm292_vm0, %v494_v14 }
 0x198   : > { %v544_v17 = vpop.f32.mrf.mxu0 }
 0x199   : > { %v545_v20 = vadd.f32 %v1154_v57, %v544_v17 }
 0x19b   : > { %v576_v21 = vmul.f32 0.044715, %v545_v20  ;;  %v568_v44 = vmul.f32 0.5, %v545_v20 }
 0x19d   : > { %v584_v23 = vmul.f32 %v576_v21, %v545_v20 }
 0x19f   : > { %v592_v24 = vmul.f32 %v584_v23, %v545_v20 }
 0x1a1   : > { %v600_v27 = vadd.f32 %v592_v24, %v545_v20 }
 0x1a2   : > { %v547_v25 = vpop.f32.mrf.mxu0 }
 0x1a3   : > { %v548_v26 = vadd.f32 %v1154_v57, %v547_v25  ;;  %v608_v31 = vmul.f32 0.7978846, %v600_v27 }
 0x1a5   : > { %v577_v30 = vmul.f32 0.044715, %v548_v26  ;;  %847 = vtanh.f32 %v608_v31  ;;  %v569_v60 = vmul.f32 0.5, %v548_v26 }
 0x1a7   : > { %v585_v19 = vmul.f32 %v577_v30, %v548_v26 }
 0x1a9   : > { %v593_v32 = vmul.f32 %v585_v19, %v548_v26 }
 0x1aa   : > { %v550_v33 = vpop.f32.mrf.mxu0 }
 0x1ab   : > { %v551_v36 = vadd.f32 %v1154_v57, %v550_v33  ;;  %v601_v37 = vadd.f32 %v593_v32, %v548_v26  ;;  %v848_v41 = vpop.eup %847 }
 0x1ac   : > { %v624_v45 = vadd.f32 1.0, %v848_v41 }
 0x1ad   : > { %v578_v38 = vmul.f32 0.044715, %v551_v36  ;;  %v609_v35 = vmul.f32 0.7978846, %v601_v37  ;;  %v570_v39 = vmul.f32 0.5, %v551_v36 }
 0x1ae   : > { %v559_v43 = vpop.f32.mrf.mxu3  ;;  %v632_v18 = vmul.f32 %v624_v45, %v568_v44 }
 0x1af   : > { %849 = vtanh.f32 %v609_v35  ;;  %v586_v47 = vmul.f32 %v578_v38, %v551_v36  ;;  %v560_v51 = vadd.f32 %v1154_v57, %v559_v43 }
 0x1b0   : > { %802 = vmatmul.msk.f32.vlgmr.msra.gmra.mxu1 %vm647_vm11, %v632_v18 }
 0x1b1   : > { %v594_v48 = vmul.f32 %v586_v47, %v551_v36  ;;  %v581_v42 = vmul.f32 0.044715, %v560_v51  ;;  %v573_v47 = vmul.f32 0.5, %v560_v51 }
 0x1b2   : > { %v553_v50 = vpop.f32.mrf.mxu0 }
 0x1b3   : > { %v554_v29 = vadd.f32 %v1154_v57, %v553_v50  ;;  %v602_v52 = vadd.f32 %v594_v48, %v551_v36  ;;  %v589_v5 = vmul.f32 %v581_v42, %v560_v51 }
 0x1b5   : > { %v850_v53 = vpop.eup %849  ;;  %v579_v54 = vmul.f32 0.044715, %v554_v29  ;;  %v610_v56 = vmul.f32 0.7978846, %v602_v52  ;;  %v597_v16 = vmul.f32 %v589_v5, %v560_v51  ;;  %v571_v25 = vmul.f32 0.5, %v554_v29 }
 0x1b6   : > { %v562_v59 = vpop.f32.mrf.mxu3  ;;  %v625_v61 = vadd.f32 1.0, %v850_v53 }
 0x1b7   : > { %851 = vtanh.f32 %v610_v56  ;;  %v587_v62 = vmul.f32 %v579_v54, %v554_v29  ;;  %v563_v34 = vadd.f32 %v1154_v57, %v562_v59  ;;  %v605_v20 = vadd.f32 %v597_v16, %v560_v51  ;;  %v828_v51 = vld [vmem:[%s1205_s6] ss:$0 sm:$0xff] }
 0x1b8   : > { %v633_v63 = vmul.f32 %v625_v61, %v569_v60 }
 0x1b9   : > { %v595_v28 = vmul.f32 %v587_v62, %v554_v29  ;;  %v582_v22 = vmul.f32 0.044715, %v563_v34  ;;  %v613_v30 = vmul.f32 0.7978846, %v605_v20  ;;  %v574_v52 = vmul.f32 0.5, %v563_v34 }
 0x1ba   : > { %v556_v3 = vpop.f32.mrf.mxu0  ;;  %803 = vmatmul.msk.f32.gmra.mxu1 %vm647_vm11, %v633_v63 }
 0x1bb   : > { %v557_v4 = vadd.f32 %v1154_v57, %v556_v3  ;;  %v603_v55 = vadd.f32 %v595_v28, %v554_v29  ;;  %v590_v21 = vmul.f32 %v582_v22, %v563_v34 }
 0x1bd   : > { %v852_v9 = vpop.eup %851  ;;  %v580_v40 = vmul.f32 0.044715, %v557_v4  ;;  %v611_v10 = vmul.f32 0.7978846, %v603_v55  ;;  %v598_v31 = vmul.f32 %v590_v21, %v563_v34  ;;  %v572_v37 = vmul.f32 0.5, %v557_v4 }
 0x1be   : > { %v626_v11 = vadd.f32 1.0, %v852_v9  ;;  %v565_v14 = vpop.f32.mrf.mxu3 }
 0x1bf   : > { %853 = vtanh.f32 %v611_v10  ;;  %v588_v15 = vmul.f32 %v580_v40, %v557_v4  ;;  %v566_v49 = vadd.f32 %v1154_v57, %v565_v14  ;;  %v606_v32 = vadd.f32 %v598_v31, %v563_v34 }
 0x1c0   : > { %v634_v58 = vmul.f32 %v626_v11, %v570_v39 }
 0x1c1   : > { %v596_v46 = vmul.f32 %v588_v15, %v557_v4  ;;  %v583_v27 = vmul.f32 0.044715, %v566_v49  ;;  %v614_v41 = vmul.f32 0.7978846, %v606_v32  ;;  %v575_v59 = vmul.f32 0.5, %v566_v49 }
 0x1c2   : > { %804 = vmatmul.msk.f32.gmra.mxu1 %vm647_vm11, %v634_v58 }
 0x1c3   : > { %v604_v17 = vadd.f32 %v596_v46, %v557_v4  ;;  %v591_v33 = vmul.f32 %v583_v27, %v566_v49 }
 0x1c5   : > { %v854_v23 = vpop.eup %853  ;;  %v612_v24 = vmul.f32 0.7978846, %v604_v17  ;;  %v599_v38 = vmul.f32 %v591_v33, %v566_v49 }
 0x1c6   : > { %v627_v26 = vadd.f32 1.0, %v854_v23 }
 0x1c7   : > { %855 = vtanh.f32 %v612_v24  ;;  %v607_v44 = vadd.f32 %v599_v38, %v566_v49 }
 0x1c8   : > { %v635_v19 = vmul.f32 %v627_v26, %v571_v25  ;;  %857 = vtanh.f32 %v613_v30 }
 0x1c9   : > { %859 = vtanh.f32 %v614_v41  ;;  %v615_v18 = vmul.f32 0.7978846, %v607_v44 }
 0x1ca   : > { %805 = vmatmul.msk.f32.gmra.mxu1 %vm647_vm11, %v635_v19 }
 0x1cb   : > { %861 = vtanh.f32 %v615_v18 }
 0x1cd   : > { %v856_v36 = vpop.eup %855 }
 0x1ce   : > { %v628_v57 = vadd.f32 1.0, %v856_v36  ;;  %v858_v43 = vpop.eup %857 }
 0x1cf   : > { %v629_v45 = vadd.f32 1.0, %v858_v43  ;;  %v860_v50 = vpop.eup %859 }
 0x1d0   : > { %v636_v35 = vmul.f32 %v628_v57, %v572_v37  ;;  %v630_v29 = vadd.f32 1.0, %v860_v50 }
 0x1d1   : > { %v637_v48 = vmul.f32 %v629_v45, %v573_v47  ;;  %v862_v54 = vpop.eup %861 }
 0x1d2   : > { %806 = vmatmul.msk.f32.vlgmr.msra.gmra.mxu2 %vm647_vm11, %v636_v35  ;;  %v638_v53 = vmul.f32 %v630_v29, %v574_v52  ;;  %v631_v56 = vadd.f32 1.0, %v862_v54 }
 0x1d4   : > { %v639_v60 = vmul.f32 %v631_v56, %v575_v59 }
 0x1da   : > { %807 = vmatmul.msk.f32.gmra.mxu2 %vm647_vm11, %v637_v48 }
 0x1e2   : > { %808 = vmatmul.msk.f32.gmra.mxu2 %vm647_vm11, %v638_v53 }
 0x1ea   : > { %809 = vmatmul.msk.f32.gmra.mxu2 %vm647_vm11, %v639_v60 }
 0x22d   : > { %v689_v61 = vpop.f32.mrf.mxu1 }
 0x22e   : > { %v690_v42 = vadd.f32 %v828_v51, %v689_v61 }
 0x230   : > { %v713_v62 = vadd.f32 %v690_v42, %v930_v1 }
 0x232   : > { %721 = vst.msk [vmem:[%s280_s29] sm:$0xff] %vm292_vm0, %v713_v62 }
 0x237   : > { %v692_v63 = vpop.f32.mrf.mxu1 }
 0x238   : > { %v693_v28 = vadd.f32 %v828_v51, %v692_v63 }
 0x23a   : > { %v714_v3 = vadd.f32 %v693_v28, %v942_v7 }
 0x23c   : > { %722 = vst.msk [vmem:[%s280_s29 + $0x8] sm:$0xff] %vm292_vm0, %v714_v3 }
 0x23f   : > { %v695_v34 = vpop.f32.mrf.mxu1 }
 0x240   : > { %v696_v4 = vadd.f32 %v828_v51, %v695_v34 }
 0x242   : > { %v715_v55 = vadd.f32 %v696_v4, %v928_v0 }
 0x244   : > { %723 = vst.msk [vmem:[%s280_s29 + $0x10] sm:$0xff] %vm292_vm0, %v715_v55 }
 0x247   : > { %v698_v5 = vpop.f32.mrf.mxu1 }
 0x248   : > { %v699_v9 = vadd.f32 %v828_v51, %v698_v5 }
 0x24a   : > { %v716_v40 = vadd.f32 %v699_v9, %v940_v6 }
 0x24c   : > { %724 = vst.msk [vmem:[%s280_s29 + $0x18] sm:$0xff] %vm292_vm0, %v716_v40 }
 0x255   : > { %v701_v1 = vpop.f32.mrf.mxu2 }
 0x256   : > { %v702_v10 = vadd.f32 %v828_v51, %v701_v1 }
 0x258   : > { %v717_v39 = vadd.f32 %v702_v10, %v932_v2 }
 0x25a   : > { %725 = vst.msk [vmem:[%s280_s29 + $0x20] sm:$0xff] %vm292_vm0, %v717_v39 }
 0x25d   : > { %v704_v7 = vpop.f32.mrf.mxu2 }
 0x25e   : > { %v705_v11 = vadd.f32 %v828_v51, %v704_v7 }
 0x260   : > { %v718_v22 = vadd.f32 %v705_v11, %v944_v8 }
 0x262   : > { %726 = vst.msk [vmem:[%s280_s29 + $0x28] sm:$0xff] %vm292_vm0, %v718_v22 }
 0x265   : > { %v707_v0 = vpop.f32.mrf.mxu2 }
 0x266   : > { %v708_v15 = vadd.f32 %v828_v51, %v707_v0 }
 0x268   : > { %v719_v16 = vadd.f32 %v708_v15, %v952_v12 }
 0x26a   : > { %727 = vst.msk [vmem:[%s280_s29 + $0x30] sm:$0xff] %vm292_vm0, %v719_v16 }
 0x26d   : > { %v710_v6 = vpop.f32.mrf.mxu2 }
 0x26e   : > { %v711_v14 = vadd.f32 %v828_v51, %v710_v6 }
 0x270   : > { %v720_v58 = vadd.f32 %v711_v14, %v954_v13 }
 0x272   : > { %728 = vst.msk [vmem:[%s280_s29 + $0x38] sm:$0xff] %vm292_vm0, %v720_v58 }
 0x273 PF: > { %s17_s24 = sadd.s32 1, %s869_s24  }
 0x274   : > { %p14_p4 = scmp.ge.s32.totalorder %s17_s24, 4  }
 0x276   :  { %16 = sbr.rel (!%p14_p4) target bundleno = 1 (0x1), region = 78 }

// kernel: custom_clip_forward.10
= control target key start
LH: loop header
LB: loop body
LE: loop exit
PB: predicated region body
PF: predicated region fallthrough
CT: control target
= control target key end

     0   :  { %vm26_vm0 = vcmask 261120   ;;  %v224_v8 = vmov 32.0   ;;  %vm185_vm14 = vcmask 130048   ;;  %s332_s0 = inlined_call_operand.vmem [shape: f32[32,32], index: 0, kind: input, shape index: {}]   ;;  %s333_s1 = inlined_call_operand.vmem [shape: f32[1,32], index: 1, kind: input, shape index: {}]   ;;  %s334_s2 = inlined_call_operand.vmem [shape: f32[1,32], index: 2, kind: input, shape index: {}]   ;;  %s335_s4 = inlined_call_operand.vmem [shape: f32[1,16], index: 4, kind: input, shape index: {}]   ;;  %s336_s3 = inlined_call_operand.vmem [shape: f32[32,16], index: 3, kind: input, shape index: {}]   ;;  %s337_s5 = inlined_call_operand.vmem [shape: f32[32,16], index: 5, kind: output, shape index: {}]  }
   0x1   :  { %v22_v0 = vld [vmem:[%s332_s0 + $0x10] sm:$0xff]  ;;  %v20_v1 = vld [vmem:[%s332_s0] sm:$0xff]  ;;  %v23_v4 = vld [vmem:[%s332_s0 + $0x18] sm:$0xff]  ;;  %214 = vrcp.f32 %v224_v8 }
   0x2   :  { %v33_v2 = vsel %vm26_vm0, %v22_v0, 0.0  ;;  %v27_v3 = vsel %vm26_vm0, %v20_v1, 0.0  ;;  %v21_v5 = vld [vmem:[%s332_s0 + $0x8] sm:$0xff]  ;;  %v36_v6 = vsel %vm26_vm0, %v23_v4, 0.0  ;;  %v139_v35 = vld [vmem:[%s336_s3 + $0x18] sm:$0xff]  ;;  %v138_v36 = vld [vmem:[%s336_s3 + $0x10] sm:$0xff] }
   0x3   :  { %34 = vadd.xlane.f32.xlu0 %v33_v2  ;;  %28 = vadd.xlane.f32.xlu1 %v27_v3  ;;  %v30_v7 = vsel %vm26_vm0, %v21_v5, 0.0  ;;  %v137_v37 = vld [vmem:[%s336_s3 + $0x8] sm:$0xff]  ;;  %v136_v38 = vld [vmem:[%s336_s3] sm:$0xff] }
   0x4   :  { %168 = vmatpush.msra.mxu0 %v139_v35  ;;  %199 = vmatpush.msra.mxu2 %v139_v35  ;;  %v211_v3 = vld [vmem:[%s333_s1] ss:$0 sm:$0xff] }
   0x5   :  { %198 = vmatpush.msra.mxu1 %v139_v35  ;;  %200 = vmatpush.msra.mxu3 %v139_v35  ;;  %v212_v8 = vld [vmem:[%s334_s2] ss:$0 sm:$0xff] }
   0x6   :  { %169 = vmatpush.msra.mxu0 %v138_v36  ;;  %202 = vmatpush.msra.mxu2 %v138_v36 }
   0x7   :  { %v215_v9 = vpop.eup %214  ;;  %201 = vmatpush.msra.mxu1 %v138_v36  ;;  %203 = vmatpush.msra.mxu3 %v138_v36 }
   0x8   :  { %v40_v10 = vmul.f32 32.0, %v215_v9  ;;  %vm44_vm1 = vweird.f32 %v215_v9  ;;  %170 = vmatpush.msra.mxu0 %v137_v37  ;;  %205 = vmatpush.msra.mxu2 %v137_v37 }
   0x9   :  { %204 = vmatpush.msra.mxu1 %v137_v37  ;;  %206 = vmatpush.msra.mxu3 %v137_v37 }
   0xa   :  { %v41_v11 = vsub.f32 1.0, %v40_v10  ;;  %171 = vmatpush.msra.mxu0 %v136_v38  ;;  %208 = vmatpush.msra.mxu2 %v136_v38 }
   0xb   :  { %37 = vadd.xlane.f32.xlu0 %v36_v6  ;;  %31 = vadd.xlane.f32.xlu1 %v30_v7 }
   0xc   :  { %v42_v12 = vmul.f32 %v215_v9, %v41_v11  ;;  %207 = vmatpush.msra.mxu1 %v136_v38  ;;  %209 = vmatpush.msra.mxu3 %v136_v38 }
   0xe   :  { %v43_v13 = vadd.f32 %v215_v9, %v42_v12 }
  0x10   :  { %v45_v14 = vsel %vm44_vm1, %v215_v9, %v43_v13 }
  0x76   :  { %v35_v15 = vpop.xlane.xlu0 %34  ;;  %v29_v16 = vpop.xlane.xlu1 %28 }
  0x77   :  { %v48_v17 = vmul.f32 %v45_v14, %v35_v15  ;;  %v46_v18 = vmul.f32 %v45_v14, %v29_v16 }
  0x79   :  { %v271_v19 = vsub.f32 %v22_v0, %v48_v17  ;;  %v273_v20 = vsub.f32 %v20_v1, %v46_v18 }
  0x7b   :  { %v56_v21 = vmul.f32 %v271_v19, %v271_v19  ;;  %v54_v22 = vmul.f32 %v273_v20, %v273_v20 }
  0x7d   :  { %v64_v23 = vsel %vm26_vm0, %v56_v21, 0.0  ;;  %v58_v24 = vsel %vm26_vm0, %v54_v22, 0.0 }
  0x7e   :  { %65 = vadd.xlane.f32.xlu2 %v64_v23  ;;  %v38_v25 = vpop.xlane.xlu0 %37  ;;  %59 = vadd.xlane.f32.xlu0 %v58_v24  ;;  %v32_v26 = vpop.xlane.xlu1 %31 }
  0x7f   :  { %v49_v27 = vmul.f32 %v45_v14, %v38_v25  ;;  %v47_v28 = vmul.f32 %v45_v14, %v32_v26 }
  0x81   :  { %v281_v29 = vsub.f32 %v23_v4, %v49_v27  ;;  %v283_v30 = vsub.f32 %v21_v5, %v47_v28 }
  0x83   :  { %v57_v31 = vmul.f32 %v281_v29, %v281_v29  ;;  %v55_v32 = vmul.f32 %v283_v30, %v283_v30 }
  0x85   :  { %v67_v33 = vsel %vm26_vm0, %v57_v31, 0.0  ;;  %v61_v34 = vsel %vm26_vm0, %v55_v32, 0.0  ;;  %v213_v31 = vld [vmem:[%s335_s4] ss:$0 sm:$0xff] }
  0x86   :  { %68 = vadd.xlane.f32.xlu2 %v67_v33  ;;  %62 = vadd.xlane.f32.xlu1 %v61_v34 }
  0xf1   :  { %v66_v39 = vpop.xlane.xlu2 %65  ;;  %v60_v40 = vpop.xlane.xlu0 %59 }
  0xf2   :  { %v72_v41 = vmul.f32 %v66_v39, %v45_v14  ;;  %v70_v42 = vmul.f32 %v60_v40, %v45_v14 }
  0xf4   :  { %v76_v43 = vadd.f32 1e-06, %v72_v41  ;;  %v74_v44 = vadd.f32 1e-06, %v70_v42 }
  0xf6   :  { %216 = vrsqrt.f32 %v76_v43  ;;  %vm84_vm3 = vweird.f32 %v74_v44  ;;  %vm104_vm5 = vweird.f32 %v76_v43 }
  0xf7   :  { %218 = vrsqrt.f32 %v74_v44 }
  0xf9   :  { %v69_v45 = vpop.xlane.xlu2 %68  ;;  %v63_v46 = vpop.xlane.xlu1 %62 }
  0xfa   :  { %v73_v47 = vmul.f32 %v69_v45, %v45_v14  ;;  %v71_v48 = vmul.f32 %v63_v46, %v45_v14 }
  0xfc   :  { %v217_v49 = vpop.eup %216  ;;  %v77_v50 = vadd.f32 1e-06, %v73_v47  ;;  %v75_v51 = vadd.f32 1e-06, %v71_v48 }
  0xfd   :  { %v219_v52 = vpop.eup %218  ;;  %v99_v53 = vmul.f32 %v217_v49, %v76_v43  ;;  %vm105_vm2 = vweird.f32 %v217_v49 }
  0xfe   :  { %v79_v54 = vmul.f32 %v219_v52, %v74_v44  ;;  %220 = vrsqrt.f32 %v77_v50  ;;  %vm85_vm4 = vweird.f32 %v219_v52  ;;  %vm106_vm6 = vmor %vm104_vm5, %vm105_vm2  ;;  %vm94_vm9 = vweird.f32 %v75_v51 }
  0xff   :  { %v100_v55 = vmul.f32 %v217_v49, %v99_v53  ;;  %222 = vrsqrt.f32 %v75_v51  ;;  %vm86_vm7 = vmor %vm84_vm3, %vm85_vm4  ;;  %vm114_vm11 = vweird.f32 %v77_v50 }
 0x100   :  { %v80_v56 = vmul.f32 %v219_v52, %v79_v54 }
 0x101   :  { %v101_v57 = vmul.f32 0.5, %v100_v55 }
 0x102   :  { %v81_v58 = vmul.f32 0.5, %v80_v56 }
 0x103   :  { %v102_v59 = vsub.f32 1.5, %v101_v57 }
 0x104   :  { %v221_v60 = vpop.eup %220  ;;  %v82_v61 = vsub.f32 1.5, %v81_v58 }
 0x105   :  { %v223_v62 = vpop.eup %222  ;;  %v103_v63 = vmul.f32 %v217_v49, %v102_v59  ;;  %v109_v0 = vmul.f32 %v221_v60, %v77_v50  ;;  %vm115_vm8 = vweird.f32 %v221_v60 }
 0x106   :  { %v83_v1 = vmul.f32 %v219_v52, %v82_v61  ;;  %v89_v2 = vmul.f32 %v223_v62, %v75_v51  ;;  %vm95_vm10 = vweird.f32 %v223_v62  ;;  %vm116_vm12 = vmor %vm114_vm11, %vm115_vm8 }
 0x107   :  { %v107_v4 = vsel %vm106_vm6, %v217_v49, %v103_v63  ;;  %v110_v5 = vmul.f32 %v221_v60, %v109_v0  ;;  %vm96_vm13 = vmor %vm94_vm9, %vm95_vm10 }
 0x108   :  { %v87_v6 = vsel %vm86_vm7, %v219_v52, %v83_v1  ;;  %v90_v7 = vmul.f32 %v223_v62, %v89_v2  ;;  %v120_v9 = vmul.f32 %v107_v4, %v271_v19 }
 0x109   :  { %v111_v10 = vmul.f32 0.5, %v110_v5  ;;  %v118_v11 = vmul.f32 %v87_v6, %v273_v20 }
 0x10a   :  { %v91_v12 = vmul.f32 0.5, %v90_v7  ;;  %v127_v13 = vmul.f32 %v211_v3, %v120_v9 }
 0x10b   :  { %v112_v14 = vsub.f32 1.5, %v111_v10  ;;  %v125_v15 = vmul.f32 %v211_v3, %v118_v11 }
 0x10c   :  { %v92_v16 = vsub.f32 1.5, %v91_v12  ;;  %v134_v17 = vadd.f32 %v212_v8, %v127_v13 }
 0x10d   :  { %v113_v18 = vmul.f32 %v221_v60, %v112_v14  ;;  %v132_v21 = vadd.f32 %v212_v8, %v125_v15 }
 0x10e   :  { %v93_v22 = vmul.f32 %v223_v62, %v92_v16  ;;  %196 = vmatmul.msk.f32.vlgmr.msra.gmra.mxu2 %vm26_vm0, %v134_v17 }
 0x10f   :  { %v117_v19 = vsel %vm116_vm12, %v221_v60, %v113_v18  ;;  %194 = vmatmul.msk.f32.vlgmr.msra.gmra.mxu0 %vm26_vm0, %v132_v21 }
 0x110   :  { %v97_v20 = vsel %vm96_vm13, %v223_v62, %v93_v22  ;;  %v121_v23 = vmul.f32 %v117_v19, %v281_v29 }
 0x111   :  { %v119_v24 = vmul.f32 %v97_v20, %v283_v30 }
 0x112   :  { %v128_v25 = vmul.f32 %v211_v3, %v121_v23 }
 0x113   :  { %v126_v26 = vmul.f32 %v211_v3, %v119_v24 }
 0x114   :  { %v135_v27 = vadd.f32 %v212_v8, %v128_v25 }
 0x115   :  { %v133_v28 = vadd.f32 %v212_v8, %v126_v26 }
 0x116   :  { %197 = vmatmul.msk.f32.vlgmr.msra.gmra.mxu3 %vm26_vm0, %v135_v27 }
 0x117   :  { %195 = vmatmul.msk.f32.vlgmr.msra.gmra.mxu1 %vm26_vm0, %v133_v28 }
 0x18c   :  { %v173_v32 = vpop.f32.mrf.mxu0 }
 0x18d   :  { %v174_v33 = vadd.f32 %v213_v31, %v173_v32 }
 0x18f   :  { %186 = vst.msk [vmem:[%s337_s5] sm:$0xff] %vm185_vm14, %v174_v33 }
 0x191   :  { %v179_v29 = vpop.f32.mrf.mxu2 }
 0x192   :  { %v180_v30 = vadd.f32 %v213_v31, %v179_v29 }
 0x194   :  { %188 = vst.msk [vmem:[%s337_s5 + $0x10] sm:$0xff] %vm185_vm14, %v180_v30  ;;  %v176_v34 = vpop.f32.mrf.mxu1 }
 0x195   :  { %v177_v35 = vadd.f32 %v213_v31, %v176_v34 }
 0x197   :  { %187 = vst.msk [vmem:[%s337_s5 + $0x8] sm:$0xff] %vm185_vm14, %v177_v35 }
 0x199   :  { %v182_v36 = vpop.f32.mrf.mxu3 }
 0x19a   :  { %v183_v37 = vadd.f32 %v213_v31, %v182_v36 }
 0x19c   :  { %189 = vst.msk [vmem:[%s337_s5 + $0x18] sm:$0xff] %vm185_vm14, %v183_v37 }

// kernel: custom_clip_forward.11
= control target key start
LH: loop header
LB: loop body
LE: loop exit
PB: predicated region body
PF: predicated region fallthrough
CT: control target
= control target key end

     0   :  { %s596_s24 = smov 0   ;;  %s674_s0 = inlined_call_operand.vmem [shape: f32[32,16], index: 0, kind: input, shape index: {}]   ;;  %s675_s1 = inlined_call_operand.vmem [shape: f32[1,16], index: 1, kind: input, shape index: {}]   ;;  %s676_s2 = inlined_call_operand.vmem [shape: f32[1,16], index: 2, kind: input, shape index: {}]   ;;  %s677_s3 = inlined_call_operand.vmem [shape: f32[16,48], index: 3, kind: input, shape index: {}]   ;;  %s678_s4 = inlined_call_operand.vmem [shape: f32[1,48], index: 4, kind: input, shape index: {}]   ;;  %s679_s5 = inlined_call_operand.vmem [shape: f32[48,16], index: 5, kind: input, shape index: {}]   ;;  %s680_s6 = inlined_call_operand.vmem [shape: f32[1,16], index: 6, kind: input, shape index: {}]   ;;  %s681_s7 = inlined_call_operand.vmem [shape: f32[32,16], index: 7, kind: output, shape index: {}]  }
   0x1 LB: > { %s501_s25 = sadd.s32 4294967295, %s553_s24   ;;  %p505_p0 = scmp.ge.s32.totalorder %s553_s24, 1  ;;  %s553_s24 = sphi %s596_s24, %s17_s24  }
   0x2   : > { %p238_p1 = scmp.lt.s32.totalorder %s553_s24, 3 }
   0x4   : > { %p239_p2 = pnand %p505_p0, %p238_p1 }
   0x5   : > { %s506_s26 = sshll.u32 (!%p239_p2), %s501_s25, 1 }
   0x6   : > { %242 = sbr.rel (%p239_p2) target bundleno = 575 (0x23f), region = 48  ;;  %p271_p3 = scmp.lt.s32.totalorder (!%p239_p2), %s506_s26, 3 }
   0xb   : > { %s683_s26 = smov (!%p271_p3, %s506_s26), 3  ;;  %vm286_vm0 = vcmask 130048   ;;  %v555_v4 = vmov 16.0   ;;  %v349_v21 = vld [vmem:[%s677_s3 + $0x8] sm:$0xff]  ;;  %v348_v22 = vld [vmem:[%s677_s3] sm:$0xff]  ;;  %v404_v53 = vld [vmem:[%s679_s5 + $0x18] sm:$0xff] }
   0xc   : > { %s507_s27 = sshll.u32 %s683_s26, 3  ;;  %537 = vrcp.f32 %v555_v4  ;;  %516 = vmatpush.msra.mxu3 %v349_v21  ;;  %374 = vmatpush.msra.mxu0 %v349_v21  ;;  %v533_v37 = vld [vmem:[%s675_s1] ss:$0 sm:$0xff]  ;;  %v406_v51 = vld [vmem:[%s679_s5 + $0x28] sm:$0xff]  ;;  %v403_v54 = vld [vmem:[%s679_s5 + $0x10] sm:$0xff]  ;;  %vm411_vm8 = vcmask 392192  }
   0xd   : > { %s274_s30 = scalar_lea.vmem %s674_s0, %s507_s27  ;;  %v534_v41 = vld [vmem:[%s676_s2] ss:$0 sm:$0xff]  ;;  %518 = vmatpush.msra.mxu2 %v406_v51  ;;  %428 = vmatpush.msra.mxu1 %v406_v51  ;;  %v402_v55 = vld [vmem:[%s679_s5 + $0x8] sm:$0xff]  ;;  %s280_s14 = scalar_lea.vmem %s681_s7, %s507_s27 }
   0xe   : > { %v612_v0 = vld [vmem:[%s274_s30 + $0x8] sm:$0xff]  ;;  %v616_v2 = vld [vmem:[%s274_s30] sm:$0xff]  ;;  %517 = vmatpush.msra.mxu3 %v348_v22  ;;  %375 = vmatpush.msra.mxu0 %v348_v22 }
   0xf   : > { %v290_v1 = vsel %vm286_vm0, %v612_v0, 0.0  ;;  %v287_v3 = vsel %vm286_vm0, %v616_v2, 0.0  ;;  %v405_v52 = vld [vmem:[%s679_s5 + $0x20] sm:$0xff] }
  0x10   : > { %291 = vadd.xlane.f32.xlu0 %v290_v1  ;;  %519 = vmatpush.msra.mxu2 %v405_v52  ;;  %v401_v56 = vld [vmem:[%s679_s5] sm:$0xff] }
  0x11   : > { %429 = vmatpush.msra.mxu1 %v405_v52  ;;  %v535_v57 = vld [vmem:[%s678_s4] ss:$0 sm:$0xff] }
  0x12   : > { %v538_v5 = vpop.eup %537  ;;  %520 = vmatpush.msra.mxu2 %v404_v53 }
  0x13   : > { %v294_v6 = vmul.f32 16.0, %v538_v5  ;;  %vm298_vm1 = vweird.f32 %v538_v5  ;;  %430 = vmatpush.msra.mxu1 %v404_v53 }
  0x14   : > { %521 = vmatpush.msra.mxu2 %v403_v54 }
  0x15   : > { %v295_v7 = vsub.f32 1.0, %v294_v6  ;;  %431 = vmatpush.msra.mxu1 %v403_v54 }
  0x16   : > { %522 = vmatpush.msra.mxu2 %v402_v55 }
  0x17   : > { %v296_v8 = vmul.f32 %v538_v5, %v295_v7  ;;  %432 = vmatpush.msra.mxu1 %v402_v55 }
  0x18   : > { %288 = vadd.xlane.f32.xlu0 %v287_v3  ;;  %523 = vmatpush.msra.mxu2 %v401_v56 }
  0x19   : > { %v297_v9 = vadd.f32 %v538_v5, %v296_v8  ;;  %433 = vmatpush.msra.mxu1 %v401_v56 }
  0x1b   : > { %v299_v10 = vsel %vm298_vm1, %v538_v5, %v297_v9 }
  0x83   : > { %v292_v11 = vpop.xlane.xlu0 %291 }
  0x84   : > { %v301_v12 = vmul.f32 %v299_v10, %v292_v11 }
  0x86   : > { %v303_v13 = vsub.f32 %v612_v0, %v301_v12 }
  0x88   : > { %v305_v14 = vmul.f32 %v303_v13, %v303_v13 }
  0x8a   : > { %v309_v15 = vsel %vm286_vm0, %v305_v14, 0.0 }
  0x8b   : > { %310 = vadd.xlane.f32.xlu1 %v309_v15  ;;  %v289_v16 = vpop.xlane.xlu0 %288 }
  0x8c   : > { %v300_v17 = vmul.f32 %v299_v10, %v289_v16 }
  0x8e   : > { %v302_v18 = vsub.f32 %v616_v2, %v300_v17 }
  0x90   : > { %v304_v19 = vmul.f32 %v302_v18, %v302_v18 }
  0x92   : > { %v306_v20 = vsel %vm286_vm0, %v304_v19, 0.0 }
  0x93   : > { %307 = vadd.xlane.f32.xlu1 %v306_v20 }
  0xfe   : > { %v311_v23 = vpop.xlane.xlu1 %310 }
  0xff   : > { %v313_v24 = vmul.f32 %v311_v23, %v299_v10 }
 0x101   : > { %v315_v25 = vadd.f32 1e-06, %v313_v24 }
 0x103   : > { %539 = vrsqrt.f32 %v315_v25  ;;  %vm332_vm3 = vweird.f32 %v315_v25 }
 0x106   : > { %v308_v26 = vpop.xlane.xlu1 %307 }
 0x107   : > { %v312_v27 = vmul.f32 %v308_v26, %v299_v10 }
 0x109   : > { %v540_v28 = vpop.eup %539  ;;  %v314_v29 = vadd.f32 1e-06, %v312_v27 }
 0x10a   : > { %v327_v30 = vmul.f32 %v540_v28, %v315_v25  ;;  %vm333_vm2 = vweird.f32 %v540_v28 }
 0x10b   : > { %541 = vrsqrt.f32 %v314_v29  ;;  %vm334_vm4 = vmor %vm332_vm3, %vm333_vm2  ;;  %vm322_vm6 = vweird.f32 %v314_v29 }
 0x10c   : > { %v328_v31 = vmul.f32 %v540_v28, %v327_v30 }
 0x10e   : > { %v329_v32 = vmul.f32 0.5, %v328_v31 }
 0x110   : > { %v330_v33 = vsub.f32 1.5, %v329_v32 }
 0x111   : > { %v542_v34 = vpop.eup %541 }
 0x112   : > { %v331_v35 = vmul.f32 %v540_v28, %v330_v33  ;;  %v317_v36 = vmul.f32 %v542_v34, %v314_v29  ;;  %vm323_vm5 = vweird.f32 %v542_v34 }
 0x113   : > { %vm324_vm7 = vmor %vm322_vm6, %vm323_vm5 }
 0x114   : > { %v335_v38 = vsel %vm334_vm4, %v540_v28, %v331_v35  ;;  %v318_v39 = vmul.f32 %v542_v34, %v317_v36 }
 0x115   : > { %v337_v40 = vmul.f32 %v335_v38, %v303_v13 }
 0x116   : > { %v319_v42 = vmul.f32 0.5, %v318_v39 }
 0x117   : > { %v342_v43 = vmul.f32 %v533_v37, %v337_v40 }
 0x118   : > { %v320_v44 = vsub.f32 1.5, %v319_v42 }
 0x119   : > { %v347_v45 = vadd.f32 %v534_v41, %v342_v43 }
 0x11a   : > { %v321_v46 = vmul.f32 %v542_v34, %v320_v44 }
 0x11b   : > { %511 = vmatmul.msk.f32.vlgmr.msra.gmra.mxu3 %vm286_vm0, %v347_v45 }
 0x11c   : > { %v325_v47 = vsel %vm324_vm7, %v542_v34, %v321_v46 }
 0x11d   : > { %v336_v48 = vmul.f32 %v325_v47, %v302_v18  ;;  %v536_v18 = vld [vmem:[%s680_s6] ss:$0 sm:$0xff] }
 0x11f   : > { %v341_v49 = vmul.f32 %v533_v37, %v336_v48 }
 0x121   : > { %v346_v50 = vadd.f32 %v534_v41, %v341_v49 }
 0x123   : > { %510 = vmatmul.msk.f32.vlgmr.msra.gmra.mxu0 %vm286_vm0, %v346_v50 }
 0x19e   : > { %v380_v58 = vpop.f32.mrf.mxu3 }
 0x19f   : > { %v381_v59 = vadd.f32 %v535_v57, %v380_v58 }
 0x1a0   : > { %v377_v60 = vpop.f32.mrf.mxu0 }
 0x1a1   : > { %v386_v61 = vmul.f32 0.044715, %v381_v59  ;;  %v378_v62 = vadd.f32 %v535_v57, %v377_v60  ;;  %v384_v11 = vmul.f32 0.5, %v381_v59 }
 0x1a3   : > { %v385_v63 = vmul.f32 0.044715, %v378_v62  ;;  %v388_v1 = vmul.f32 %v386_v61, %v381_v59  ;;  %v383_v15 = vmul.f32 0.5, %v378_v62 }
 0x1a5   : > { %v390_v3 = vmul.f32 %v388_v1, %v381_v59  ;;  %v387_v4 = vmul.f32 %v385_v63, %v378_v62 }
 0x1a7   : > { %v392_v5 = vadd.f32 %v390_v3, %v381_v59  ;;  %v389_v6 = vmul.f32 %v387_v4, %v378_v62 }
 0x1a9   : > { %v394_v7 = vmul.f32 0.7978846, %v392_v5  ;;  %v391_v8 = vadd.f32 %v389_v6, %v378_v62 }
 0x1ab   : > { %543 = vtanh.f32 %v394_v7  ;;  %v393_v9 = vmul.f32 0.7978846, %v391_v8 }
 0x1ad   : > { %545 = vtanh.f32 %v393_v9 }
 0x1b1   : > { %v544_v10 = vpop.eup %543 }
 0x1b2   : > { %v398_v12 = vadd.f32 1.0, %v544_v10 }
 0x1b3   : > { %v546_v13 = vpop.eup %545 }
 0x1b4   : > { %v400_v14 = vmul.f32 %v398_v12, %v384_v11  ;;  %v397_v16 = vadd.f32 1.0, %v546_v13 }
 0x1b6   : > { %513 = vmatmul.msk.f32.vlgmr.msra.gmra.mxu2 %vm411_vm8, %v400_v14  ;;  %v399_v17 = vmul.f32 %v397_v16, %v383_v15 }
 0x1b8   : > { %512 = vmatmul.msk.f32.vlgmr.msra.gmra.mxu1 %vm411_vm8, %v399_v17 }
 0x235   : > { %v435_v19 = vpop.f32.mrf.mxu1 }
 0x236   : > { %v436_v20 = vadd.f32 %v536_v18, %v435_v19 }
 0x238   : > { %v441_v21 = vadd.f32 %v436_v20, %v616_v2 }
 0x239   : > { %v438_v22 = vpop.f32.mrf.mxu2 }
 0x23a   : > { %443 = vst.msk [vmem:[%s280_s14] sm:$0xff] %vm286_vm0, %v441_v21  ;;  %v439_v23 = vadd.f32 %v536_v18, %v438_v22 }
 0x23c   : > { %v442_v24 = vadd.f32 %v439_v23, %v612_v0 }
 0x23e   : > { %444 = vst.msk [vmem:[%s280_s14 + $0x8] sm:$0xff] %vm286_vm0, %v442_v24 }
 0x23f PF: > { %s17_s24 = sadd.s32 1, %s553_s24  }
 0x240   : > { %p14_p4 = scmp.ge.s32.totalorder %s17_s24, 4  }
 0x242   :  { %16 = sbr.rel (!%p14_p4) target bundleno = 1 (0x1), region = 78 }

// kernel: custom_clip_forward.12
= control target key start
LH: loop header
LB: loop body
LE: loop exit
PB: predicated region body
PF: predicated region fallthrough
CT: control target
= control target key end

     0   :  { %vm23_vm0 = vcmask 523264   ;;  %v111_v2 = vmov 64.0   ;;  %vm96_vm5 = vcmask 261120   ;;  %s184_s0 = inlined_call_operand.vmem [shape: f32[8,64], index: 0, kind: input, shape index: {}]   ;;  %s185_s1 = inlined_call_operand.vmem [shape: f32[1,64], index: 1, kind: input, shape index: {}]   ;;  %s186_s2 = inlined_call_operand.vmem [shape: f32[1,64], index: 2, kind: input, shape index: {}]   ;;  %s187_s4 = inlined_call_operand.vmem [shape: f32[1,32], index: 4, kind: input, shape index: {}]   ;;  %s188_s3 = inlined_call_operand.vmem [shape: f32[64,32], index: 3, kind: input, shape index: {}]   ;;  %s189_s5 = inlined_call_operand.vmem [shape: f32[8,32], index: 5, kind: output, shape index: {}]  }
   0x1   :  { %v20_v0 = vld [vmem:[%s184_s0] sm:$0xff]  ;;  %107 = vrcp.f32 %v111_v2  ;;  %v68_v14 = vld [vmem:[%s188_s3 + $0x38] sm:$0xff]  ;;  %v67_v15 = vld [vmem:[%s188_s3 + $0x30] sm:$0xff] }
   0x2   :  { %v24_v1 = vsel %vm23_vm0, %v20_v0, 0.0  ;;  %84 = vmatpush.msra.mxu0 %v68_v14  ;;  %v66_v16 = vld [vmem:[%s188_s3 + $0x28] sm:$0xff]  ;;  %v65_v17 = vld [vmem:[%s188_s3 + $0x20] sm:$0xff]  ;;  %v64_v18 = vld [vmem:[%s188_s3 + $0x18] sm:$0xff] }
   0x3   :  { %25 = vadd.xlane.f32.xlu0 %v24_v1  ;;  %v63_v19 = vld [vmem:[%s188_s3 + $0x10] sm:$0xff]  ;;  %v62_v20 = vld [vmem:[%s188_s3 + $0x8] sm:$0xff]  ;;  %v61_v21 = vld [vmem:[%s188_s3] sm:$0xff] }
   0x4   :  { %85 = vmatpush.msra.mxu0 %v67_v15  ;;  %v104_v31 = vld [vmem:[%s185_s1] ss:$0 sm:$0xff] }
   0x5   :  { %v105_v34 = vld [vmem:[%s186_s2] ss:$0 sm:$0xff] }
   0x6   :  { %86 = vmatpush.msra.mxu0 %v66_v16  ;;  %v106_v37 = vld [vmem:[%s187_s4] ss:$0 sm:$0xff] }
   0x7   :  { %v108_v3 = vpop.eup %107 }
   0x8   :  { %v28_v4 = vmul.f32 64.0, %v108_v3  ;;  %vm32_vm1 = vweird.f32 %v108_v3  ;;  %87 = vmatpush.msra.mxu0 %v65_v17 }
   0xa   :  { %v29_v5 = vsub.f32 1.0, %v28_v4  ;;  %88 = vmatpush.msra.mxu0 %v64_v18 }
   0xc   :  { %v30_v6 = vmul.f32 %v108_v3, %v29_v5  ;;  %89 = vmatpush.msra.mxu0 %v63_v19 }
   0xe   :  { %v31_v7 = vadd.f32 %v108_v3, %v30_v6  ;;  %90 = vmatpush.msra.mxu0 %v62_v20 }
  0x10   :  { %v33_v8 = vsel %vm32_vm1, %v108_v3, %v31_v7  ;;  %91 = vmatpush.msra.mxu0 %v61_v21 }
  0x76   :  { %v26_v9 = vpop.xlane.xlu0 %25 }
  0x77   :  { %v34_v10 = vmul.f32 %v33_v8, %v26_v9 }
  0x79   :  { %v35_v11 = vsub.f32 %v20_v0, %v34_v10 }
  0x7b   :  { %v36_v12 = vmul.f32 %v35_v11, %v35_v11 }
  0x7d   :  { %v37_v13 = vsel %vm23_vm0, %v36_v12, 0.0 }
  0x7e   :  { %38 = vadd.xlane.f32.xlu0 %v37_v13 }
  0xf1   :  { %v39_v22 = vpop.xlane.xlu0 %38 }
  0xf2   :  { %v40_v23 = vmul.f32 %v39_v22, %v33_v8 }
  0xf4   :  { %v41_v24 = vadd.f32 1e-06, %v40_v23 }
  0xf6   :  { %109 = vrsqrt.f32 %v41_v24  ;;  %vm48_vm3 = vweird.f32 %v41_v24 }
  0xfc   :  { %v110_v25 = vpop.eup %109 }
  0xfd   :  { %v43_v26 = vmul.f32 %v110_v25, %v41_v24  ;;  %vm49_vm2 = vweird.f32 %v110_v25 }
  0xfe   :  { %vm50_vm4 = vmor %vm48_vm3, %vm49_vm2 }
  0xff   :  { %v44_v27 = vmul.f32 %v110_v25, %v43_v26 }
 0x101   :  { %v45_v28 = vmul.f32 0.5, %v44_v27 }
 0x103   :  { %v46_v29 = vsub.f32 1.5, %v45_v28 }
 0x105   :  { %v47_v30 = vmul.f32 %v110_v25, %v46_v29 }
 0x107   :  { %v51_v32 = vsel %vm50_vm4, %v110_v25, %v47_v30 }
 0x108   :  { %v52_v33 = vmul.f32 %v51_v32, %v35_v11 }
 0x10a   :  { %v56_v35 = vmul.f32 %v104_v31, %v52_v33 }
 0x10c   :  { %v60_v36 = vadd.f32 %v105_v34, %v56_v35 }
 0x10e   :  { %102 = vmatmul.msk.f32.vlgmr.msra.gmra.mxu0 %vm23_vm0, %v60_v36 }
 0x18b   :  { %v93_v38 = vpop.f32.mrf.mxu0 }
 0x18c   :  { %v94_v39 = vadd.f32 %v106_v37, %v93_v38 }
 0x18e   :  { %97 = vst.msk [vmem:[%s189_s5] sm:$0xff] %vm96_vm5, %v94_v39 }

// kernel: custom_clip_forward.15
= control target key start
LH: loop header
LB: loop body
LE: loop exit
PB: predicated region body
PF: predicated region fallthrough
CT: control target
= control target key end

     0   :  { %vm23_vm0 = vcmask 257024   ;;  %v259_v4 = vmov 4.0   ;;  %s332_s0 = inlined_call_operand.vmem [shape: f32[2,4,32], index: 0, kind: input, shape index: {}]   ;;  %s333_s1 = inlined_call_operand.vmem [shape: f32[1,32], index: 1, kind: input, shape index: {}]   ;;  %s334_s2 = inlined_call_operand.vmem [shape: f32[1,32], index: 2, kind: input, shape index: {}]   ;;  %s335_s3 = inlined_call_operand.vmem [shape: f32[32,10], index: 3, kind: input, shape index: {}]   ;;  %s336_s4 = inlined_call_operand.vmem [shape: f32[1,10], index: 4, kind: input, shape index: {}]   ;;  %s337_s5 = inlined_call_operand.hbm [shape: f32[2,10], index: 5, kind: output, shape index: {}]  }
   0x1   :  { %v21_v0 = vld [vmem:[%s332_s0] sm:$0xf]  ;;  %v22_v1 = vld [vmem:[%s332_s0 + $0x4] sm:$0xf]  ;;  %223 = vrcp.f32 %v259_v4 }
   0x2   :  { %v24_v2 = vsel %vm23_vm0, %v21_v0, 0.0  ;;  %v31_v3 = vsel %vm23_vm0, %v22_v1, 0.0 }
   0x3   :  { %v25_v5 = vrot.slane %v24_v2, 4  ;;  %v32_v6 = vrot.slane %v31_v3, 4 }
   0x4   :  { %10 = vsyncpa [#allocation3], 0  ;;  %vm49_vm2 = vcmask 1041409   ;;  %vm52_vm3 = vcmask 254976   ;;  %v260_v27 = vmov 32.0   ;;  %v165_v44 = vld [vmem:[%s335_s3 + $0x18] sm:$0xff] }
   0x5   :  { %v26_v7 = vadd.f32 %v25_v5, %v24_v2  ;;  %v33_v8 = vadd.f32 %v32_v6, %v31_v3  ;;  %225 = vrcp.f32 %v260_v27  ;;  %v164_v45 = vld [vmem:[%s335_s3 + $0x10] sm:$0xff]  ;;  %189 = vmatpush.msra.mxu0 %v165_v44  ;;  %v163_v46 = vld [vmem:[%s335_s3 + $0x8] sm:$0xff]  ;;  %v162_v47 = vld [vmem:[%s335_s3] sm:$0xff]  ;;  %v261_v56 = vmov 2.0   ;;  %s262_s7 = smov [#allocation2]   ;;  %s206_s11 = sshll.u32 %s337_s5, 4  ;;  %s207_s11 = int_to_ptr.hbm [resolvable:$true] %s206_s11 }
   0x6   :  { %v220_v59 = vld [vmem:[%s333_s1] ss:$0 sm:$0xff]  ;;  %vm174_vm12 = vcmask 261120   ;;  %s204_s8 = sshll.u32 %s262_s7, 4  ;;  %vm197_vm13 = vcmask 74752   ;;  %s205_s8 = int_to_ptr.vmem [resolvable:$true] %s204_s8 }
   0x7   :  { %v27_v9 = vrot.slane %v26_v7, 2  ;;  %v34_v10 = vrot.slane %v33_v8, 2  ;;  %v224_v11 = vpop.eup %223  ;;  %190 = vmatpush.msra.mxu0 %v164_v45  ;;  %v221_v2 = vld [vmem:[%s334_s2] ss:$0 sm:$0xff] }
   0x8   :  { %v39_v14 = vmul.f32 4.0, %v224_v11  ;;  %vm43_vm1 = vweird.f32 %v224_v11 }
   0x9   :  { %v28_v12 = vadd.f32 %v27_v9, %v26_v7  ;;  %v35_v13 = vadd.f32 %v34_v10, %v33_v8  ;;  %191 = vmatpush.msra.mxu0 %v163_v46 }
   0xa   :  { %v40_v17 = vsub.f32 1.0, %v39_v14 }
   0xb   :  { %v29_v15 = vrot.slane %v28_v12, 1  ;;  %v36_v16 = vrot.slane %v35_v13, 1  ;;  %v226_v28 = vpop.eup %225  ;;  %192 = vmatpush.msra.mxu0 %v162_v47 }
   0xc   :  { %v41_v18 = vmul.f32 %v224_v11, %v40_v17  ;;  %v57_v29 = vmul.f32 32.0, %v226_v28  ;;  %vm61_vm4 = vweird.f32 %v226_v28 }
   0xd   :  { %v30_v19 = vadd.f32 %v29_v15, %v28_v12  ;;  %v37_v20 = vadd.f32 %v36_v16, %v35_v13 }
   0xe   :  { %v42_v21 = vadd.f32 %v224_v11, %v41_v18  ;;  %v58_v30 = vsub.f32 1.0, %v57_v29 }
  0x10   :  { %v44_v22 = vsel %vm43_vm1, %v224_v11, %v42_v21  ;;  %v59_v31 = vmul.f32 %v226_v28, %v58_v30 }
  0x11   :  { %v45_v23 = vmul.f32 %v44_v22, %v30_v19  ;;  %v46_v24 = vmul.f32 %v44_v22, %v37_v20 }
  0x12   :  { %v60_v32 = vadd.f32 %v226_v28, %v59_v31 }
  0x13   :  { %v50_v25 = vsel %vm49_vm2, %v46_v24, %v45_v23 }
  0x14   :  { %v53_v26 = vsel %vm52_vm3, %v50_v25, 0.0  ;;  %v62_v33 = vsel %vm61_vm4, %v226_v28, %v60_v32 }
  0x15   :  { %54 = vadd.xlane.f32.xlu0 %v53_v26 }
  0x88   :  { %v55_v34 = vpop.xlane.xlu0 %54 }
  0x89   :  { %v63_v35 = vmul.f32 %v62_v33, %v55_v34 }
  0x8b   :  { %v65_v36 = vrot.slane %v63_v35, 1  ;;  %v68_v37 = vsub.f32 %v45_v23, %v63_v35 }
  0x8d   :  { %v69_v38 = vsub.f32 %v46_v24, %v65_v36  ;;  %v70_v40 = vmul.f32 %v68_v37, %v68_v37 }
  0x8f   :  { %v71_v39 = vmul.f32 %v69_v38, %v69_v38 }
  0x91   :  { %v74_v41 = vrot.slane %v71_v39, 7 }
  0x93   :  { %v75_v42 = vsel %vm49_vm2, %v74_v41, %v70_v40 }
  0x94   :  { %v77_v43 = vsel %vm52_vm3, %v75_v42, 0.0 }
  0x95   :  { %78 = vadd.xlane.f32.xlu0 %v77_v43 }
 0x108   :  { %v79_v48 = vpop.xlane.xlu0 %78 }
 0x109   :  { %v80_v49 = vmul.f32 %v79_v48, %v62_v33  ;;  %v222_v48 = vld [vmem:[%s336_s4] ss:$0 sm:$0xff] }
 0x10b   :  { %v81_v50 = vadd.f32 1e-06, %v80_v49 }
 0x10d   :  { %227 = vrsqrt.f32 %v81_v50  ;;  %vm88_vm6 = vweird.f32 %v81_v50 }
 0x10e   :  { %229 = vrcp.f32 %v261_v56 }
 0x113   :  { %v228_v51 = vpop.eup %227 }
 0x114   :  { %v83_v52 = vmul.f32 %v228_v51, %v81_v50  ;;  %vm89_vm5 = vweird.f32 %v228_v51  ;;  %v230_v62 = vpop.eup %229 }
 0x115   :  { %vm90_vm7 = vmor %vm88_vm6, %vm89_vm5  ;;  %v123_v3 = vmul.f32 2.0, %v230_v62  ;;  %vm127_vm8 = vweird.f32 %v230_v62 }
 0x116   :  { %v84_v53 = vmul.f32 %v228_v51, %v83_v52 }
 0x117   :  { %v124_v7 = vsub.f32 1.0, %v123_v3 }
 0x118   :  { %v85_v54 = vmul.f32 0.5, %v84_v53 }
 0x119   :  { %v125_v11 = vmul.f32 %v230_v62, %v124_v7 }
 0x11a   :  { %v86_v55 = vsub.f32 1.5, %v85_v54 }
 0x11b   :  { %v126_v14 = vadd.f32 %v230_v62, %v125_v11 }
 0x11c   :  { %v87_v57 = vmul.f32 %v228_v51, %v86_v55 }
 0x11d   :  { %v128_v17 = vsel %vm127_vm8, %v230_v62, %v126_v14 }
 0x11e   :  { %v91_v58 = vsel %vm90_vm7, %v228_v51, %v87_v57 }
 0x11f   :  { %v93_v60 = vrot.slane %v91_v58, 1  ;;  %v96_v61 = vmul.f32 %v91_v58, %v68_v37 }
 0x121   :  { %v97_v63 = vmul.f32 %v93_v60, %v69_v38  ;;  %v102_v0 = vmul.f32 %v220_v59, %v96_v61 }
 0x123   :  { %v103_v1 = vmul.f32 %v220_v59, %v97_v63  ;;  %v108_v5 = vadd.f32 %v221_v2, %v102_v0 }
 0x125   :  { %v109_v4 = vadd.f32 %v221_v2, %v103_v1 }
 0x127   :  { %v112_v6 = vrot.slane %v109_v4, 7 }
 0x129   :  { %v113_v8 = vsel %vm49_vm2, %v112_v6, %v108_v5 }
 0x12a   :  { %v115_v9 = vsel %vm52_vm3, %v113_v8, 0.0 }
 0x12b   :  { %v116_v10 = vrot.slane %v115_v9, 4 }
 0x12d   :  { %v117_v12 = vadd.f32 %v116_v10, %v115_v9 }
 0x12f   :  { %v118_v13 = vrot.slane %v117_v12, 2 }
 0x131   :  { %v119_v15 = vadd.f32 %v118_v13, %v117_v12 }
 0x133   :  { %v120_v16 = vrot.slane %v119_v15, 1 }
 0x135   :  { %v121_v18 = vadd.f32 %v120_v16, %v119_v15 }
 0x137   :  { %v129_v19 = vmul.f32 %v128_v17, %v121_v18 }
 0x139   :  { %v130_v20 = vperm.slane %v129_v19, 0 }
 0x13b   :  { %v131_v21 = vsub.f32 %v108_v5, %v130_v20  ;;  %v132_v22 = vsub.f32 %v109_v4, %v130_v20 }
 0x13d   :  { %v134_v23 = vmul.f32 %v132_v22, %v132_v22  ;;  %v133_v24 = vmul.f32 %v131_v21, %v131_v21 }
 0x13f   :  { %v137_v25 = vrot.slane %v134_v23, 7 }
 0x141   :  { %v138_v26 = vsel %vm49_vm2, %v137_v25, %v133_v24 }
 0x142   :  { %v140_v27 = vsel %vm52_vm3, %v138_v26, 0.0 }
 0x143   :  { %v141_v28 = vrot.slane %v140_v27, 4 }
 0x145   :  { %v142_v29 = vadd.f32 %v141_v28, %v140_v27 }
 0x147   :  { %v143_v30 = vrot.slane %v142_v29, 2 }
 0x149   :  { %v144_v31 = vadd.f32 %v143_v30, %v142_v29 }
 0x14b   :  { %v145_v32 = vrot.slane %v144_v31, 1 }
 0x14d   :  { %v146_v33 = vadd.f32 %v145_v32, %v144_v31 }
 0x14f   :  { %v147_v34 = vmul.f32 %v146_v33, %v128_v17 }
 0x151   :  { %v148_v35 = vadd.f32 1e-06, %v147_v34 }
 0x153   :  { %231 = vrsqrt.f32 %v148_v35  ;;  %vm155_vm10 = vweird.f32 %v148_v35 }
 0x159   :  { %v232_v36 = vpop.eup %231 }
 0x15a   :  { %v150_v37 = vmul.f32 %v232_v36, %v148_v35  ;;  %vm156_vm9 = vweird.f32 %v232_v36 }
 0x15b   :  { %vm157_vm11 = vmor %vm155_vm10, %vm156_vm9 }
 0x15c   :  { %v151_v38 = vmul.f32 %v232_v36, %v150_v37 }
 0x15e   :  { %v152_v39 = vmul.f32 0.5, %v151_v38 }
 0x160   :  { %v153_v40 = vsub.f32 1.5, %v152_v39 }
 0x162   :  { %v154_v41 = vmul.f32 %v232_v36, %v153_v40 }
 0x164   :  { %v158_v42 = vsel %vm157_vm11, %v232_v36, %v154_v41 }
 0x165   :  { %v159_v43 = vperm.slane %v158_v42, 0 }
 0x167   :  { %v161_v44 = vmul.f32 %v159_v43, %v132_v22  ;;  %v160_v45 = vmul.f32 %v159_v43, %v131_v21 }
 0x169   :  { %v172_v46 = vrot.slane %v161_v44, 7 }
 0x16b   :  { %v173_v47 = vsel %vm49_vm2, %v172_v46, %v160_v45 }
 0x16c   :  { %215 = vmatmul.msk.f32.vlgmr.msra.gmra.mxu0 %vm174_vm12, %v173_v47 }
 0x1e9   :  { %v194_v49 = vpop.f32.mrf.mxu0 }
 0x1ea   :  { %v195_v50 = vadd.f32 %v222_v48, %v194_v49 }
 0x1ec   :  { %198 = vst.msk [vmem:[#allocation2] sm:$0x3] %vm197_vm13, %v195_v50 }
 0x1ed   :  { %209 = dma.vmem_to_hbm [thread:$0]  %s205_s8, 32, %s207_s11, [#allocation3]  }
 0x1ee   :  { %257 = dma.done.wait [#allocation3], 32  }
 0x1ef   :  { %258 = vsyncadd [#allocation3], 4294967264 }
 0x1f0   :  { %214 = vsyncpa [#allocation3], 1 }

// kernel: custom_clip_forward.13
= control target key start
LH: loop header
LB: loop body
LE: loop exit
PB: predicated region body
PF: predicated region fallthrough
CT: control target
= control target key end

     0   :  { %s1171_s25 = smov 0   ;;  %s1363_s0 = inlined_call_operand.vmem [shape: f32[2,4,32], index: 0, kind: input, shape index: {}]   ;;  %s1364_s1 = inlined_call_operand.vmem [shape: f32[1,32], index: 1, kind: input, shape index: {}]   ;;  %s1365_s2 = inlined_call_operand.vmem [shape: f32[1,32], index: 2, kind: input, shape index: {}]   ;;  %s1366_s3 = inlined_call_operand.vmem [shape: f32[32,96], index: 3, kind: input, shape index: {}]   ;;  %s1367_s4 = inlined_call_operand.vmem [shape: f32[1,96], index: 4, kind: input, shape index: {}]   ;;  %s1368_s5 = inlined_call_operand.vmem [shape: f32[32,32], index: 5, kind: input, shape index: {}]   ;;  %s1369_s6 = inlined_call_operand.vmem [shape: f32[1,32], index: 6, kind: input, shape index: {}]   ;;  %s1370_s7 = inlined_call_operand.vmem [shape: f32[1,32], index: 7, kind: input, shape index: {}]   ;;  %s1371_s8 = inlined_call_operand.vmem [shape: f32[1,32], index: 8, kind: input, shape index: {}]   ;;  %s1372_s9 = inlined_call_operand.vmem [shape: f32[32,128], index: 9, kind: input, shape index: {}]   ;;  %s1373_s10 = inlined_call_operand.vmem [shape: f32[1,128], index: 10, kind: input, shape index: {}]   ;;  %s1374_s11 = inlined_call_operand.vmem [shape: f32[128,32], index: 11, kind: input, shape index: {}]   ;;  %s1375_s12 = inlined_call_operand.vmem [shape: f32[1,32], index: 12, kind: input, shape index: {}]   ;;  %s1376_s13 = inlined_call_operand.vmem [shape: f32[2,4,32], index: 13, kind: output, shape index: {}]  }
   0x1 LB: > { %s995_s26 = sadd.s32 4294967295, %s1084_s25   ;;  %p999_p0 = scmp.ge.s32.totalorder %s1084_s25, 1  ;;  %s1084_s25 = sphi %s1171_s25, %s23_s25  }
   0x2   : > { %p386_p1 = scmp.lt.s32.totalorder %s1084_s25, 3 }
   0x4   : > { %p387_p2 = pnand %p999_p0, %p386_p1 }
   0x5   : > { %p428_p3 = scmp.lt.s32.totalorder (!%p387_p2), %s995_s26, 1  ;;  %s1087_s14 = smov (!%p387_p2), 96  }
   0x6   : > { %390 = sbr.rel (%p387_p2) target bundleno = 1870 (0x74e), region = 72  ;;  %s1088_s15 = smov (!%p387_p2), 112  }
   0x7   : > { %s1089_s16 = smov (!%p387_p2), 120   ;;  %s1090_s17 = smov (!%p387_p2), 88  }
   0x8   : > { %s1091_s18 = smov (!%p387_p2), 80   ;;  %s1092_s19 = smov (!%p387_p2), 72  }
   0x9   : > { %s1093_s20 = smov (!%p387_p2), 104   ;;  %s1094_s21 = smov (!%p387_p2), 64  }
   0xa   : > { %s1095_s22 = smov (!%p387_p2), 40   ;;  %s1096_s23 = smov (!%p387_p2), 56  }
   0xb   : > { %s1378_s26 = smov (!%p428_p3, %s995_s26), 1  ;;  %vm439_vm0 = vcmask 257024   ;;  %v1086_v2 = vmov 32.0   ;;  %v480_v14 = vld [vmem:[%s1366_s3 + $0x18] sm:$0xff]  ;;  %v479_v15 = vld [vmem:[%s1366_s3 + $0x10] sm:$0xff]  ;;  %v478_v16 = vld [vmem:[%s1366_s3 + $0x8] sm:$0xff] }
   0xc   : > { %s1000_s27 = sshll.u32 %s1378_s26, 2  ;;  %1054 = vrcp.f32 %v1086_v2  ;;  %501 = vmatpush.msra.mxu2 %v480_v14  ;;  %v477_v17 = vld [vmem:[%s1366_s3] sm:$0xff]  ;;  %vm485_vm5 = vcmask 261120   ;;  %vm513_vm6 = vcmask 64512   ;;  %vm539_vm7 = vcmask 27648   ;;  %s1097_s24 = smov 48  }
   0xd   : > { %s431_s30 = scalar_lea.vmem %s1363_s0, %s1000_s27  ;;  %v1046_v27 = vld [vmem:[%s1364_s1] ss:$0 sm:$0xff]  ;;  %vm557_vm8 = vcmask 1043456   ;;  %vm553_vm9 = vcmask 31744   ;;  %s1098_s28 = smov 8   ;;  %vm791_vm10 = vcmask 130048  }
   0xe   : > { %v1187_v0 = vld [vmem:[%s431_s30] sm:$0xf]  ;;  %502 = vmatpush.msra.mxu2 %v479_v15  ;;  %s1099_s29 = smov 16   ;;  %s1100_s30 = smov 24   ;;  %vm793_vm11 = vcmask 195584  }
   0xf   : > { %v440_v1 = vsel %vm439_vm0, %v1187_v0, 0.0  ;;  %v1047_v30 = vld [vmem:[%s1365_s2] ss:$0 sm:$0xff] }
  0x10   : > { %441 = vadd.xlane.f32.xlu0 %v440_v1  ;;  %503 = vmatpush.msra.mxu2 %v478_v16  ;;  %v1048_v33 = vld [vmem:[%s1367_s4] ss:$0 sm:$0xff] }
  0x12   : > { %v1055_v3 = vpop.eup %1054  ;;  %504 = vmatpush.msra.mxu2 %v477_v17 }
  0x13   : > { %v444_v4 = vmul.f32 32.0, %v1055_v3  ;;  %vm448_vm1 = vweird.f32 %v1055_v3 }
  0x15   : > { %v445_v5 = vsub.f32 1.0, %v444_v4 }
  0x17   : > { %v446_v6 = vmul.f32 %v1055_v3, %v445_v5 }
  0x19   : > { %v447_v7 = vadd.f32 %v1055_v3, %v446_v6 }
  0x1b   : > { %v1191_v8 = vsel %vm448_vm1, %v1055_v3, %v447_v7 }
  0x83   : > { %v442_v9 = vpop.xlane.xlu0 %441 }
  0x84   : > { %v450_v10 = vmul.f32 %v1191_v8, %v442_v9 }
  0x86   : > { %v451_v11 = vsub.f32 %v1187_v0, %v450_v10 }
  0x88   : > { %v452_v12 = vmul.f32 %v451_v11, %v451_v11 }
  0x8a   : > { %v453_v13 = vsel %vm439_vm0, %v452_v12, 0.0 }
  0x8b   : > { %454 = vadd.xlane.f32.xlu0 %v453_v13 }
  0xfe   : > { %v455_v18 = vpop.xlane.xlu0 %454 }
  0xff   : > { %v456_v19 = vmul.f32 %v455_v18, %v1191_v8 }
 0x101   : > { %v457_v20 = vadd.f32 1e-06, %v456_v19 }
 0x103   : > { %1056 = vrsqrt.f32 %v457_v20  ;;  %vm464_vm3 = vweird.f32 %v457_v20 }
 0x109   : > { %v1057_v21 = vpop.eup %1056 }
 0x10a   : > { %v459_v22 = vmul.f32 %v1057_v21, %v457_v20  ;;  %vm465_vm2 = vweird.f32 %v1057_v21 }
 0x10b   : > { %vm466_vm4 = vmor %vm464_vm3, %vm465_vm2 }
 0x10c   : > { %v460_v23 = vmul.f32 %v1057_v21, %v459_v22 }
 0x10e   : > { %v461_v24 = vmul.f32 0.5, %v460_v23 }
 0x110   : > { %v462_v25 = vsub.f32 1.5, %v461_v24 }
 0x112   : > { %v463_v26 = vmul.f32 %v1057_v21, %v462_v25 }
 0x114   : > { %v467_v28 = vsel %vm466_vm4, %v1057_v21, %v463_v26 }
 0x115   : > { %v468_v29 = vmul.f32 %v467_v28, %v451_v11 }
 0x117   : > { %v472_v31 = vmul.f32 %v1046_v27, %v468_v29 }
 0x119   : > { %v476_v32 = vadd.f32 %v1047_v30, %v472_v31  ;;  %v798_v30 = vld [vmem:[%s1368_s5 + $0x18] sm:$0xff]  ;;  %v797_v31 = vld [vmem:[%s1368_s5 + $0x10] sm:$0xff] }
 0x11b   : > { %1002 = vmatmul.msk.f32.vlgmr.msra.gmra.mxu2 %vm485_vm5, %v476_v32  ;;  %v796_v32 = vld [vmem:[%s1368_s5 + $0x8] sm:$0xff] }
 0x19e   : > { %v506_v34 = vpop.f32.mrf.mxu2 }
 0x19f   : > { %v1219_v35 = vadd.f32 %v1048_v33, %v506_v34  ;;  %v795_v33 = vld [vmem:[%s1368_s5] sm:$0xff] }
 0x1a1   : > { %511 = vrot.lane.b32.xlu1 %v1219_v35, %s1087_s14  ;;  %v509_v36 = vmul.f32 0.35355338, %v1219_v35 }
 0x1a3   : > { %646 = vrot.lane.b32.xlu0 %v509_v36, %s1088_s15  ;;  %580 = vrot.lane.b32.xlu2 %v509_v36, %s1089_s16 }
 0x1a9   : > { %582 = vrot.lane.b32.xlu1 %v1219_v35, %s1090_s17 }
 0x1ab   : > { %648 = vrot.lane.b32.xlu2 %v1219_v35, %s1091_s18  ;;  %s435_s18 = scalar_lea.vmem %s1376_s13, %s1000_s27 }
 0x1b1   : > { %714 = vrot.lane.b32.xlu1 %v1219_v35, %s1092_s19 }
 0x1b3   : > { %712 = vrot.lane.b32.xlu2 %v509_v36, %s1093_s20 }
 0x1fd   : > { %v581_v37 = vpop.permute.xlu2 %580 }
 0x205   : > { %v649_v39 = vpop.permute.xlu2 %648 }
 0x20d   : > { %v713_v43 = vpop.permute.xlu2 %712 }
 0x213   : > { %v512_v38 = vpop.permute.xlu1 %511 }
 0x214   : > { %1003 = vmatpush.xpose.msk.msra.mxu1 %vm513_vm6, %v512_v38 }
 0x215   : > { %v647_v41 = vpop.permute.xlu0 %646 }
 0x217   : > { %1004 = vmatmul.msk.f32.vlgmr.msra.gmra.mxu1 %vm513_vm6, %v509_v36 }
 0x218   : > { %1011 = vmatpush.xpose.msk.msrb.mxu1 %vm513_vm6, %v649_v39 }
 0x21b   : > { %v583_v40 = vpop.permute.xlu1 %582 }
 0x21c   : > { %1007 = vmatpush.xpose.msk.msra.mxu3 %vm513_vm6, %v583_v40  ;;  %v1049_v40 = vld [vmem:[%s1369_s6] ss:$0 sm:$0xff] }
 0x21f   : > { %1008 = vmatmul.msk.f32.vlgmr.msra.gmra.mxu3 %vm513_vm6, %v581_v37  ;;  %1012 = vmatmul.msk.f32.vlgmr.msrb.gmra.mxu1 %vm513_vm6, %v647_v41 }
 0x223   : > { %v715_v42 = vpop.permute.xlu1 %714 }
 0x224   : > { %1015 = vmatpush.xpose.msk.msra.mxu1 %vm513_vm6, %v715_v42 }
 0x227   : > { %1016 = vmatmul.msk.f32.vlgmr.msra.gmra.mxu1 %vm513_vm6, %v713_v43 }
 0x228   : > { %814 = vmatpush.msrb.mxu1 %v798_v30 }
 0x22a   : > { %815 = vmatpush.msrb.mxu1 %v797_v31 }
 0x22c   : > { %816 = vmatpush.msrb.mxu1 %v796_v32 }
 0x22e   : > { %817 = vmatpush.msrb.mxu1 %v795_v33  ;;  %v1053_v33 = vld [vmem:[%s1375_s12] ss:$0 sm:$0xff] }
 0x294   : > { %v536_v44 = vpop.f32.mrf.mxu1 }
 0x295   : > { %v540_v45 = vsel %vm539_vm7, %v536_v44, -inf }
 0x296   : > { %541 = vmax.xlane.f32.xlu1 %v540_v45 }
 0x29c   : > { %v671_v46 = vpop.f32.mrf.mxu1 }
 0x29d   : > { %v674_v47 = vsel %vm539_vm7, %v671_v46, -inf }
 0x29e   : > { %675 = vmax.xlane.f32.xlu0 %v674_v47 }
 0x2a2   : > { %v605_v48 = vpop.f32.mrf.mxu3 }
 0x2a3   : > { %v608_v49 = vsel %vm539_vm7, %v605_v48, -inf }
 0x2a4   : > { %609 = vmax.xlane.f32.xlu2 %v608_v49  ;;  %v737_v50 = vpop.f32.mrf.mxu1 }
 0x2a5   : > { %v740_v51 = vsel %vm539_vm7, %v737_v50, -inf }
 0x2ac   : > { %741 = vmax.xlane.f32.xlu2 %v740_v51  ;;  %v861_v51 = vld [vmem:[%s1372_s9 + $0x8] sm:$0xff] }
 0x2af   : > { %551 = vrot.lane.b32.xlu1 %v1219_v35, %s1094_s21 }
 0x309   : > { %v542_v52 = vpop.xlane.xlu1 %541 }
 0x30a   : > { %v543_v53 = vsub.f32 %v536_v44, %v542_v52  ;;  %v860_v52 = vld [vmem:[%s1372_s9] sm:$0xff] }
 0x30c   : > { %v544_v54 = vmul.f32 1.442695, %v543_v53  ;;  %v915_v53 = vld [vmem:[%s1374_s11 + $0x78] sm:$0xff] }
 0x30d   : > { %920 = vmatpush.msra.mxu0 %v915_v53 }
 0x30e   : > { %1058 = vpow2.f32 %v544_v54  ;;  %v914_v54 = vld [vmem:[%s1374_s11 + $0x70] sm:$0xff] }
 0x30f   : > { %921 = vmatpush.msra.mxu0 %v914_v54 }
 0x311   : > { %v676_v55 = vpop.xlane.xlu0 %675 }
 0x312   : > { %v677_v56 = vsub.f32 %v671_v46, %v676_v55  ;;  %v913_v55 = vld [vmem:[%s1374_s11 + $0x68] sm:$0xff] }
 0x313   : > { %922 = vmatpush.msra.mxu0 %v913_v55 }
 0x314   : > { %v1059_v57 = vpop.eup %1058  ;;  %v678_v58 = vmul.f32 1.442695, %v677_v56 }
 0x315   : > { %v546_v59 = vsel %vm539_vm7, %v1059_v57, 0.0 }
 0x316   : > { %1060 = vpow2.f32 %v678_v58  ;;  %547 = vadd.xlane.f32.xlu1 %v546_v59  ;;  %v912_v58 = vld [vmem:[%s1374_s11 + $0x60] sm:$0xff] }
 0x317   : > { %v610_v60 = vpop.xlane.xlu2 %609  ;;  %923 = vmatpush.msra.mxu0 %v912_v58 }
 0x318   : > { %v611_v61 = vsub.f32 %v605_v48, %v610_v60 }
 0x31a   : > { %v612_v62 = vmul.f32 1.442695, %v611_v61 }
 0x31c   : > { %v1061_v63 = vpop.eup %1060  ;;  %1062 = vpow2.f32 %v612_v62 }
 0x31d   : > { %v680_v1 = vsel %vm539_vm7, %v1061_v63, 0.0 }
 0x31e   : > { %681 = vadd.xlane.f32.xlu0 %v680_v1 }
 0x31f   : > { %v742_v2 = vpop.xlane.xlu2 %741 }
 0x320   : > { %v743_v3 = vsub.f32 %v737_v50, %v742_v2  ;;  %v863_v50 = vld [vmem:[%s1372_s9 + $0x18] sm:$0xff] }
 0x321   : > { %v552_v4 = vpop.permute.xlu1 %551 }
 0x322   : > { %v1063_v5 = vpop.eup %1062  ;;  %v744_v6 = vmul.f32 1.442695, %v743_v3  ;;  %1005 = vmatpush.msk.msrb.mxu2 %vm557_vm8, %v552_v4 }
 0x323   : > { %v614_v7 = vsel %vm539_vm7, %v1063_v5, 0.0 }
 0x324   : > { %1064 = vpow2.f32 %v744_v6  ;;  %615 = vadd.xlane.f32.xlu2 %v614_v7 }
 0x32a   : > { %v1065_v9 = vpop.eup %1064 }
 0x32b   : > { %v746_v10 = vsel %vm539_vm7, %v1065_v9, 0.0 }
 0x32c   : > { %747 = vadd.xlane.f32.xlu2 %v746_v10  ;;  %v910_v10 = vld [vmem:[%s1374_s11 + $0x50] sm:$0xff] }
 0x32f   : > { %751 = vrot.lane.b32.xlu1 %v1219_v35, %s1095_s22 }
 0x332   : > { %619 = vrot.lane.b32.xlu0 %v1219_v35, %s1096_s23 }
 0x344   : > { %685 = vrot.lane.b32.xlu2 %v1219_v35, %s1097_s24 }
 0x389   : > { %v548_v11 = vpop.xlane.xlu1 %547 }
 0x38a   : > { %1066 = vrcp.f32 %v548_v11  ;;  %v909_v11 = vld [vmem:[%s1374_s11 + $0x48] sm:$0xff] }
 0x390   : > { %v1067_v12 = vpop.eup %1066 }
 0x391   : > { %v550_v13 = vmul.f32 %v1067_v12, %v1059_v57  ;;  %v682_v15 = vpop.xlane.xlu0 %681  ;;  %v908_v12 = vld [vmem:[%s1374_s11 + $0x40] sm:$0xff] }
 0x393   : > { %1006 = vmatmul.msk.f32.vlgmr.msrb.gmra.mxu2 %vm553_vm9, %v550_v13  ;;  %v907_v13 = vld [vmem:[%s1374_s11 + $0x38] sm:$0xff] }
 0x397   : > { %v616_v14 = vpop.xlane.xlu2 %615 }
 0x398   : > { %1068 = vrcp.f32 %v616_v14  ;;  %v906_v14 = vld [vmem:[%s1374_s11 + $0x30] sm:$0xff] }
 0x399   : > { %1070 = vrcp.f32 %v682_v15  ;;  %v905_v15 = vld [vmem:[%s1374_s11 + $0x28] sm:$0xff] }
 0x39e   : > { %v1069_v17 = vpop.eup %1068 }
 0x39f   : > { %v748_v16 = vpop.xlane.xlu2 %747  ;;  %v1071_v18 = vpop.eup %1070  ;;  %v618_v19 = vmul.f32 %v1069_v17, %v1063_v5  ;;  %v1051_v5 = vld [vmem:[%s1371_s8] ss:$0 sm:$0xff]  ;;  %v903_v17 = vld [vmem:[%s1374_s11 + $0x18] sm:$0xff] }
 0x3a0   : > { %1072 = vrcp.f32 %v748_v16  ;;  %v684_v23 = vmul.f32 %v1071_v18, %v1061_v63  ;;  %v904_v16 = vld [vmem:[%s1374_s11 + $0x20] sm:$0xff]  ;;  %v902_v18 = vld [vmem:[%s1374_s11 + $0x10] sm:$0xff] }
 0x3a1   : > { %v752_v21 = vpop.permute.xlu1 %751 }
 0x3a4   : > { %v620_v20 = vpop.permute.xlu0 %619 }
 0x3a5   : > { %1009 = vmatpush.msk.msra.mxu2 %vm557_vm8, %v620_v20  ;;  %v900_v20 = vld [vmem:[%s1374_s11] sm:$0xff] }
 0x3a6   : > { %1010 = vmatmul.msk.f32.vlgmr.msra.gmra.mxu2 %vm553_vm9, %v618_v19  ;;  %v1073_v24 = vpop.eup %1072  ;;  %v901_v19 = vld [vmem:[%s1374_s11 + $0x8] sm:$0xff] }
 0x3a7   : > { %1017 = vmatpush.msk.msrb.mxu2 %vm557_vm8, %v752_v21  ;;  %v686_v22 = vpop.permute.xlu2 %685  ;;  %v750_v25 = vmul.f32 %v1073_v24, %v1065_v9  ;;  %v911_v9 = vld [vmem:[%s1374_s11 + $0x58] sm:$0xff]  ;;  %v1052_v21 = vld [vmem:[%s1373_s10] ss:$0 sm:$0xff] }
 0x3a8   : > { %1013 = vmatpush.msk.msrb.mxu3 %vm557_vm8, %v686_v22  ;;  %924 = vmatpush.msra.mxu0 %v911_v9 }
 0x3a9   : > { %1014 = vmatmul.msk.f32.vlgmr.msrb.gmra.mxu3 %vm553_vm9, %v684_v23 }
 0x3aa   : > { %883 = vmatpush.msra.mxu3 %v863_v50  ;;  %925 = vmatpush.msra.mxu0 %v910_v10 }
 0x3ac   : > { %926 = vmatpush.msra.mxu0 %v909_v11 }
 0x3ae   : > { %1018 = vmatmul.msk.f32.vlgmr.msrb.gmra.mxu2 %vm553_vm9, %v750_v25  ;;  %927 = vmatpush.msra.mxu0 %v908_v12 }
 0x3b0   : > { %928 = vmatpush.msra.mxu0 %v907_v13 }
 0x3b2   : > { %929 = vmatpush.msra.mxu0 %v906_v14 }
 0x3b4   : > { %930 = vmatpush.msra.mxu0 %v905_v15 }
 0x3b6   : > { %931 = vmatpush.msra.mxu0 %v904_v16 }
 0x3b8   : > { %932 = vmatpush.msra.mxu0 %v903_v17 }
 0x3ba   : > { %933 = vmatpush.msra.mxu0 %v902_v18 }
 0x3bc   : > { %934 = vmatpush.msra.mxu0 %v901_v19 }
 0x3be   : > { %935 = vmatpush.msra.mxu0 %v900_v20 }
 0x416   : > { %v577_v26 = vpop.f32.mrf.mxu2 }
 0x429   : > { %v643_v27 = vpop.f32.mrf.mxu2 }
 0x42a   : > { %779 = vrot.lane.b32.xlu0 %v643_v27, %s1098_s28 }
 0x42c   : > { %v709_v28 = vpop.f32.mrf.mxu3 }
 0x42d   : > { %783 = vrot.lane.b32.xlu1 %v709_v28, %s1099_s29 }
 0x431   : > { %v775_v29 = vpop.f32.mrf.mxu2 }
 0x432   : > { %787 = vrot.lane.b32.xlu2 %v775_v29, %s1100_s30 }
 0x48c   : > { %v788_v37 = vpop.permute.xlu2 %787 }
 0x49c   : > { %v780_v34 = vpop.permute.xlu0 %779 }
 0x49d   : > { %v790_v35 = vsel %vm513_vm6, %v577_v26, %v780_v34 }
 0x49f   : > { %v784_v36 = vpop.permute.xlu1 %783 }
 0x4a0   : > { %v792_v38 = vsel %vm791_vm10, %v790_v35, %v784_v36 }
 0x4a1   : > { %v794_v39 = vsel %vm793_vm11, %v792_v38, %v788_v37 }
 0x4a2   : > { %1019 = vmatmul.msk.f32.vlgmr.msrb.gmra.mxu1 %vm485_vm5, %v794_v39 }
 0x51f   : > { %v819_v41 = vpop.f32.mrf.mxu1 }
 0x520   : > { %v822_v42 = vadd.f32 %v819_v41, %v1187_v0  ;;  %v862_v0 = vld [vmem:[%s1372_s9 + $0x10] sm:$0xff] }
 0x521   : > { %884 = vmatpush.msra.mxu3 %v862_v0 }
 0x522   : > { %v1272_v43 = vadd.f32 %v1049_v40, %v822_v42 }
 0x523   : > { %885 = vmatpush.msra.mxu3 %v861_v51 }
 0x524   : > { %v830_v44 = vsel %vm439_vm0, %v1272_v43, 0.0 }
 0x525   : > { %831 = vadd.xlane.f32.xlu0 %v830_v44  ;;  %886 = vmatpush.msra.mxu3 %v860_v52 }
 0x598   : > { %v832_v45 = vpop.xlane.xlu0 %831 }
 0x599   : > { %v833_v46 = vmul.f32 %v832_v45, %v1191_v8 }
 0x59b   : > { %v834_v47 = vsub.f32 %v1272_v43, %v833_v46 }
 0x59d   : > { %v835_v48 = vmul.f32 %v834_v47, %v834_v47 }
 0x59f   : > { %v836_v49 = vsel %vm439_vm0, %v835_v48, 0.0 }
 0x5a0   : > { %837 = vadd.xlane.f32.xlu1 %v836_v49 }
 0x613   : > { %v838_v56 = vpop.xlane.xlu1 %837 }
 0x614   : > { %v839_v57 = vmul.f32 %v838_v56, %v1191_v8  ;;  %v1050_v8 = vld [vmem:[%s1370_s7] ss:$0 sm:$0xff] }
 0x616   : > { %v840_v59 = vadd.f32 1e-06, %v839_v57 }
 0x618   : > { %1074 = vrsqrt.f32 %v840_v59  ;;  %vm847_vm13 = vweird.f32 %v840_v59 }
 0x61e   : > { %v1075_v60 = vpop.eup %1074 }
 0x61f   : > { %v842_v61 = vmul.f32 %v1075_v60, %v840_v59  ;;  %vm848_vm12 = vweird.f32 %v1075_v60 }
 0x620   : > { %vm849_vm14 = vmor %vm847_vm13, %vm848_vm12 }
 0x621   : > { %v843_v62 = vmul.f32 %v1075_v60, %v842_v61 }
 0x623   : > { %v844_v63 = vmul.f32 0.5, %v843_v62 }
 0x625   : > { %v845_v1 = vsub.f32 1.5, %v844_v63 }
 0x627   : > { %v846_v2 = vmul.f32 %v1075_v60, %v845_v1 }
 0x629   : > { %v850_v3 = vsel %vm849_vm14, %v1075_v60, %v846_v2 }
 0x62a   : > { %v851_v4 = vmul.f32 %v850_v3, %v834_v47 }
 0x62c   : > { %v855_v6 = vmul.f32 %v1050_v8, %v851_v4 }
 0x62e   : > { %v859_v7 = vadd.f32 %v1051_v5, %v855_v6 }
 0x630   : > { %1020 = vmatmul.msk.f32.vlgmr.msra.gmra.mxu3 %vm485_vm5, %v859_v7 }
 0x6b3   : > { %v888_v22 = vpop.f32.mrf.mxu3 }
 0x6b4   : > { %v889_v23 = vadd.f32 %v1052_v21, %v888_v22 }
 0x6b6   : > { %v892_v24 = vmul.f32 0.044715, %v889_v23  ;;  %v891_v30 = vmul.f32 0.5, %v889_v23 }
 0x6b8   : > { %v893_v25 = vmul.f32 %v892_v24, %v889_v23 }
 0x6ba   : > { %v894_v26 = vmul.f32 %v893_v25, %v889_v23 }
 0x6bc   : > { %v895_v27 = vadd.f32 %v894_v26, %v889_v23 }
 0x6be   : > { %v896_v28 = vmul.f32 0.7978846, %v895_v27 }
 0x6c0   : > { %1076 = vtanh.f32 %v896_v28 }
 0x6c6   : > { %v1077_v29 = vpop.eup %1076 }
 0x6c7   : > { %v898_v31 = vadd.f32 1.0, %v1077_v29 }
 0x6c9   : > { %v899_v32 = vmul.f32 %v898_v31, %v891_v30 }
 0x6cb   : > { %936 = vmatmul.f32.vlgmr.msra.gmra.mxu0 %v899_v32 }
 0x748   : > { %v937_v34 = vpop.f32.mrf.mxu0 }
 0x749   : > { %v938_v35 = vadd.f32 %v1053_v33, %v937_v34 }
 0x74b   : > { %v940_v36 = vadd.f32 %v938_v35, %v1272_v43 }
 0x74d   : > { %941 = vst.msk [vmem:[%s435_s18] sm:$0xf] %vm439_vm0, %v940_v36 }
 0x74e PF: > { %s23_s25 = sadd.s32 1, %s1084_s25  }
 0x74f   : > { %p20_p4 = scmp.ge.s32.totalorder %s23_s25, 4  }
 0x751   :  { %22 = sbr.rel (!%p20_p4) target bundleno = 1 (0x1), region = 102 }

</bundles_post_ra>
